<compile_context>
chip_gen: v5e
topology: v5e:2x2
jax: 0.10.0
libtpu: 0.0.40
codegen_flags: <defaults>
</compile_context>

<pallas_src>
import functools

import jax
import jax.numpy as jnp
from jax.experimental import pallas as pl
from jax.experimental.pallas import tpu as pltpu

EMBEDDING_DIM = 64
HIDDEN_DIM = 100          # logical hidden size (PyTorch)
HIDDEN_PAD = 128          # lane-aligned hidden size used inside the kernel
NO_LAYERS = 2
OUTPUT_DIM = 1

# PyTorch packs LSTM gates as (i, f, g, o); the kernel uses (i, f, o, g) so the
# three sigmoid gates form one contiguous 3*H-lane block.
_GATE_ORDER = (0, 1, 3, 2)


# ---------------------------------------------------------------------------
# Fused Pallas kernel: 2-layer wavefronted LSTM + FC + Sigmoid, VMEM-resident
# ---------------------------------------------------------------------------
def fused_lstm_kernel(x_ref, wih0_ref, whh0_ref, b0_ref,
                      wcat1_ref, b1_ref,
                      wfc_ref, bfc_ref, h0_ref, c0_ref,
                      sig_ref, hT_ref, cT_ref, *, T, B, H):
    """Fused forward pass.

    x_ref    : (T*B, E)   bf16 embedded inputs, time-major, batch padded to B
    wih0_ref : (E, 4H)    bf16 layer-0 input->gates weights (gate-padded)
    whh0_ref : (H, 4H)    bf16 layer-0 hidden->gates weights
    b0_ref   : (1, 4H)    f32  layer-0 b_ih + b_hh
    wcat1_ref: (2H, 4H)   bf16 layer-1 [W_ih1; W_hh1] folded weights (K=256)
    b1_ref   : (1, 4H)    f32  layer-1 b_ih + b_hh
    wfc_ref  : (1, H)     f32  fc weight (lane-padded)
    bfc_ref  : (1, 1)     f32  fc bias (SMEM scalar)
    h0/c0    : (NL, B, H) f32  initial state (padded)
    sig_ref  : (B, 1)     f32  sigmoid(fc(h_last)) output
    hT/cT    : (NL, B, H) f32  final state
    """
    H3 = 3 * H

    def gates_to_hc(gates, c_prev):
        # gates packed as (i, f, o, g): one sigmoid over 3H lanes, one tanh.
        sg = jax.nn.sigmoid(gates[:, :H3])
        i = sg[:, 0:H]
        f = sg[:, H:2 * H]
        o = sg[:, 2 * H:H3]
        g = jnp.tanh(gates[:, H3:])
        c_new = f * c_prev + i * g
        h_new = o * jnp.tanh(c_new)
        return h_new, c_new

    # ---- Layer 0: hoisted input projection for the whole sequence ----------
    # One (T*B, E) x (E, 4H) bf16 matmul; only the recurrent matmul remains on
    # the serial critical path.
    pre0 = (jnp.dot(x_ref[...], wih0_ref[...],
                    preferred_element_type=jnp.float32)
            + b0_ref[...])                                     # (T*B, 4H) f32

    whh0 = whh0_ref[...]                                       # (H, 4H)  bf16
    wcat1 = wcat1_ref[...]                                     # (2H, 4H) bf16
    b1 = b1_ref[...]                                           # (1, 4H)  f32

    h_l0 = h0_ref[0]
    c_l0 = c0_ref[0]
    h_l1 = h0_ref[1]
    c_l1 = c0_ref[1]

    # ---- Wavefront: layer-0 step t and layer-1 step t-1 per wave -----------
    h1_prev = None
    for t in range(T):                      # fully unrolled (T static, small)
        # Layer-0 step t: depends only on wave t-1 layer-0 state.
        g0 = (jnp.dot(h_l0.astype(jnp.bfloat16), whh0,
                      preferred_element_type=jnp.float32)
              + pre0[t * B:(t + 1) * B, :])
        h_l0_new, c_l0 = gates_to_hc(g0, c_l0)

        # Layer-1 step t-1: consumes h1_{t-1} and wave t-1 layer-1 state, so it
        # is data-independent of the layer-0 matmul above -> MXU pipelines the
        # two pushes back-to-back.  K=256 folded matmul (input proj + recur).
        if t > 0:
            xin = jnp.concatenate(
                [h1_prev.astype(jnp.bfloat16), h_l1.astype(jnp.bfloat16)],
                axis=-1)                                        # (B, 2H) bf16
            g1 = jnp.dot(xin, wcat1, preferred_element_type=jnp.float32) + b1
            h_l1, c_l1 = gates_to_hc(g1, c_l1)

        h1_prev = h_l0_new
        h_l0 = h_l0_new

    # ---- Drain: layer-1 step T-1 --------------------------------------------
    xin = jnp.concatenate(
        [h1_prev.astype(jnp.bfloat16), h_l1.astype(jnp.bfloat16)], axis=-1)
    g1 = jnp.dot(xin, wcat1, preferred_element_type=jnp.float32) + b1
    h_l1, c_l1 = gates_to_hc(g1, c_l1)

    hT_ref[0] = h_l0
    cT_ref[0] = c_l0
    hT_ref[1] = h_l1
    cT_ref[1] = c_l1

    # ---- FC(H -> 1) + Sigmoid on the last step (VPU mul + lane reduce) ------
    logit = jnp.sum(h_l1 * wfc_ref[...], axis=-1, keepdims=True) + bfc_ref[0, 0]
    sig_ref[...] = jax.nn.sigmoid(logit)


# ---------------------------------------------------------------------------
# Parameter construction (PyTorch-default-style init, then reorder/pad/cast)
# ---------------------------------------------------------------------------
def _reorder_pad_gates_last(w, H, Hp):
    """w: (..., 4H) in PyTorch (i,f,g,o) order -> (..., 4Hp) in (i,f,o,g) order,
    each gate block zero-padded to Hp lanes."""
    parts = []
    for g in _GATE_ORDER:
        blk = w[..., g * H:(g + 1) * H]
        pad = [(0, 0)] * (w.ndim - 1) + [(0, Hp - H)]
        parts.append(jnp.pad(blk, pad))
    return jnp.concatenate(parts, axis=-1)


def init_params(key, vocab_size, embedding_dim, hidden_dim, no_layers):
    """Init mimicking PyTorch defaults (uniform +/- 1/sqrt(H)), padded/cast for
    the kernel (bf16 matmul operands, f32 biases)."""
    H, Hp = hidden_dim, HIDDEN_PAD
    params = {}
    keys = jax.random.split(key, 3 + 4 * no_layers)
    params["embedding"] = jax.random.normal(
        keys[0], (vocab_size, embedding_dim), jnp.float32)

    k = 1.0 / jnp.sqrt(hidden_dim)
    raw = []
    for layer in range(no_layers):
        in_size = embedding_dim if layer == 0 else hidden_dim
        kw = keys[3 + 4 * layer: 3 + 4 * (layer + 1)]
        w_ih = jax.random.uniform(kw[0], (4 * H, in_size), jnp.float32, -k, k)
        w_hh = jax.random.uniform(kw[1], (4 * H, H), jnp.float32, -k, k)
        b_ih = jax.random.uniform(kw[2], (4 * H,), jnp.float32, -k, k)
        b_hh = jax.random.uniform(kw[3], (4 * H,), jnp.float32, -k, k)

        w_ih_t = w_ih.T                                     # (IN, 4H)
        if layer > 0:                                       # pad hidden-input rows
            w_ih_t = jnp.pad(w_ih_t, ((0, Hp - H), (0, 0)))
        w_ih_t = _reorder_pad_gates_last(w_ih_t, H, Hp)     # (IN or Hp, 4Hp)

        w_hh_t = jnp.pad(w_hh.T, ((0, Hp - H), (0, 0)))     # (Hp, 4H)
        w_hh_t = _reorder_pad_gates_last(w_hh_t, H, Hp)     # (Hp, 4Hp)

        bias = _reorder_pad_gates_last((b_ih + b_hh)[None, :], H, Hp)  # (1, 4Hp)
        raw.append({"w_ih_t": w_ih_t, "w_hh_t": w_hh_t, "bias": bias})

    l0, l1 = raw
    params["lstm"] = {
        "wih0": l0["w_ih_t"].astype(jnp.bfloat16),                    # (E,  4Hp)
        "whh0": l0["w_hh_t"].astype(jnp.bfloat16),                    # (Hp, 4Hp)
        "b0": l0["bias"],                                             # (1,  4Hp)
        "wcat1": jnp.concatenate([l1["w_ih_t"], l1["w_hh_t"]],
                                 axis=0).astype(jnp.bfloat16),        # (2Hp,4Hp)
        "b1": l1["bias"],                                             # (1,  4Hp)
    }

    kf = 1.0 / jnp.sqrt(hidden_dim)
    w_fc = jax.random.uniform(keys[1], (OUTPUT_DIM, H), jnp.float32, -kf, kf)
    b_fc = jax.random.uniform(keys[2], (OUTPUT_DIM,), jnp.float32, -kf, kf)
    params["fc_w"] = jnp.pad(w_fc, ((0, 0), (0, Hp - H)))   # (1, Hp), zero lanes
    params["fc_b"] = b_fc.reshape(1, OUTPUT_DIM)            # (1, 1)
    return params


# ---------------------------------------------------------------------------
# Forward pass wrapper
# ---------------------------------------------------------------------------
@jax.jit
def lstm_forward(params, x_tokens, h0, c0):
    """Equivalent to LSTM.forward(x, hidden) in eval mode.

    x_tokens: (B, T) int32 token ids (batch_first, like PyTorch).
    h0, c0  : (no_layers, B, HIDDEN_DIM).
    Returns (sig_out (B,), (h_n, c_n)).
    """
    B, T = x_tokens.shape
    B_pad = max(8, -(-B // 8) * 8)            # pad batch to a sublane multiple
    Hp = HIDDEN_PAD
    E = EMBEDDING_DIM

    # Embedding lookup (gather) kept in plain JAX glue.
    embeds = jnp.take(params["embedding"], x_tokens, axis=0)       # (B, T, E)
    x_seq = jnp.transpose(embeds, (1, 0, 2))                       # (T, B, E)
    x_seq = jnp.pad(x_seq, ((0, 0), (0, B_pad - B), (0, 0)))       # (T, B_pad, E)
    x_flat = x_seq.reshape(T * B_pad, E).astype(jnp.bfloat16)      # (T*B_pad, E)

    # Padded LANES stay zero through the cell; padded batch ROWS are sliced off.
    h0p = jnp.pad(h0, ((0, 0), (0, B_pad - B), (0, Hp - HIDDEN_DIM)))
    c0p = jnp.pad(c0, ((0, 0), (0, B_pad - B), (0, Hp - HIDDEN_DIM)))

    L = params["lstm"]
    kernel = functools.partial(fused_lstm_kernel, T=T, B=B_pad, H=Hp)

    vmem = pl.BlockSpec(memory_space=pltpu.MemorySpace.VMEM)
    smem = pl.BlockSpec(memory_space=pltpu.MemorySpace.SMEM)

    # Advisory cost hint for the XLA scheduler.
    matmul_flops = (2 * T * B_pad * E * 4 * Hp            # hoisted input proj
                    + 2 * T * B_pad * Hp * 4 * Hp          # layer-0 recurrence
                    + 2 * T * B_pad * 2 * Hp * 4 * Hp)     # layer-1 folded K=256
    transcendentals = 2 * T * B_pad * 5 * Hp + B_pad
    operand_bytes = sum(int(a.size) * a.dtype.itemsize for a in
                        (x_flat, L["wih0"], L["whh0"], L["b0"], L["wcat1"],
                         L["b1"], params["fc_w"], params["fc_b"], h0p, c0p))
    out_bytes = 4 * (B_pad * OUTPUT_DIM + 2 * NO_LAYERS * B_pad * Hp)

    sig, hT, cT = pl.pallas_call(
        kernel,
        out_shape=(
            jax.ShapeDtypeStruct((B_pad, OUTPUT_DIM), jnp.float32),     # sigmoid
            jax.ShapeDtypeStruct((NO_LAYERS, B_pad, Hp), jnp.float32),  # h_n
            jax.ShapeDtypeStruct((NO_LAYERS, B_pad, Hp), jnp.float32),  # c_n
        ),
        in_specs=[vmem, vmem, vmem, vmem, vmem, vmem, vmem, smem, vmem, vmem],
        out_specs=(vmem, vmem, vmem),
        cost_estimate=pl.CostEstimate(
            flops=int(matmul_flops),
            transcendentals=int(transcendentals),
            bytes_accessed=int(operand_bytes + out_bytes)),
    )(x_flat,
      L["wih0"], L["whh0"], L["b0"],
      L["wcat1"], L["b1"],
      params["fc_w"], params["fc_b"], h0p, c0p)

    sig_out = sig[:B, 0]                                            # (B,)
    h_n = hT[:, :B, :HIDDEN_DIM]                                    # (NL, B, H)
    c_n = cT[:, :B, :HIDDEN_DIM]
    return sig_out, (h_n, c_n)


if __name__ == "__main__":
    vocab_size = 1000
    batch = 2
    seq_len = 8

    key = jax.random.PRNGKey(0)
    k_params, k_tokens = jax.random.split(key)

    params = init_params(k_params, vocab_size, EMBEDDING_DIM, HIDDEN_DIM, NO_LAYERS)
    x_tokens = jax.random.randint(k_tokens, (batch, seq_len), 0, vocab_size, jnp.int32)

    # init_hidden(batch)
    h0 = jnp.zeros((NO_LAYERS, batch, HIDDEN_DIM), jnp.float32)
    c0 = jnp.zeros((NO_LAYERS, batch, HIDDEN_DIM), jnp.float32)

    sig_out, (h_n, c_n) = lstm_forward(params, x_tokens, h0, c0)
    jax.block_until_ready((sig_out, h_n, c_n))

    assert sig_out.shape == (batch,)
    assert h_n.shape == (NO_LAYERS, batch, HIDDEN_DIM)
    assert c_n.shape == (NO_LAYERS, batch, HIDDEN_DIM)
    assert bool(jnp.all(jnp.isfinite(sig_out)))
    assert bool(jnp.all(jnp.isfinite(h_n))) and bool(jnp.all(jnp.isfinite(c_n)))
    print("KERNEL_OK")
</pallas_src>

<mosaic_0001>
module attributes {stable_mosaic.version = 11 : i64} {
  func.func @fused_lstm_kernel(%arg0: memref<64x64xbf16, #tpu.memory_space<vmem>>, %arg1: memref<64x512xbf16, #tpu.memory_space<vmem>>, %arg2: memref<128x512xbf16, #tpu.memory_space<vmem>>, %arg3: memref<1x512xf32, #tpu.memory_space<vmem>>, %arg4: memref<256x512xbf16, #tpu.memory_space<vmem>>, %arg5: memref<1x512xf32, #tpu.memory_space<vmem>>, %arg6: memref<1x128xf32, #tpu.memory_space<vmem>>, %arg7: memref<1x1xf32, #tpu.memory_space<smem>>, %arg8: memref<2x8x128xf32, #tpu.memory_space<vmem>>, %arg9: memref<2x8x128xf32, #tpu.memory_space<vmem>>, %arg10: memref<8x1xf32, #tpu.memory_space<vmem>>, %arg11: memref<2x8x128xf32, #tpu.memory_space<vmem>>, %arg12: memref<2x8x128xf32, #tpu.memory_space<vmem>>) attributes {dimension_semantics = [], scalar_prefetch = 0 : i64, scratch_operands = 0 : i64, tpu.core_type = #tpu.core_type<tc>} {
    %c0 = arith.constant 0 : index
    %c0_0 = arith.constant 0 : index
    %0 = vector.load %arg0[%c0, %c0_0] : memref<64x64xbf16, #tpu.memory_space<vmem>>, vector<64x64xbf16>
    %c0_1 = arith.constant 0 : index
    %c0_2 = arith.constant 0 : index
    %1 = vector.load %arg1[%c0_1, %c0_2] : memref<64x512xbf16, #tpu.memory_space<vmem>>, vector<64x512xbf16>
    %cst = arith.constant dense<0.000000e+00> : vector<64x512xf32>
    %2 = tpu.matmul %0, %1, %cst {dimension_numbers = #tpu.dot_dimension_numbers<[1], [0], [0], [1], [0, 0, 1, 1], [], []>} : vector<64x64xbf16>, vector<64x512xbf16>, vector<64x512xf32> -> vector<64x512xf32>
    %c0_3 = arith.constant 0 : index
    %c0_4 = arith.constant 0 : index
    %3 = vector.load %arg3[%c0_3, %c0_4] : memref<1x512xf32, #tpu.memory_space<vmem>>, vector<1x512xf32>
    %4 = vector.broadcast %3 : vector<1x512xf32> to vector<64x512xf32>
    %5 = arith.addf %2, %4 : vector<64x512xf32>
    %c0_5 = arith.constant 0 : index
    %c0_6 = arith.constant 0 : index
    %6 = vector.load %arg2[%c0_5, %c0_6] : memref<128x512xbf16, #tpu.memory_space<vmem>>, vector<128x512xbf16>
    %c0_7 = arith.constant 0 : index
    %c0_8 = arith.constant 0 : index
    %7 = vector.load %arg4[%c0_7, %c0_8] : memref<256x512xbf16, #tpu.memory_space<vmem>>, vector<256x512xbf16>
    %c0_9 = arith.constant 0 : index
    %c0_10 = arith.constant 0 : index
    %8 = vector.load %arg5[%c0_9, %c0_10] : memref<1x512xf32, #tpu.memory_space<vmem>>, vector<1x512xf32>
    %c0_11 = arith.constant 0 : index
    %c0_12 = arith.constant 0 : index
    %c0_13 = arith.constant 0 : index
    %9 = vector.load %arg8[%c0_11, %c0_12, %c0_13] : memref<2x8x128xf32, #tpu.memory_space<vmem>>, vector<1x8x128xf32>
    %10 = vector.shape_cast %9 : vector<1x8x128xf32> to vector<8x128xf32>
    %c0_14 = arith.constant 0 : index
    %c0_15 = arith.constant 0 : index
    %c0_16 = arith.constant 0 : index
    %11 = vector.load %arg9[%c0_14, %c0_15, %c0_16] : memref<2x8x128xf32, #tpu.memory_space<vmem>>, vector<1x8x128xf32>
    %12 = vector.shape_cast %11 : vector<1x8x128xf32> to vector<8x128xf32>
    %c1 = arith.constant 1 : index
    %c0_17 = arith.constant 0 : index
    %c0_18 = arith.constant 0 : index
    %13 = vector.load %arg8[%c1, %c0_17, %c0_18] : memref<2x8x128xf32, #tpu.memory_space<vmem>>, vector<1x8x128xf32>
    %14 = vector.shape_cast %13 : vector<1x8x128xf32> to vector<8x128xf32>
    %c1_19 = arith.constant 1 : index
    %c0_20 = arith.constant 0 : index
    %c0_21 = arith.constant 0 : index
    %15 = vector.load %arg9[%c1_19, %c0_20, %c0_21] : memref<2x8x128xf32, #tpu.memory_space<vmem>>, vector<1x8x128xf32>
    %16 = vector.shape_cast %15 : vector<1x8x128xf32> to vector<8x128xf32>
    %17 = arith.truncf %10 : vector<8x128xf32> to vector<8x128xbf16>
    %cst_22 = arith.constant dense<0.000000e+00> : vector<8x512xf32>
    %18 = tpu.matmul %17, %6, %cst_22 {dimension_numbers = #tpu.dot_dimension_numbers<[1], [0], [0], [1], [0, 0, 1, 1], [], []>} : vector<8x128xbf16>, vector<128x512xbf16>, vector<8x512xf32> -> vector<8x512xf32>
    %19 = vector.extract_strided_slice %5 {offsets = [0, 0], sizes = [8, 512], strides = [1, 1]} : vector<64x512xf32> to vector<8x512xf32>
    %20 = arith.addf %18, %19 : vector<8x512xf32>
    %21 = vector.extract_strided_slice %20 {offsets = [0, 0], sizes = [8, 384], strides = [1, 1]} : vector<8x512xf32> to vector<8x384xf32>
    %22 = arith.negf %21 : vector<8x384xf32>
    %23 = math.exp %22 : vector<8x384xf32>
    %cst_23 = arith.constant 1.000000e+00 : f32
    %24 = vector.broadcast %cst_23 : f32 to vector<8x384xf32>
    %25 = arith.addf %24, %23 : vector<8x384xf32>
    %26 = arith.divf %24, %25 : vector<8x384xf32>
    %27 = vector.extract_strided_slice %26 {offsets = [0, 0], sizes = [8, 128], strides = [1, 1]} : vector<8x384xf32> to vector<8x128xf32>
    %28 = vector.extract_strided_slice %26 {offsets = [0, 128], sizes = [8, 128], strides = [1, 1]} : vector<8x384xf32> to vector<8x128xf32>
    %29 = vector.extract_strided_slice %26 {offsets = [0, 256], sizes = [8, 128], strides = [1, 1]} : vector<8x384xf32> to vector<8x128xf32>
    %30 = vector.extract_strided_slice %20 {offsets = [0, 384], sizes = [8, 128], strides = [1, 1]} : vector<8x512xf32> to vector<8x128xf32>
    %31 = math.tanh %30 : vector<8x128xf32>
    %32 = arith.mulf %28, %12 : vector<8x128xf32>
    %33 = arith.mulf %27, %31 : vector<8x128xf32>
    %34 = arith.addf %32, %33 : vector<8x128xf32>
    %35 = math.tanh %34 : vector<8x128xf32>
    %36 = arith.mulf %29, %35 : vector<8x128xf32>
    %37 = arith.truncf %36 : vector<8x128xf32> to vector<8x128xbf16>
    %cst_24 = arith.constant dense<0.000000e+00> : vector<8x512xf32>
    %38 = tpu.matmul %37, %6, %cst_24 {dimension_numbers = #tpu.dot_dimension_numbers<[1], [0], [0], [1], [0, 0, 1, 1], [], []>} : vector<8x128xbf16>, vector<128x512xbf16>, vector<8x512xf32> -> vector<8x512xf32>
    %39 = vector.extract_strided_slice %5 {offsets = [8, 0], sizes = [8, 512], strides = [1, 1]} : vector<64x512xf32> to vector<8x512xf32>
    %40 = arith.addf %38, %39 : vector<8x512xf32>
    %41 = vector.extract_strided_slice %40 {offsets = [0, 0], sizes = [8, 384], strides = [1, 1]} : vector<8x512xf32> to vector<8x384xf32>
    %42 = arith.negf %41 : vector<8x384xf32>
    %43 = math.exp %42 : vector<8x384xf32>
    %cst_25 = arith.constant 1.000000e+00 : f32
    %44 = vector.broadcast %cst_25 : f32 to vector<8x384xf32>
    %45 = arith.addf %44, %43 : vector<8x384xf32>
    %46 = arith.divf %44, %45 : vector<8x384xf32>
    %47 = vector.extract_strided_slice %46 {offsets = [0, 0], sizes = [8, 128], strides = [1, 1]} : vector<8x384xf32> to vector<8x128xf32>
    %48 = vector.extract_strided_slice %46 {offsets = [0, 128], sizes = [8, 128], strides = [1, 1]} : vector<8x384xf32> to vector<8x128xf32>
    %49 = vector.extract_strided_slice %46 {offsets = [0, 256], sizes = [8, 128], strides = [1, 1]} : vector<8x384xf32> to vector<8x128xf32>
    %50 = vector.extract_strided_slice %40 {offsets = [0, 384], sizes = [8, 128], strides = [1, 1]} : vector<8x512xf32> to vector<8x128xf32>
    %51 = math.tanh %50 : vector<8x128xf32>
    %52 = arith.mulf %48, %34 : vector<8x128xf32>
    %53 = arith.mulf %47, %51 : vector<8x128xf32>
    %54 = arith.addf %52, %53 : vector<8x128xf32>
    %55 = math.tanh %54 : vector<8x128xf32>
    %56 = arith.mulf %49, %55 : vector<8x128xf32>
    %57 = arith.truncf %36 : vector<8x128xf32> to vector<8x128xbf16>
    %58 = arith.truncf %14 : vector<8x128xf32> to vector<8x128xbf16>
    %59 = tpu.concatenate %57, %58 in 1 : vector<8x128xbf16>, vector<8x128xbf16> -> vector<8x256xbf16>
    %cst_26 = arith.constant dense<0.000000e+00> : vector<8x512xf32>
    %60 = tpu.matmul %59, %7, %cst_26 {dimension_numbers = #tpu.dot_dimension_numbers<[1], [0], [0], [1], [0, 0, 1, 1], [], []>} : vector<8x256xbf16>, vector<256x512xbf16>, vector<8x512xf32> -> vector<8x512xf32>
    %61 = vector.broadcast %8 : vector<1x512xf32> to vector<8x512xf32>
    %62 = arith.addf %60, %61 : vector<8x512xf32>
    %63 = vector.extract_strided_slice %62 {offsets = [0, 0], sizes = [8, 384], strides = [1, 1]} : vector<8x512xf32> to vector<8x384xf32>
    %64 = arith.negf %63 : vector<8x384xf32>
    %65 = math.exp %64 : vector<8x384xf32>
    %cst_27 = arith.constant 1.000000e+00 : f32
    %66 = vector.broadcast %cst_27 : f32 to vector<8x384xf32>
    %67 = arith.addf %66, %65 : vector<8x384xf32>
    %68 = arith.divf %66, %67 : vector<8x384xf32>
    %69 = vector.extract_strided_slice %68 {offsets = [0, 0], sizes = [8, 128], strides = [1, 1]} : vector<8x384xf32> to vector<8x128xf32>
    %70 = vector.extract_strided_slice %68 {offsets = [0, 128], sizes = [8, 128], strides = [1, 1]} : vector<8x384xf32> to vector<8x128xf32>
    %71 = vector.extract_strided_slice %68 {offsets = [0, 256], sizes = [8, 128], strides = [1, 1]} : vector<8x384xf32> to vector<8x128xf32>
    %72 = vector.extract_strided_slice %62 {offsets = [0, 384], sizes = [8, 128], strides = [1, 1]} : vector<8x512xf32> to vector<8x128xf32>
    %73 = math.tanh %72 : vector<8x128xf32>
    %74 = arith.mulf %70, %16 : vector<8x128xf32>
    %75 = arith.mulf %69, %73 : vector<8x128xf32>
    %76 = arith.addf %74, %75 : vector<8x128xf32>
    %77 = math.tanh %76 : vector<8x128xf32>
    %78 = arith.mulf %71, %77 : vector<8x128xf32>
    %79 = arith.truncf %56 : vector<8x128xf32> to vector<8x128xbf16>
    %cst_28 = arith.constant dense<0.000000e+00> : vector<8x512xf32>
    %80 = tpu.matmul %79, %6, %cst_28 {dimension_numbers = #tpu.dot_dimension_numbers<[1], [0], [0], [1], [0, 0, 1, 1], [], []>} : vector<8x128xbf16>, vector<128x512xbf16>, vector<8x512xf32> -> vector<8x512xf32>
    %81 = vector.extract_strided_slice %5 {offsets = [16, 0], sizes = [8, 512], strides = [1, 1]} : vector<64x512xf32> to vector<8x512xf32>
    %82 = arith.addf %80, %81 : vector<8x512xf32>
    %83 = vector.extract_strided_slice %82 {offsets = [0, 0], sizes = [8, 384], strides = [1, 1]} : vector<8x512xf32> to vector<8x384xf32>
    %84 = arith.negf %83 : vector<8x384xf32>
    %85 = math.exp %84 : vector<8x384xf32>
    %cst_29 = arith.constant 1.000000e+00 : f32
    %86 = vector.broadcast %cst_29 : f32 to vector<8x384xf32>
    %87 = arith.addf %86, %85 : vector<8x384xf32>
    %88 = arith.divf %86, %87 : vector<8x384xf32>
    %89 = vector.extract_strided_slice %88 {offsets = [0, 0], sizes = [8, 128], strides = [1, 1]} : vector<8x384xf32> to vector<8x128xf32>
    %90 = vector.extract_strided_slice %88 {offsets = [0, 128], sizes = [8, 128], strides = [1, 1]} : vector<8x384xf32> to vector<8x128xf32>
    %91 = vector.extract_strided_slice %88 {offsets = [0, 256], sizes = [8, 128], strides = [1, 1]} : vector<8x384xf32> to vector<8x128xf32>
    %92 = vector.extract_strided_slice %82 {offsets = [0, 384], sizes = [8, 128], strides = [1, 1]} : vector<8x512xf32> to vector<8x128xf32>
    %93 = math.tanh %92 : vector<8x128xf32>
    %94 = arith.mulf %90, %54 : vector<8x128xf32>
    %95 = arith.mulf %89, %93 : vector<8x128xf32>
    %96 = arith.addf %94, %95 : vector<8x128xf32>
    %97 = math.tanh %96 : vector<8x128xf32>
    %98 = arith.mulf %91, %97 : vector<8x128xf32>
    %99 = arith.truncf %56 : vector<8x128xf32> to vector<8x128xbf16>
    %100 = arith.truncf %78 : vector<8x128xf32> to vector<8x128xbf16>
    %101 = tpu.concatenate %99, %100 in 1 : vector<8x128xbf16>, vector<8x128xbf16> -> vector<8x256xbf16>
    %cst_30 = arith.constant dense<0.000000e+00> : vector<8x512xf32>
    %102 = tpu.matmul %101, %7, %cst_30 {dimension_numbers = #tpu.dot_dimension_numbers<[1], [0], [0], [1], [0, 0, 1, 1], [], []>} : vector<8x256xbf16>, vector<256x512xbf16>, vector<8x512xf32> -> vector<8x512xf32>
    %103 = vector.broadcast %8 : vector<1x512xf32> to vector<8x512xf32>
    %104 = arith.addf %102, %103 : vector<8x512xf32>
    %105 = vector.extract_strided_slice %104 {offsets = [0, 0], sizes = [8, 384], strides = [1, 1]} : vector<8x512xf32> to vector<8x384xf32>
    %106 = arith.negf %105 : vector<8x384xf32>
    %107 = math.exp %106 : vector<8x384xf32>
    %cst_31 = arith.constant 1.000000e+00 : f32
    %108 = vector.broadcast %cst_31 : f32 to vector<8x384xf32>
    %109 = arith.addf %108, %107 : vector<8x384xf32>
    %110 = arith.divf %108, %109 : vector<8x384xf32>
    %111 = vector.extract_strided_slice %110 {offsets = [0, 0], sizes = [8, 128], strides = [1, 1]} : vector<8x384xf32> to vector<8x128xf32>
    %112 = vector.extract_strided_slice %110 {offsets = [0, 128], sizes = [8, 128], strides = [1, 1]} : vector<8x384xf32> to vector<8x128xf32>
    %113 = vector.extract_strided_slice %110 {offsets = [0, 256], sizes = [8, 128], strides = [1, 1]} : vector<8x384xf32> to vector<8x128xf32>
    %114 = vector.extract_strided_slice %104 {offsets = [0, 384], sizes = [8, 128], strides = [1, 1]} : vector<8x512xf32> to vector<8x128xf32>
    %115 = math.tanh %114 : vector<8x128xf32>
    %116 = arith.mulf %112, %76 : vector<8x128xf32>
    %117 = arith.mulf %111, %115 : vector<8x128xf32>
    %118 = arith.addf %116, %117 : vector<8x128xf32>
    %119 = math.tanh %118 : vector<8x128xf32>
    %120 = arith.mulf %113, %119 : vector<8x128xf32>
    %121 = arith.truncf %98 : vector<8x128xf32> to vector<8x128xbf16>
    %cst_32 = arith.constant dense<0.000000e+00> : vector<8x512xf32>
    %122 = tpu.matmul %121, %6, %cst_32 {dimension_numbers = #tpu.dot_dimension_numbers<[1], [0], [0], [1], [0, 0, 1, 1], [], []>} : vector<8x128xbf16>, vector<128x512xbf16>, vector<8x512xf32> -> vector<8x512xf32>
    %123 = vector.extract_strided_slice %5 {offsets = [24, 0], sizes = [8, 512], strides = [1, 1]} : vector<64x512xf32> to vector<8x512xf32>
    %124 = arith.addf %122, %123 : vector<8x512xf32>
    %125 = vector.extract_strided_slice %124 {offsets = [0, 0], sizes = [8, 384], strides = [1, 1]} : vector<8x512xf32> to vector<8x384xf32>
    %126 = arith.negf %125 : vector<8x384xf32>
    %127 = math.exp %126 : vector<8x384xf32>
    %cst_33 = arith.constant 1.000000e+00 : f32
    %128 = vector.broadcast %cst_33 : f32 to vector<8x384xf32>
    %129 = arith.addf %128, %127 : vector<8x384xf32>
    %130 = arith.divf %128, %129 : vector<8x384xf32>
    %131 = vector.extract_strided_slice %130 {offsets = [0, 0], sizes = [8, 128], strides = [1, 1]} : vector<8x384xf32> to vector<8x128xf32>
    %132 = vector.extract_strided_slice %130 {offsets = [0, 128], sizes = [8, 128], strides = [1, 1]} : vector<8x384xf32> to vector<8x128xf32>
    %133 = vector.extract_strided_slice %130 {offsets = [0, 256], sizes = [8, 128], strides = [1, 1]} : vector<8x384xf32> to vector<8x128xf32>
    %134 = vector.extract_strided_slice %124 {offsets = [0, 384], sizes = [8, 128], strides = [1, 1]} : vector<8x512xf32> to vector<8x128xf32>
    %135 = math.tanh %134 : vector<8x128xf32>
    %136 = arith.mulf %132, %96 : vector<8x128xf32>
    %137 = arith.mulf %131, %135 : vector<8x128xf32>
    %138 = arith.addf %136, %137 : vector<8x128xf32>
    %139 = math.tanh %138 : vector<8x128xf32>
    %140 = arith.mulf %133, %139 : vector<8x128xf32>
    %141 = arith.truncf %98 : vector<8x128xf32> to vector<8x128xbf16>
    %142 = arith.truncf %120 : vector<8x128xf32> to vector<8x128xbf16>
    %143 = tpu.concatenate %141, %142 in 1 : vector<8x128xbf16>, vector<8x128xbf16> -> vector<8x256xbf16>
    %cst_34 = arith.constant dense<0.000000e+00> : vector<8x512xf32>
    %144 = tpu.matmul %143, %7, %cst_34 {dimension_numbers = #tpu.dot_dimension_numbers<[1], [0], [0], [1], [0, 0, 1, 1], [], []>} : vector<8x256xbf16>, vector<256x512xbf16>, vector<8x512xf32> -> vector<8x512xf32>
    %145 = vector.broadcast %8 : vector<1x512xf32> to vector<8x512xf32>
    %146 = arith.addf %144, %145 : vector<8x512xf32>
    %147 = vector.extract_strided_slice %146 {offsets = [0, 0], sizes = [8, 384], strides = [1, 1]} : vector<8x512xf32> to vector<8x384xf32>
    %148 = arith.negf %147 : vector<8x384xf32>
    %149 = math.exp %148 : vector<8x384xf32>
    %cst_35 = arith.constant 1.000000e+00 : f32
    %150 = vector.broadcast %cst_35 : f32 to vector<8x384xf32>
    %151 = arith.addf %150, %149 : vector<8x384xf32>
    %152 = arith.divf %150, %151 : vector<8x384xf32>
    %153 = vector.extract_strided_slice %152 {offsets = [0, 0], sizes = [8, 128], strides = [1, 1]} : vector<8x384xf32> to vector<8x128xf32>
    %154 = vector.extract_strided_slice %152 {offsets = [0, 128], sizes = [8, 128], strides = [1, 1]} : vector<8x384xf32> to vector<8x128xf32>
    %155 = vector.extract_strided_slice %152 {offsets = [0, 256], sizes = [8, 128], strides = [1, 1]} : vector<8x384xf32> to vector<8x128xf32>
    %156 = vector.extract_strided_slice %146 {offsets = [0, 384], sizes = [8, 128], strides = [1, 1]} : vector<8x512xf32> to vector<8x128xf32>
    %157 = math.tanh %156 : vector<8x128xf32>
    %158 = arith.mulf %154, %118 : vector<8x128xf32>
    %159 = arith.mulf %153, %157 : vector<8x128xf32>
    %160 = arith.addf %158, %159 : vector<8x128xf32>
    %161 = math.tanh %160 : vector<8x128xf32>
    %162 = arith.mulf %155, %161 : vector<8x128xf32>
    %163 = arith.truncf %140 : vector<8x128xf32> to vector<8x128xbf16>
    %cst_36 = arith.constant dense<0.000000e+00> : vector<8x512xf32>
    %164 = tpu.matmul %163, %6, %cst_36 {dimension_numbers = #tpu.dot_dimension_numbers<[1], [0], [0], [1], [0, 0, 1, 1], [], []>} : vector<8x128xbf16>, vector<128x512xbf16>, vector<8x512xf32> -> vector<8x512xf32>
    %165 = vector.extract_strided_slice %5 {offsets = [32, 0], sizes = [8, 512], strides = [1, 1]} : vector<64x512xf32> to vector<8x512xf32>
    %166 = arith.addf %164, %165 : vector<8x512xf32>
    %167 = vector.extract_strided_slice %166 {offsets = [0, 0], sizes = [8, 384], strides = [1, 1]} : vector<8x512xf32> to vector<8x384xf32>
    %168 = arith.negf %167 : vector<8x384xf32>
    %169 = math.exp %168 : vector<8x384xf32>
    %cst_37 = arith.constant 1.000000e+00 : f32
    %170 = vector.broadcast %cst_37 : f32 to vector<8x384xf32>
    %171 = arith.addf %170, %169 : vector<8x384xf32>
    %172 = arith.divf %170, %171 : vector<8x384xf32>
    %173 = vector.extract_strided_slice %172 {offsets = [0, 0], sizes = [8, 128], strides = [1, 1]} : vector<8x384xf32> to vector<8x128xf32>
    %174 = vector.extract_strided_slice %172 {offsets = [0, 128], sizes = [8, 128], strides = [1, 1]} : vector<8x384xf32> to vector<8x128xf32>
    %175 = vector.extract_strided_slice %172 {offsets = [0, 256], sizes = [8, 128], strides = [1, 1]} : vector<8x384xf32> to vector<8x128xf32>
    %176 = vector.extract_strided_slice %166 {offsets = [0, 384], sizes = [8, 128], strides = [1, 1]} : vector<8x512xf32> to vector<8x128xf32>
    %177 = math.tanh %176 : vector<8x128xf32>
    %178 = arith.mulf %174, %138 : vector<8x128xf32>
    %179 = arith.mulf %173, %177 : vector<8x128xf32>
    %180 = arith.addf %178, %179 : vector<8x128xf32>
    %181 = math.tanh %180 : vector<8x128xf32>
    %182 = arith.mulf %175, %181 : vector<8x128xf32>
    %183 = arith.truncf %140 : vector<8x128xf32> to vector<8x128xbf16>
    %184 = arith.truncf %162 : vector<8x128xf32> to vector<8x128xbf16>
    %185 = tpu.concatenate %183, %184 in 1 : vector<8x128xbf16>, vector<8x128xbf16> -> vector<8x256xbf16>
    %cst_38 = arith.constant dense<0.000000e+00> : vector<8x512xf32>
    %186 = tpu.matmul %185, %7, %cst_38 {dimension_numbers = #tpu.dot_dimension_numbers<[1], [0], [0], [1], [0, 0, 1, 1], [], []>} : vector<8x256xbf16>, vector<256x512xbf16>, vector<8x512xf32> -> vector<8x512xf32>
    %187 = vector.broadcast %8 : vector<1x512xf32> to vector<8x512xf32>
    %188 = arith.addf %186, %187 : vector<8x512xf32>
    %189 = vector.extract_strided_slice %188 {offsets = [0, 0], sizes = [8, 384], strides = [1, 1]} : vector<8x512xf32> to vector<8x384xf32>
    %190 = arith.negf %189 : vector<8x384xf32>
    %191 = math.exp %190 : vector<8x384xf32>
    %cst_39 = arith.constant 1.000000e+00 : f32
    %192 = vector.broadcast %cst_39 : f32 to vector<8x384xf32>
    %193 = arith.addf %192, %191 : vector<8x384xf32>
    %194 = arith.divf %192, %193 : vector<8x384xf32>
    %195 = vector.extract_strided_slice %194 {offsets = [0, 0], sizes = [8, 128], strides = [1, 1]} : vector<8x384xf32> to vector<8x128xf32>
    %196 = vector.extract_strided_slice %194 {offsets = [0, 128], sizes = [8, 128], strides = [1, 1]} : vector<8x384xf32> to vector<8x128xf32>
    %197 = vector.extract_strided_slice %194 {offsets = [0, 256], sizes = [8, 128], strides = [1, 1]} : vector<8x384xf32> to vector<8x128xf32>
    %198 = vector.extract_strided_slice %188 {offsets = [0, 384], sizes = [8, 128], strides = [1, 1]} : vector<8x512xf32> to vector<8x128xf32>
    %199 = math.tanh %198 : vector<8x128xf32>
    %200 = arith.mulf %196, %160 : vector<8x128xf32>
    %201 = arith.mulf %195, %199 : vector<8x128xf32>
    %202 = arith.addf %200, %201 : vector<8x128xf32>
    %203 = math.tanh %202 : vector<8x128xf32>
    %204 = arith.mulf %197, %203 : vector<8x128xf32>
    %205 = arith.truncf %182 : vector<8x128xf32> to vector<8x128xbf16>
    %cst_40 = arith.constant dense<0.000000e+00> : vector<8x512xf32>
    %206 = tpu.matmul %205, %6, %cst_40 {dimension_numbers = #tpu.dot_dimension_numbers<[1], [0], [0], [1], [0, 0, 1, 1], [], []>} : vector<8x128xbf16>, vector<128x512xbf16>, vector<8x512xf32> -> vector<8x512xf32>
    %207 = vector.extract_strided_slice %5 {offsets = [40, 0], sizes = [8, 512], strides = [1, 1]} : vector<64x512xf32> to vector<8x512xf32>
    %208 = arith.addf %206, %207 : vector<8x512xf32>
    %209 = vector.extract_strided_slice %208 {offsets = [0, 0], sizes = [8, 384], strides = [1, 1]} : vector<8x512xf32> to vector<8x384xf32>
    %210 = arith.negf %209 : vector<8x384xf32>
    %211 = math.exp %210 : vector<8x384xf32>
    %cst_41 = arith.constant 1.000000e+00 : f32
    %212 = vector.broadcast %cst_41 : f32 to vector<8x384xf32>
    %213 = arith.addf %212, %211 : vector<8x384xf32>
    %214 = arith.divf %212, %213 : vector<8x384xf32>
    %215 = vector.extract_strided_slice %214 {offsets = [0, 0], sizes = [8, 128], strides = [1, 1]} : vector<8x384xf32> to vector<8x128xf32>
    %216 = vector.extract_strided_slice %214 {offsets = [0, 128], sizes = [8, 128], strides = [1, 1]} : vector<8x384xf32> to vector<8x128xf32>
    %217 = vector.extract_strided_slice %214 {offsets = [0, 256], sizes = [8, 128], strides = [1, 1]} : vector<8x384xf32> to vector<8x128xf32>
    %218 = vector.extract_strided_slice %208 {offsets = [0, 384], sizes = [8, 128], strides = [1, 1]} : vector<8x512xf32> to vector<8x128xf32>
    %219 = math.tanh %218 : vector<8x128xf32>
    %220 = arith.mulf %216, %180 : vector<8x128xf32>
    %221 = arith.mulf %215, %219 : vector<8x128xf32>
    %222 = arith.addf %220, %221 : vector<8x128xf32>
    %223 = math.tanh %222 : vector<8x128xf32>
    %224 = arith.mulf %217, %223 : vector<8x128xf32>
    %225 = arith.truncf %182 : vector<8x128xf32> to vector<8x128xbf16>
    %226 = arith.truncf %204 : vector<8x128xf32> to vector<8x128xbf16>
    %227 = tpu.concatenate %225, %226 in 1 : vector<8x128xbf16>, vector<8x128xbf16> -> vector<8x256xbf16>
    %cst_42 = arith.constant dense<0.000000e+00> : vector<8x512xf32>
    %228 = tpu.matmul %227, %7, %cst_42 {dimension_numbers = #tpu.dot_dimension_numbers<[1], [0], [0], [1], [0, 0, 1, 1], [], []>} : vector<8x256xbf16>, vector<256x512xbf16>, vector<8x512xf32> -> vector<8x512xf32>
    %229 = vector.broadcast %8 : vector<1x512xf32> to vector<8x512xf32>
    %230 = arith.addf %228, %229 : vector<8x512xf32>
    %231 = vector.extract_strided_slice %230 {offsets = [0, 0], sizes = [8, 384], strides = [1, 1]} : vector<8x512xf32> to vector<8x384xf32>
    %232 = arith.negf %231 : vector<8x384xf32>
    %233 = math.exp %232 : vector<8x384xf32>
    %cst_43 = arith.constant 1.000000e+00 : f32
    %234 = vector.broadcast %cst_43 : f32 to vector<8x384xf32>
    %235 = arith.addf %234, %233 : vector<8x384xf32>
    %236 = arith.divf %234, %235 : vector<8x384xf32>
    %237 = vector.extract_strided_slice %236 {offsets = [0, 0], sizes = [8, 128], strides = [1, 1]} : vector<8x384xf32> to vector<8x128xf32>
    %238 = vector.extract_strided_slice %236 {offsets = [0, 128], sizes = [8, 128], strides = [1, 1]} : vector<8x384xf32> to vector<8x128xf32>
    %239 = vector.extract_strided_slice %236 {offsets = [0, 256], sizes = [8, 128], strides = [1, 1]} : vector<8x384xf32> to vector<8x128xf32>
    %240 = vector.extract_strided_slice %230 {offsets = [0, 384], sizes = [8, 128], strides = [1, 1]} : vector<8x512xf32> to vector<8x128xf32>
    %241 = math.tanh %240 : vector<8x128xf32>
    %242 = arith.mulf %238, %202 : vector<8x128xf32>
    %243 = arith.mulf %237, %241 : vector<8x128xf32>
    %244 = arith.addf %242, %243 : vector<8x128xf32>
    %245 = math.tanh %244 : vector<8x128xf32>
    %246 = arith.mulf %239, %245 : vector<8x128xf32>
    %247 = arith.truncf %224 : vector<8x128xf32> to vector<8x128xbf16>
    %cst_44 = arith.constant dense<0.000000e+00> : vector<8x512xf32>
    %248 = tpu.matmul %247, %6, %cst_44 {dimension_numbers = #tpu.dot_dimension_numbers<[1], [0], [0], [1], [0, 0, 1, 1], [], []>} : vector<8x128xbf16>, vector<128x512xbf16>, vector<8x512xf32> -> vector<8x512xf32>
    %249 = vector.extract_strided_slice %5 {offsets = [48, 0], sizes = [8, 512], strides = [1, 1]} : vector<64x512xf32> to vector<8x512xf32>
    %250 = arith.addf %248, %249 : vector<8x512xf32>
    %251 = vector.extract_strided_slice %250 {offsets = [0, 0], sizes = [8, 384], strides = [1, 1]} : vector<8x512xf32> to vector<8x384xf32>
    %252 = arith.negf %251 : vector<8x384xf32>
    %253 = math.exp %252 : vector<8x384xf32>
    %cst_45 = arith.constant 1.000000e+00 : f32
    %254 = vector.broadcast %cst_45 : f32 to vector<8x384xf32>
    %255 = arith.addf %254, %253 : vector<8x384xf32>
    %256 = arith.divf %254, %255 : vector<8x384xf32>
    %257 = vector.extract_strided_slice %256 {offsets = [0, 0], sizes = [8, 128], strides = [1, 1]} : vector<8x384xf32> to vector<8x128xf32>
    %258 = vector.extract_strided_slice %256 {offsets = [0, 128], sizes = [8, 128], strides = [1, 1]} : vector<8x384xf32> to vector<8x128xf32>
    %259 = vector.extract_strided_slice %256 {offsets = [0, 256], sizes = [8, 128], strides = [1, 1]} : vector<8x384xf32> to vector<8x128xf32>
    %260 = vector.extract_strided_slice %250 {offsets = [0, 384], sizes = [8, 128], strides = [1, 1]} : vector<8x512xf32> to vector<8x128xf32>
    %261 = math.tanh %260 : vector<8x128xf32>
    %262 = arith.mulf %258, %222 : vector<8x128xf32>
    %263 = arith.mulf %257, %261 : vector<8x128xf32>
    %264 = arith.addf %262, %263 : vector<8x128xf32>
    %265 = math.tanh %264 : vector<8x128xf32>
    %266 = arith.mulf %259, %265 : vector<8x128xf32>
    %267 = arith.truncf %224 : vector<8x128xf32> to vector<8x128xbf16>
    %268 = arith.truncf %246 : vector<8x128xf32> to vector<8x128xbf16>
    %269 = tpu.concatenate %267, %268 in 1 : vector<8x128xbf16>, vector<8x128xbf16> -> vector<8x256xbf16>
    %cst_46 = arith.constant dense<0.000000e+00> : vector<8x512xf32>
    %270 = tpu.matmul %269, %7, %cst_46 {dimension_numbers = #tpu.dot_dimension_numbers<[1], [0], [0], [1], [0, 0, 1, 1], [], []>} : vector<8x256xbf16>, vector<256x512xbf16>, vector<8x512xf32> -> vector<8x512xf32>
    %271 = vector.broadcast %8 : vector<1x512xf32> to vector<8x512xf32>
    %272 = arith.addf %270, %271 : vector<8x512xf32>
    %273 = vector.extract_strided_slice %272 {offsets = [0, 0], sizes = [8, 384], strides = [1, 1]} : vector<8x512xf32> to vector<8x384xf32>
    %274 = arith.negf %273 : vector<8x384xf32>
    %275 = math.exp %274 : vector<8x384xf32>
    %cst_47 = arith.constant 1.000000e+00 : f32
    %276 = vector.broadcast %cst_47 : f32 to vector<8x384xf32>
    %277 = arith.addf %276, %275 : vector<8x384xf32>
    %278 = arith.divf %276, %277 : vector<8x384xf32>
    %279 = vector.extract_strided_slice %278 {offsets = [0, 0], sizes = [8, 128], strides = [1, 1]} : vector<8x384xf32> to vector<8x128xf32>
    %280 = vector.extract_strided_slice %278 {offsets = [0, 128], sizes = [8, 128], strides = [1, 1]} : vector<8x384xf32> to vector<8x128xf32>
    %281 = vector.extract_strided_slice %278 {offsets = [0, 256], sizes = [8, 128], strides = [1, 1]} : vector<8x384xf32> to vector<8x128xf32>
    %282 = vector.extract_strided_slice %272 {offsets = [0, 384], sizes = [8, 128], strides = [1, 1]} : vector<8x512xf32> to vector<8x128xf32>
    %283 = math.tanh %282 : vector<8x128xf32>
    %284 = arith.mulf %280, %244 : vector<8x128xf32>
    %285 = arith.mulf %279, %283 : vector<8x128xf32>
    %286 = arith.addf %284, %285 : vector<8x128xf32>
    %287 = math.tanh %286 : vector<8x128xf32>
    %288 = arith.mulf %281, %287 : vector<8x128xf32>
    %289 = arith.truncf %266 : vector<8x128xf32> to vector<8x128xbf16>
    %cst_48 = arith.constant dense<0.000000e+00> : vector<8x512xf32>
    %290 = tpu.matmul %289, %6, %cst_48 {dimension_numbers = #tpu.dot_dimension_numbers<[1], [0], [0], [1], [0, 0, 1, 1], [], []>} : vector<8x128xbf16>, vector<128x512xbf16>, vector<8x512xf32> -> vector<8x512xf32>
    %291 = vector.extract_strided_slice %5 {offsets = [56, 0], sizes = [8, 512], strides = [1, 1]} : vector<64x512xf32> to vector<8x512xf32>
    %292 = arith.addf %290, %291 : vector<8x512xf32>
    %293 = vector.extract_strided_slice %292 {offsets = [0, 0], sizes = [8, 384], strides = [1, 1]} : vector<8x512xf32> to vector<8x384xf32>
    %294 = arith.negf %293 : vector<8x384xf32>
    %295 = math.exp %294 : vector<8x384xf32>
    %cst_49 = arith.constant 1.000000e+00 : f32
    %296 = vector.broadcast %cst_49 : f32 to vector<8x384xf32>
    %297 = arith.addf %296, %295 : vector<8x384xf32>
    %298 = arith.divf %296, %297 : vector<8x384xf32>
    %299 = vector.extract_strided_slice %298 {offsets = [0, 0], sizes = [8, 128], strides = [1, 1]} : vector<8x384xf32> to vector<8x128xf32>
    %300 = vector.extract_strided_slice %298 {offsets = [0, 128], sizes = [8, 128], strides = [1, 1]} : vector<8x384xf32> to vector<8x128xf32>
    %301 = vector.extract_strided_slice %298 {offsets = [0, 256], sizes = [8, 128], strides = [1, 1]} : vector<8x384xf32> to vector<8x128xf32>
    %302 = vector.extract_strided_slice %292 {offsets = [0, 384], sizes = [8, 128], strides = [1, 1]} : vector<8x512xf32> to vector<8x128xf32>
    %303 = math.tanh %302 : vector<8x128xf32>
    %304 = arith.mulf %300, %264 : vector<8x128xf32>
    %305 = arith.mulf %299, %303 : vector<8x128xf32>
    %306 = arith.addf %304, %305 : vector<8x128xf32>
    %307 = math.tanh %306 : vector<8x128xf32>
    %308 = arith.mulf %301, %307 : vector<8x128xf32>
    %309 = arith.truncf %266 : vector<8x128xf32> to vector<8x128xbf16>
    %310 = arith.truncf %288 : vector<8x128xf32> to vector<8x128xbf16>
    %311 = tpu.concatenate %309, %310 in 1 : vector<8x128xbf16>, vector<8x128xbf16> -> vector<8x256xbf16>
    %cst_50 = arith.constant dense<0.000000e+00> : vector<8x512xf32>
    %312 = tpu.matmul %311, %7, %cst_50 {dimension_numbers = #tpu.dot_dimension_numbers<[1], [0], [0], [1], [0, 0, 1, 1], [], []>} : vector<8x256xbf16>, vector<256x512xbf16>, vector<8x512xf32> -> vector<8x512xf32>
    %313 = vector.broadcast %8 : vector<1x512xf32> to vector<8x512xf32>
    %314 = arith.addf %312, %313 : vector<8x512xf32>
    %315 = vector.extract_strided_slice %314 {offsets = [0, 0], sizes = [8, 384], strides = [1, 1]} : vector<8x512xf32> to vector<8x384xf32>
    %316 = arith.negf %315 : vector<8x384xf32>
    %317 = math.exp %316 : vector<8x384xf32>
    %cst_51 = arith.constant 1.000000e+00 : f32
    %318 = vector.broadcast %cst_51 : f32 to vector<8x384xf32>
    %319 = arith.addf %318, %317 : vector<8x384xf32>
    %320 = arith.divf %318, %319 : vector<8x384xf32>
    %321 = vector.extract_strided_slice %320 {offsets = [0, 0], sizes = [8, 128], strides = [1, 1]} : vector<8x384xf32> to vector<8x128xf32>
    %322 = vector.extract_strided_slice %320 {offsets = [0, 128], sizes = [8, 128], strides = [1, 1]} : vector<8x384xf32> to vector<8x128xf32>
    %323 = vector.extract_strided_slice %320 {offsets = [0, 256], sizes = [8, 128], strides = [1, 1]} : vector<8x384xf32> to vector<8x128xf32>
    %324 = vector.extract_strided_slice %314 {offsets = [0, 384], sizes = [8, 128], strides = [1, 1]} : vector<8x512xf32> to vector<8x128xf32>
    %325 = math.tanh %324 : vector<8x128xf32>
    %326 = arith.mulf %322, %286 : vector<8x128xf32>
    %327 = arith.mulf %321, %325 : vector<8x128xf32>
    %328 = arith.addf %326, %327 : vector<8x128xf32>
    %329 = math.tanh %328 : vector<8x128xf32>
    %330 = arith.mulf %323, %329 : vector<8x128xf32>
    %331 = arith.truncf %308 : vector<8x128xf32> to vector<8x128xbf16>
    %332 = arith.truncf %330 : vector<8x128xf32> to vector<8x128xbf16>
    %333 = tpu.concatenate %331, %332 in 1 : vector<8x128xbf16>, vector<8x128xbf16> -> vector<8x256xbf16>
    %cst_52 = arith.constant dense<0.000000e+00> : vector<8x512xf32>
    %334 = tpu.matmul %333, %7, %cst_52 {dimension_numbers = #tpu.dot_dimension_numbers<[1], [0], [0], [1], [0, 0, 1, 1], [], []>} : vector<8x256xbf16>, vector<256x512xbf16>, vector<8x512xf32> -> vector<8x512xf32>
    %335 = vector.broadcast %8 : vector<1x512xf32> to vector<8x512xf32>
    %336 = arith.addf %334, %335 : vector<8x512xf32>
    %337 = vector.extract_strided_slice %336 {offsets = [0, 0], sizes = [8, 384], strides = [1, 1]} : vector<8x512xf32> to vector<8x384xf32>
    %338 = arith.negf %337 : vector<8x384xf32>
    %339 = math.exp %338 : vector<8x384xf32>
    %cst_53 = arith.constant 1.000000e+00 : f32
    %340 = vector.broadcast %cst_53 : f32 to vector<8x384xf32>
    %341 = arith.addf %340, %339 : vector<8x384xf32>
    %342 = arith.divf %340, %341 : vector<8x384xf32>
    %343 = vector.extract_strided_slice %342 {offsets = [0, 0], sizes = [8, 128], strides = [1, 1]} : vector<8x384xf32> to vector<8x128xf32>
    %344 = vector.extract_strided_slice %342 {offsets = [0, 128], sizes = [8, 128], strides = [1, 1]} : vector<8x384xf32> to vector<8x128xf32>
    %345 = vector.extract_strided_slice %342 {offsets = [0, 256], sizes = [8, 128], strides = [1, 1]} : vector<8x384xf32> to vector<8x128xf32>
    %346 = vector.extract_strided_slice %336 {offsets = [0, 384], sizes = [8, 128], strides = [1, 1]} : vector<8x512xf32> to vector<8x128xf32>
    %347 = math.tanh %346 : vector<8x128xf32>
    %348 = arith.mulf %344, %328 : vector<8x128xf32>
    %349 = arith.mulf %343, %347 : vector<8x128xf32>
    %350 = arith.addf %348, %349 : vector<8x128xf32>
    %351 = math.tanh %350 : vector<8x128xf32>
    %352 = arith.mulf %345, %351 : vector<8x128xf32>
    %c0_54 = arith.constant 0 : index
    %c0_55 = arith.constant 0 : index
    %c0_56 = arith.constant 0 : index
    %353 = vector.load %arg11[%c0_54, %c0_55, %c0_56] : memref<2x8x128xf32, #tpu.memory_space<vmem>>, vector<1x8x128xf32>
    %354 = vector.shape_cast %353 : vector<1x8x128xf32> to vector<8x128xf32>
    %355 = vector.shape_cast %308 : vector<8x128xf32> to vector<1x8x128xf32>
    tpu.vector_store %arg11[%c0_54, %c0_55, %c0_56], %355 {strides = array<i32>} : memref<2x8x128xf32, #tpu.memory_space<vmem>>, vector<1x8x128xf32>,
    %c0_57 = arith.constant 0 : index
    %c0_58 = arith.constant 0 : index
    %c0_59 = arith.constant 0 : index
    %356 = vector.load %arg12[%c0_57, %c0_58, %c0_59] : memref<2x8x128xf32, #tpu.memory_space<vmem>>, vector<1x8x128xf32>
    %357 = vector.shape_cast %356 : vector<1x8x128xf32> to vector<8x128xf32>
    %358 = vector.shape_cast %306 : vector<8x128xf32> to vector<1x8x128xf32>
    tpu.vector_store %arg12[%c0_57, %c0_58, %c0_59], %358 {strides = array<i32>} : memref<2x8x128xf32, #tpu.memory_space<vmem>>, vector<1x8x128xf32>,
    %c1_60 = arith.constant 1 : index
    %c0_61 = arith.constant 0 : index
    %c0_62 = arith.constant 0 : index
    %359 = vector.load %arg11[%c1_60, %c0_61, %c0_62] : memref<2x8x128xf32, #tpu.memory_space<vmem>>, vector<1x8x128xf32>
    %360 = vector.shape_cast %359 : vector<1x8x128xf32> to vector<8x128xf32>
    %361 = vector.shape_cast %352 : vector<8x128xf32> to vector<1x8x128xf32>
    tpu.vector_store %arg11[%c1_60, %c0_61, %c0_62], %361 {strides = array<i32>} : memref<2x8x128xf32, #tpu.memory_space<vmem>>, vector<1x8x128xf32>,
    %c1_63 = arith.constant 1 : index
    %c0_64 = arith.constant 0 : index
    %c0_65 = arith.constant 0 : index
    %362 = vector.load %arg12[%c1_63, %c0_64, %c0_65] : memref<2x8x128xf32, #tpu.memory_space<vmem>>, vector<1x8x128xf32>
    %363 = vector.shape_cast %362 : vector<1x8x128xf32> to vector<8x128xf32>
    %364 = vector.shape_cast %350 : vector<8x128xf32> to vector<1x8x128xf32>
    tpu.vector_store %arg12[%c1_63, %c0_64, %c0_65], %364 {strides = array<i32>} : memref<2x8x128xf32, #tpu.memory_space<vmem>>, vector<1x8x128xf32>,
    %c0_66 = arith.constant 0 : index
    %c0_67 = arith.constant 0 : index
    %365 = vector.load %arg6[%c0_66, %c0_67] : memref<1x128xf32, #tpu.memory_space<vmem>>, vector<1x128xf32>
    %366 = vector.broadcast %365 : vector<1x128xf32> to vector<8x128xf32>
    %367 = arith.mulf %352, %366 : vector<8x128xf32>
    %cst_68 = arith.constant dense<0.000000e+00> : vector<8xf32>
    %368 = vector.multi_reduction <add>, %367, %cst_68 [1] : vector<8x128xf32> to vector<8xf32>
    %369 = vector.shape_cast %368 : vector<8xf32> to vector<8x1xf32>
    %c0_69 = arith.constant 0 : index
    %c0_70 = arith.constant 0 : index
    %370 = memref.load %arg7[%c0_69, %c0_70] : memref<1x1xf32, #tpu.memory_space<smem>>
    %371 = vector.broadcast %370 : f32 to vector<8x1xf32>
    %372 = arith.addf %369, %371 : vector<8x1xf32>
    %373 = arith.negf %372 : vector<8x1xf32>
    %374 = math.exp %373 : vector<8x1xf32>
    %cst_71 = arith.constant 1.000000e+00 : f32
    %375 = vector.broadcast %cst_71 : f32 to vector<8x1xf32>
    %376 = arith.addf %375, %374 : vector<8x1xf32>
    %377 = arith.divf %375, %376 : vector<8x1xf32>
    %c0_72 = arith.constant 0 : index
    %c0_73 = arith.constant 0 : index
    %378 = vector.load %arg10[%c0_72, %c0_73] : memref<8x1xf32, #tpu.memory_space<vmem>>, vector<8x1xf32>
    tpu.vector_store %arg10[%c0_72, %c0_73], %377 {strides = array<i32>} : memref<8x1xf32, #tpu.memory_space<vmem>>, vector<8x1xf32>,
    return
  }
}

</mosaic_0001>

<bundles_post_ra>
// kernel: lstm_forward.1
= control target key start
LH: loop header
LB: loop body
LE: loop exit
PB: predicated region body
PF: predicated region fallthrough
CT: control target
= control target key end

     0   :  { %vm174_vm0 = vcmask 523264   ;;  %s6338_s1 = inlined_call_operand.vmem [shape: bf16[64,512], index: 1, kind: input, shape index: {}]   ;;  %s6339_s2 = inlined_call_operand.vmem [shape: bf16[128,512], index: 2, kind: input, shape index: {}]   ;;  %s6340_s0 = inlined_call_operand.vmem [shape: bf16[64,64], index: 0, kind: input, shape index: {}]   ;;  %s6341_s8 = inlined_call_operand.vmem [shape: f32[2,8,128], index: 8, kind: input, shape index: {}]   ;;  %s6342_s3 = inlined_call_operand.vmem [shape: f32[1,512], index: 3, kind: input, shape index: {}]   ;;  %s6343_s4 = inlined_call_operand.vmem [shape: bf16[256,512], index: 4, kind: input, shape index: {}]   ;;  %s6344_s9 = inlined_call_operand.vmem [shape: f32[2,8,128], index: 9, kind: input, shape index: {}]   ;;  %s6345_s5 = inlined_call_operand.vmem [shape: f32[1,512], index: 5, kind: input, shape index: {}]   ;;  %s6346_s12 = inlined_call_operand.vmem [shape: f32[2,8,128], index: 12, kind: output, shape index: {2}]   ;;  %s6347_s11 = inlined_call_operand.vmem [shape: f32[2,8,128], index: 11, kind: output, shape index: {1}]   ;;  %s6348_s6 = inlined_call_operand.vmem [shape: f32[1,128], index: 6, kind: input, shape index: {}]   ;;  %s6349_s7 = inlined_call_operand.<no memory space> [shape: f32[1,1], index: 7, kind: input, shape index: {}]   ;;  %s6350_s10 = inlined_call_operand.vmem [shape: f32[8,1], index: 10, kind: output, shape index: {0}]  }
   0x1   :  { %v3283_v0 = vld [vmem:[%s6338_s1 + $0x60] sm:$0xf]  ;;  %v3768_v1 = vld [vmem:[%s6338_s1 + $0x6c] sm:$0xf0]  ;;  %v3766_v2 = vld [vmem:[%s6338_s1 + $0x64] sm:$0xf] }
   0x2   :  { %v3284_v3 = vor.u32 %v3768_v1, %v3283_v0  ;;  %v3285_v4 = vld [vmem:[%s6338_s1 + $0x70] sm:$0xf0]  ;;  %v3291_v5 = vld [vmem:[%s6338_s1 + $0x68] sm:$0xf]  ;;  %v3769_v6 = vld [vmem:[%s6338_s1 + $0x74] sm:$0xf0] }
   0x3   :  { %v3288_v7 = vor.u32 %v3766_v2, %v3285_v4  ;;  %v3292_v8 = vor.u32 %v3769_v6, %v3291_v5  ;;  %v3767_v9 = vld [vmem:[%s6338_s1 + $0x6c] sm:$0xf]  ;;  %v3293_v10 = vld [vmem:[%s6338_s1 + $0x78] sm:$0xf0]  ;;  %v3267_v11 = vld [vmem:[%s6338_s1 + $0x40] sm:$0xf] }
   0x4   :  { %191 = vmatpush.bf16.msra.mxu0 %v3284_v3  ;;  %v3296_v12 = vor.u32 %v3767_v9, %v3293_v10  ;;  %v3764_v13 = vld [vmem:[%s6338_s1 + $0x4c] sm:$0xf0]  ;;  %v3762_v14 = vld [vmem:[%s6338_s1 + $0x44] sm:$0xf]  ;;  %v3269_v15 = vld [vmem:[%s6338_s1 + $0x50] sm:$0xf0] }
   0x5   :  { %220 = vmatpush.bf16.msra.mxu1 %v3288_v7  ;;  %249 = vmatpush.bf16.msra.mxu2 %v3292_v8  ;;  %v3268_v16 = vor.u32 %v3764_v13, %v3267_v11  ;;  %v3272_v17 = vor.u32 %v3762_v14, %v3269_v15  ;;  %v3275_v18 = vld [vmem:[%s6338_s1 + $0x48] sm:$0xf]  ;;  %v3765_v19 = vld [vmem:[%s6338_s1 + $0x54] sm:$0xf0]  ;;  %v3763_v20 = vld [vmem:[%s6338_s1 + $0x4c] sm:$0xf] }
   0x6   :  { %278 = vmatpush.bf16.msra.mxu3 %v3296_v12  ;;  %v3276_v21 = vor.u32 %v3765_v19, %v3275_v18  ;;  %v3277_v22 = vld [vmem:[%s6338_s1 + $0x58] sm:$0xf0]  ;;  %v3251_v23 = vld [vmem:[%s6338_s1 + $0x20] sm:$0xf]  ;;  %v3760_v24 = vld [vmem:[%s6338_s1 + $0x2c] sm:$0xf0] }
   0x7   :  { %v3280_v25 = vor.u32 %v3763_v20, %v3277_v22  ;;  %v3758_v26 = vld [vmem:[%s6338_s1 + $0x24] sm:$0xf]  ;;  %v3253_v27 = vld [vmem:[%s6338_s1 + $0x30] sm:$0xf0]  ;;  %v3259_v28 = vld [vmem:[%s6338_s1 + $0x28] sm:$0xf]  ;;  %v3252_v29 = vor.u32 %v3760_v24, %v3251_v23 }
   0x8   :  { %192 = vmatpush.bf16.msra.mxu0 %v3268_v16  ;;  %v3761_v30 = vld [vmem:[%s6338_s1 + $0x34] sm:$0xf0]  ;;  %v3759_v31 = vld [vmem:[%s6338_s1 + $0x2c] sm:$0xf]  ;;  %v3261_v32 = vld [vmem:[%s6338_s1 + $0x38] sm:$0xf0]  ;;  %v3256_v33 = vor.u32 %v3758_v26, %v3253_v27 }
   0x9   :  { %221 = vmatpush.bf16.msra.mxu1 %v3272_v17  ;;  %250 = vmatpush.bf16.msra.mxu2 %v3276_v21  ;;  %v3260_v34 = vor.u32 %v3761_v30, %v3259_v28  ;;  %v3235_v35 = vld [vmem:[%s6338_s1] sm:$0xf]  ;;  %v3756_v36 = vld [vmem:[%s6338_s1 + $0xc] sm:$0xf0]  ;;  %v3754_v37 = vld [vmem:[%s6338_s1 + $0x4] sm:$0xf]  ;;  %v3264_v38 = vor.u32 %v3759_v31, %v3261_v32 }
   0xa   :  { %279 = vmatpush.bf16.msra.mxu3 %v3280_v25  ;;  %v3237_v39 = vld [vmem:[%s6338_s1 + $0x10] sm:$0xf0]  ;;  %v3243_v40 = vld [vmem:[%s6338_s1 + $0x8] sm:$0xf]  ;;  %v3757_v41 = vld [vmem:[%s6338_s1 + $0x14] sm:$0xf0]  ;;  %v3236_v44 = vor.u32 %v3756_v36, %v3235_v35 }
   0xb   :  { %v3755_v42 = vld [vmem:[%s6338_s1 + $0xc] sm:$0xf]  ;;  %v3245_v43 = vld [vmem:[%s6338_s1 + $0x18] sm:$0xf0]  ;;  %v3429_v45 = vld [vmem:[%s6339_s2 + $0xe0] sm:$0xf]  ;;  %v3240_v48 = vor.u32 %v3754_v37, %v3237_v39  ;;  %v3244_v49 = vor.u32 %v3757_v41, %v3243_v40 }
   0xc   :  { %193 = vmatpush.bf16.msra.mxu0 %v3252_v29  ;;  %v3800_v46 = vld [vmem:[%s6339_s2 + $0xec] sm:$0xf0]  ;;  %v3798_v47 = vld [vmem:[%s6339_s2 + $0xe4] sm:$0xf]  ;;  %v3431_v50 = vld [vmem:[%s6339_s2 + $0xf0] sm:$0xf0]  ;;  %v3248_v51 = vor.u32 %v3755_v42, %v3245_v43 }
   0xd   :  { %222 = vmatpush.bf16.msra.mxu1 %v3256_v33  ;;  %251 = vmatpush.bf16.msra.mxu2 %v3260_v34  ;;  %v3750_v52 = vld [vmem:[%s6340_s0] sm:$0xff]  ;;  %v4303_v53 = vor.u32 %v3800_v46, %v3429_v45  ;;  %v3437_v54 = vld [vmem:[%s6339_s2 + $0xe8] sm:$0xf]  ;;  %v3801_v55 = vld [vmem:[%s6339_s2 + $0xf4] sm:$0xf0]  ;;  %v4311_v56 = vor.u32 %v3798_v47, %v3431_v50 }
   0xe   :  { %280 = vmatpush.bf16.msra.mxu3 %v3264_v38  ;;  %v3413_v57 = vld [vmem:[%s6339_s2 + $0xc0] sm:$0xf]  ;;  %v3796_v58 = vld [vmem:[%s6339_s2 + $0xcc] sm:$0xf0]  ;;  %v3794_v59 = vld [vmem:[%s6339_s2 + $0xc4] sm:$0xf]  ;;  %v4331_v63 = vor.u32 %v3801_v55, %v3437_v54 }
   0xf   :  { %6534 = vst [vmem:[#allocation3_spill] sm:$0xff] %v4303_v53  ;;  %v3415_v60 = vld [vmem:[%s6339_s2 + $0xd0] sm:$0xf0]  ;;  %v3799_v61 = vld [vmem:[%s6339_s2 + $0xec] sm:$0xf]  ;;  %v4334_v0 = vor.u32 %v3796_v58, %v3413_v57 }
  0x10   :  { %6535 = vst [vmem:[#allocation4_spill] sm:$0xff] %v4311_v56  ;;  %194 = vmatpush.bf16.msra.mxu0 %v3236_v44  ;;  %v3439_v62 = vld [vmem:[%s6339_s2 + $0xf8] sm:$0xf0]  ;;  %v3421_v1 = vld [vmem:[%s6339_s2 + $0xc8] sm:$0xf]  ;;  %v4349_v5 = vor.u32 %v3794_v59, %v3415_v60 }
  0x11   :  { %223 = vmatpush.bf16.msra.mxu1 %v3240_v48  ;;  %252 = vmatpush.bf16.msra.mxu2 %v3244_v49  ;;  %6536 = vst [vmem:[#allocation5_spill] sm:$0xff] %v4331_v63  ;;  %v3797_v2 = vld [vmem:[%s6339_s2 + $0xd4] sm:$0xf0]  ;;  %v4342_v3 = vor.u32 %v3799_v61, %v3439_v62  ;;  %v3397_v4 = vld [vmem:[%s6339_s2 + $0xa0] sm:$0xf]  ;;  %v3751_v35 = vld [vmem:[%s6340_s0 + $0x8] sm:$0xff] }
  0x12   :  { %281 = vmatpush.bf16.msra.mxu3 %v3248_v51  ;;  %6537 = vst [vmem:[#allocation6_spill] sm:$0xff] %v4334_v0  ;;  %v3792_v6 = vld [vmem:[%s6339_s2 + $0xac] sm:$0xf0]  ;;  %v3795_v7 = vld [vmem:[%s6339_s2 + $0xcc] sm:$0xf]  ;;  %v4370_v11 = vor.u32 %v3797_v2, %v3421_v1 }
  0x13   :  { %6538 = vst [vmem:[#allocation7_spill] sm:$0xff] %v4342_v3  ;;  %3297 = vmatmul.msk.bf16.vlgmr.msra.gmra.mxu0 %vm174_vm0, %v3750_v52  ;;  %v3423_v8 = vld [vmem:[%s6339_s2 + $0xd8] sm:$0xf0]  ;;  %v3790_v9 = vld [vmem:[%s6339_s2 + $0xa4] sm:$0xf]  ;;  %v4374_v12 = vor.u32 %v3792_v6, %v3397_v4 }
  0x14   :  { %567 = vmatpush.bf16.msrb.mxu0 %v4303_v53  ;;  %6539 = vst [vmem:[#allocation8_spill] sm:$0xff] %v4349_v5  ;;  %3301 = vmatmul.msk.bf16.vlgmr.msra.gmra.mxu1 %vm174_vm0, %v3750_v52  ;;  %v3399_v10 = vld [vmem:[%s6339_s2 + $0xb0] sm:$0xf0]  ;;  %v3405_v13 = vld [vmem:[%s6339_s2 + $0xa8] sm:$0xf]  ;;  %v4382_v15 = vor.u32 %v3795_v7, %v3423_v8 }
  0x15   :  { %580 = vmatpush.bf16.msrb.mxu1 %v4311_v56  ;;  %3305 = vmatmul.msk.bf16.vlgmr.msra.gmra.mxu2 %vm174_vm0, %v3750_v52  ;;  %6540 = vst [vmem:[#allocation9_spill] sm:$0xff] %v4370_v11  ;;  %v3793_v14 = vld [vmem:[%s6339_s2 + $0xb4] sm:$0xf0]  ;;  %v3381_v16 = vld [vmem:[%s6339_s2 + $0x80] sm:$0xf]  ;;  %v4388_v17 = vor.u32 %v3790_v9, %v3399_v10 }
  0x16   :  { %3309 = vmatmul.msk.bf16.vlgmr.msra.gmra.mxu3 %vm174_vm0, %v3750_v52  ;;  %593 = vmatpush.bf16.msrb.mxu2 %v4331_v63  ;;  %6541 = vst [vmem:[#allocation10_spill] sm:$0xff] %v4374_v12  ;;  %v3788_v18 = vld [vmem:[%s6339_s2 + $0x8c] sm:$0xf0]  ;;  %v3791_v19 = vld [vmem:[%s6339_s2 + $0xac] sm:$0xf]  ;;  %v4406_v23 = vor.u32 %v3793_v14, %v3405_v13 }
  0x17   :  { %606 = vmatpush.bf16.msrb.mxu3 %v4342_v3  ;;  %6542 = vst [vmem:[#allocation11_spill] sm:$0xff] %v4382_v15  ;;  %v3407_v20 = vld [vmem:[%s6339_s2 + $0xb8] sm:$0xf0]  ;;  %v3786_v21 = vld [vmem:[%s6339_s2 + $0x84] sm:$0xf]  ;;  %v4410_v24 = vor.u32 %v3788_v18, %v3381_v16 }
  0x18   :  { %568 = vmatpush.bf16.msrb.mxu0 %v4334_v0  ;;  %6543 = vst [vmem:[#allocation12_spill] sm:$0xff] %v4388_v17  ;;  %v3383_v22 = vld [vmem:[%s6339_s2 + $0x90] sm:$0xf0]  ;;  %v3389_v25 = vld [vmem:[%s6339_s2 + $0x88] sm:$0xf]  ;;  %v4418_v27 = vor.u32 %v3791_v19, %v3407_v20 }
  0x19   :  { %581 = vmatpush.bf16.msrb.mxu1 %v4349_v5  ;;  %6544 = vst [vmem:[#allocation13_spill] sm:$0xff] %v4406_v23  ;;  %v3789_v26 = vld [vmem:[%s6339_s2 + $0x94] sm:$0xf0]  ;;  %v3365_v28 = vld [vmem:[%s6339_s2 + $0x60] sm:$0xf]  ;;  %v4424_v29 = vor.u32 %v3786_v21, %v3383_v22 }
  0x1a   :  { %594 = vmatpush.bf16.msrb.mxu2 %v4370_v11  ;;  %6545 = vst [vmem:[#allocation14_spill] sm:$0xff] %v4410_v24  ;;  %v3784_v30 = vld [vmem:[%s6339_s2 + $0x6c] sm:$0xf0]  ;;  %v3787_v31 = vld [vmem:[%s6339_s2 + $0x8c] sm:$0xf]  ;;  %v4445_v36 = vor.u32 %v3789_v26, %v3389_v25 }
  0x1b   :  { %607 = vmatpush.bf16.msrb.mxu3 %v4382_v15  ;;  %6546 = vst [vmem:[#allocation15_spill] sm:$0xff] %v4418_v27  ;;  %v3391_v32 = vld [vmem:[%s6339_s2 + $0x98] sm:$0xf0]  ;;  %v3782_v33 = vld [vmem:[%s6339_s2 + $0x64] sm:$0xf]  ;;  %v4449_v37 = vor.u32 %v3784_v30, %v3365_v28 }
  0x1c   :  { %569 = vmatpush.bf16.msrb.mxu0 %v4374_v12  ;;  %6547 = vst [vmem:[#allocation16_spill] sm:$0xff] %v4424_v29  ;;  %v3367_v34 = vld [vmem:[%s6339_s2 + $0x70] sm:$0xf0]  ;;  %v3373_v38 = vld [vmem:[%s6339_s2 + $0x68] sm:$0xf]  ;;  %v4457_v40 = vor.u32 %v3787_v31, %v3391_v32 }
  0x1d   :  { %582 = vmatpush.bf16.msrb.mxu1 %v4388_v17  ;;  %6548 = vst [vmem:[#allocation17_spill] sm:$0xff] %v4445_v36  ;;  %v3785_v39 = vld [vmem:[%s6339_s2 + $0x74] sm:$0xf0]  ;;  %v3349_v41 = vld [vmem:[%s6339_s2 + $0x40] sm:$0xf]  ;;  %v4463_v42 = vor.u32 %v3782_v33, %v3367_v34  ;;  %v3752_v32 = vld [vmem:[%s6340_s0 + $0x10] sm:$0xff] }
  0x1e   :  { %595 = vmatpush.bf16.msrb.mxu2 %v4406_v23  ;;  %6549 = vst [vmem:[#allocation18_spill] sm:$0xff] %v4449_v37  ;;  %v3780_v43 = vld [vmem:[%s6339_s2 + $0x4c] sm:$0xf0]  ;;  %v3783_v44 = vld [vmem:[%s6339_s2 + $0x6c] sm:$0xf]  ;;  %v4481_v48 = vor.u32 %v3785_v39, %v3373_v38  ;;  %v3753_v33 = vld [vmem:[%s6340_s0 + $0x18] sm:$0xff] }
  0x1f   :  { %608 = vmatpush.bf16.msrb.mxu3 %v4418_v27  ;;  %6550 = vst [vmem:[#allocation19_spill] sm:$0xff] %v4457_v40  ;;  %v3375_v45 = vld [vmem:[%s6339_s2 + $0x78] sm:$0xf0]  ;;  %v3778_v46 = vld [vmem:[%s6339_s2 + $0x44] sm:$0xf]  ;;  %v4485_v49 = vor.u32 %v3780_v43, %v3349_v41 }
  0x20   :  { %570 = vmatpush.bf16.msrb.mxu0 %v4410_v24  ;;  %6551 = vst [vmem:[#allocation20_spill] sm:$0xff] %v4463_v42  ;;  %v3351_v47 = vld [vmem:[%s6339_s2 + $0x50] sm:$0xf0]  ;;  %v3357_v50 = vld [vmem:[%s6339_s2 + $0x48] sm:$0xf]  ;;  %v4493_v52 = vor.u32 %v3783_v44, %v3375_v45  ;;  %v400_v34 = vld [vmem:[%s6341_s8] sm:$0xff] }
  0x21   :  { %583 = vmatpush.bf16.msrb.mxu1 %v4424_v29  ;;  %6552 = vst [vmem:[#allocation21_spill] sm:$0xff] %v4481_v48  ;;  %v3781_v51 = vld [vmem:[%s6339_s2 + $0x54] sm:$0xf0]  ;;  %v4497_v54 = vor.u32 %v3778_v46, %v3351_v47  ;;  %v3333_v57 = vld [vmem:[%s6339_s2 + $0x20] sm:$0xf] }
  0x22   :  { %596 = vmatpush.bf16.msrb.mxu2 %v4445_v36  ;;  %6553 = vst [vmem:[#allocation22_spill] sm:$0xff] %v4485_v49  ;;  %v4503_v55 = vor.u32 %v3781_v51, %v3357_v50  ;;  %v3776_v58 = vld [vmem:[%s6339_s2 + $0x2c] sm:$0xf0]  ;;  %v3774_v59 = vld [vmem:[%s6339_s2 + $0x24] sm:$0xf] }
  0x23   :  { %609 = vmatpush.bf16.msrb.mxu3 %v4457_v40  ;;  %6554 = vst [vmem:[#allocation23_spill] sm:$0xff] %v4493_v52  ;;  %3298 = vmatmul.msk.bf16.gmra.mxu0 %vm174_vm0, %v3751_v35  ;;  %v4516_v60 = vor.u32 %v3776_v58, %v3333_v57  ;;  %v3335_v61 = vld [vmem:[%s6339_s2 + $0x30] sm:$0xf0]  ;;  %v3341_v62 = vld [vmem:[%s6339_s2 + $0x28] sm:$0xf] }
  0x24   :  { %571 = vmatpush.bf16.msrb.mxu0 %v4449_v37  ;;  %6555 = vst [vmem:[#allocation24_spill] sm:$0xff] %v4497_v54  ;;  %3302 = vmatmul.msk.bf16.gmra.mxu1 %vm174_vm0, %v3751_v35  ;;  %v3777_v1 = vld [vmem:[%s6339_s2 + $0x34] sm:$0xf0]  ;;  %v4528_v2 = vor.u32 %v3774_v59, %v3335_v61  ;;  %v3779_v4 = vld [vmem:[%s6339_s2 + $0x4c] sm:$0xf] }
  0x25   :  { %584 = vmatpush.bf16.msrb.mxu1 %v4463_v42  ;;  %3306 = vmatmul.msk.bf16.gmra.mxu2 %vm174_vm0, %v3751_v35  ;;  %6556 = vst [vmem:[#allocation25_spill] sm:$0xff] %v4503_v55  ;;  %v3359_v6 = vld [vmem:[%s6339_s2 + $0x58] sm:$0xf0]  ;;  %v3317_v7 = vld [vmem:[%s6339_s2] sm:$0xf]  ;;  %v4551_v14 = vor.u32 %v3777_v1, %v3341_v62 }
  0x26   :  { %3310 = vmatmul.msk.bf16.gmra.mxu3 %vm174_vm0, %v3751_v35  ;;  %597 = vmatpush.bf16.msrb.mxu2 %v4481_v48  ;;  %6557 = vst [vmem:[#allocation26_spill] sm:$0xff] %v4516_v60  ;;  %v4539_v8 = vor.u32 %v3779_v4, %v3359_v6  ;;  %v3772_v9 = vld [vmem:[%s6339_s2 + $0xc] sm:$0xf0]  ;;  %v3770_v10 = vld [vmem:[%s6339_s2 + $0x4] sm:$0xf]  ;;  %v406_v35 = vpack.c.bf16 %v400_v34, %v400_v34 }
  0x27   :  { %610 = vmatpush.bf16.msrb.mxu3 %v4493_v52  ;;  %6558 = vst [vmem:[#allocation27_spill] sm:$0xff] %v4528_v2  ;;  %v3319_v13 = vld [vmem:[%s6339_s2 + $0x10] sm:$0xf0]  ;;  %v3775_v16 = vld [vmem:[%s6339_s2 + $0x2c] sm:$0xf]  ;;  %v4561_v19 = vor.u32 %v3772_v9, %v3317_v7 }
  0x28   :  { %572 = vmatpush.bf16.msrb.mxu0 %v4485_v49  ;;  %6559 = vst [vmem:[#allocation28_spill] sm:$0xff] %v4539_v8  ;;  %v3343_v18 = vld [vmem:[%s6339_s2 + $0x38] sm:$0xf0]  ;;  %v3325_v21 = vld [vmem:[%s6339_s2 + $0x8] sm:$0xf]  ;;  %v4572_v25 = vor.u32 %v3770_v10, %v3319_v13 }
  0x29   :  { %585 = vmatpush.bf16.msrb.mxu1 %v4497_v54  ;;  %6560 = vst [vmem:[#allocation29_spill] sm:$0xff] %v4551_v14  ;;  %v4563_v20 = vor.u32 %v3775_v16, %v3343_v18  ;;  %v3773_v22 = vld [vmem:[%s6339_s2 + $0x14] sm:$0xf0]  ;;  %v3771_v26 = vld [vmem:[%s6339_s2 + $0xc] sm:$0xf] }
  0x2a   :  { %598 = vmatpush.bf16.msrb.mxu2 %v4503_v55  ;;  %6561 = vst [vmem:[#allocation30_spill] sm:$0xff] %v4561_v19  ;;  %v3327_v28 = vld [vmem:[%s6339_s2 + $0x18] sm:$0xf0]  ;;  %v4581_v30 = vor.u32 %v3773_v22, %v3325_v21  ;;  %v64_v46 = vld [vmem:[%s6342_s3] sm:$0xf] }
  0x2b   :  { %611 = vmatpush.bf16.msrb.mxu3 %v4539_v8  ;;  %6562 = vst [vmem:[#allocation31_spill] sm:$0xff] %v4563_v20  ;;  %v4585_v31 = vor.u32 %v3771_v26, %v3327_v28  ;;  %v4654_v47 = vperm.slane %v64_v46, 0  ;;  %v4658_v51 = vperm.slane %v64_v46, 1  ;;  %v4668_v1 = vperm.slane %v64_v46, 2 }
  0x2c   :  { %573 = vmatpush.bf16.msrb.mxu0 %v4516_v60  ;;  %6563 = vst [vmem:[#allocation32_spill] sm:$0xff] %v4572_v25  ;;  %v4670_v4 = vperm.slane %v64_v46, 3 }
  0x2d   :  { %586 = vmatpush.bf16.msrb.mxu1 %v4528_v2  ;;  %6564 = vst [vmem:[#allocation33_spill] sm:$0xff] %v4581_v30 }
  0x2e   :  { %599 = vmatpush.bf16.msrb.mxu2 %v4551_v14  ;;  %6565 = vst [vmem:[#allocation34_spill] sm:$0xff] %v4585_v31 }
  0x2f   :  { %612 = vmatpush.bf16.msrb.mxu3 %v4563_v20  ;;  %6568 = vst [vmem:[#allocation37_spill] sm:$0xff] %v4654_v47 }
  0x30   :  { %574 = vmatpush.bf16.msrb.mxu0 %v4561_v19  ;;  %6570 = vst [vmem:[#allocation39_spill] sm:$0xff] %v4658_v51 }
  0x31   :  { %587 = vmatpush.bf16.msrb.mxu1 %v4572_v25  ;;  %6574 = vst [vmem:[#allocation43_spill] sm:$0xff] %v4668_v1 }
  0x32   :  { %600 = vmatpush.bf16.msrb.mxu2 %v4581_v30  ;;  %6575 = vst [vmem:[#allocation44_spill] sm:$0xff] %v4670_v4 }
  0x33   :  { %613 = vmatpush.bf16.msrb.mxu3 %v4585_v31  ;;  %3299 = vmatmul.msk.bf16.gmra.mxu0 %vm174_vm0, %v3752_v32 }
  0x34   :  { %683 = vmatpush.bf16.msra.mxu0 %v4303_v53  ;;  %3303 = vmatmul.msk.bf16.gmra.mxu1 %vm174_vm0, %v3752_v32 }
  0x35   :  { %696 = vmatpush.bf16.msra.mxu1 %v4311_v56  ;;  %3307 = vmatmul.msk.bf16.gmra.mxu2 %vm174_vm0, %v3752_v32 }
  0x36   :  { %709 = vmatpush.bf16.msra.mxu2 %v4331_v63  ;;  %3311 = vmatmul.msk.bf16.gmra.mxu3 %vm174_vm0, %v3752_v32 }
  0x37   :  { %722 = vmatpush.bf16.msra.mxu3 %v4342_v3 }
  0x38   :  { %684 = vmatpush.bf16.msra.mxu0 %v4334_v0 }
  0x39   :  { %697 = vmatpush.bf16.msra.mxu1 %v4349_v5 }
  0x3a   :  { %710 = vmatpush.bf16.msra.mxu2 %v4370_v11 }
  0x3b   :  { %723 = vmatpush.bf16.msra.mxu3 %v4382_v15 }
  0x3c   :  { %685 = vmatpush.bf16.msra.mxu0 %v4374_v12 }
  0x3d   :  { %698 = vmatpush.bf16.msra.mxu1 %v4388_v17 }
  0x3e   :  { %711 = vmatpush.bf16.msra.mxu2 %v4406_v23 }
  0x3f   :  { %724 = vmatpush.bf16.msra.mxu3 %v4418_v27 }
  0x40   :  { %686 = vmatpush.bf16.msra.mxu0 %v4410_v24 }
  0x41   :  { %699 = vmatpush.bf16.msra.mxu1 %v4424_v29 }
  0x42   :  { %712 = vmatpush.bf16.msra.mxu2 %v4445_v36 }
  0x43   :  { %725 = vmatpush.bf16.msra.mxu3 %v4457_v40  ;;  %3300 = vmatmul.msk.bf16.gmra.mxu0 %vm174_vm0, %v3753_v33 }
  0x44   :  { %687 = vmatpush.bf16.msra.mxu0 %v4449_v37  ;;  %3304 = vmatmul.msk.bf16.gmra.mxu1 %vm174_vm0, %v3753_v33 }
  0x45   :  { %700 = vmatpush.bf16.msra.mxu1 %v4463_v42  ;;  %3308 = vmatmul.msk.bf16.gmra.mxu2 %vm174_vm0, %v3753_v33 }
  0x46   :  { %713 = vmatpush.bf16.msra.mxu2 %v4481_v48  ;;  %3312 = vmatmul.msk.bf16.gmra.mxu3 %vm174_vm0, %v3753_v33 }
  0x47   :  { %726 = vmatpush.bf16.msra.mxu3 %v4493_v52 }
  0x48   :  { %688 = vmatpush.bf16.msra.mxu0 %v4485_v49 }
  0x49   :  { %701 = vmatpush.bf16.msra.mxu1 %v4497_v54 }
  0x4a   :  { %714 = vmatpush.bf16.msra.mxu2 %v4503_v55 }
  0x4b   :  { %727 = vmatpush.bf16.msra.mxu3 %v4539_v8 }
  0x4c   :  { %689 = vmatpush.bf16.msra.mxu0 %v4516_v60 }
  0x4d   :  { %702 = vmatpush.bf16.msra.mxu1 %v4528_v2 }
  0x4e   :  { %715 = vmatpush.bf16.msra.mxu2 %v4551_v14 }
  0x4f   :  { %728 = vmatpush.bf16.msra.mxu3 %v4563_v20 }
  0x50   :  { %690 = vmatpush.bf16.msra.mxu0 %v4561_v19 }
  0x51   :  { %703 = vmatpush.bf16.msra.mxu1 %v4572_v25 }
  0x52   :  { %716 = vmatpush.bf16.msra.mxu2 %v4581_v30 }
  0x53   :  { %729 = vmatpush.bf16.msra.mxu3 %v4585_v31  ;;  %575 = vmatmul.bf16.vlgmr.msrb.gmra.mxu0 %v406_v35 }
  0x54   :  { %588 = vmatmul.bf16.vlgmr.msrb.gmra.mxu1 %v406_v35 }
  0x55   :  { %601 = vmatmul.bf16.vlgmr.msrb.gmra.mxu2 %v406_v35 }
  0x56   :  { %614 = vmatmul.bf16.vlgmr.msrb.gmra.mxu3 %v406_v35 }
  0x90   :  { %v4639_v38 = vpop.f32.mrf.mxu0 }
  0x91   :  { %v4641_v39 = vpop.f32.mrf.mxu1 }
  0x98   :  { %v4643_v41 = vpop.f32.mrf.mxu2  ;;  %v4647_v44 = vpop.f32.mrf.mxu0 }
  0x99   :  { %v4645_v43 = vpop.f32.mrf.mxu3  ;;  %6566 = vst [vmem:[#allocation35_spill] sm:$0xff] %v4647_v44  ;;  %v4649_v45 = vpop.f32.mrf.mxu1  ;;  %v226_v44 = vadd.f32 %v4641_v39, %v4658_v51  ;;  %v3816_v39 = vld [vmem:[%s6343_s4 + $0x6c] sm:$0xf0] }
  0x9a   :  { %6567 = vst [vmem:[#allocation36_spill] sm:$0xff] %v4649_v45  ;;  %v3645_v45 = vld [vmem:[%s6343_s4 + $0x190] sm:$0xf0] }
  0xa0   :  { %v4656_v50 = vpop.f32.mrf.mxu2  ;;  %v201_v58 = vpop.f32.mrf.mxu0 }
  0xa1   :  { %6569 = vst [vmem:[#allocation38_spill] sm:$0xff] %v4656_v50  ;;  %v4660_v57 = vpop.f32.mrf.mxu3  ;;  %v4663_v59 = vadd.f32 %v201_v58, %v4654_v47  ;;  %v230_v61 = vpop.f32.mrf.mxu1 }
  0xa2   :  { %6571 = vst [vmem:[#allocation40_spill] sm:$0xff] %v4660_v57  ;;  %v4666_v62 = vadd.f32 %v230_v61, %v4658_v51 }
  0xa3   :  { %6572 = vst [vmem:[#allocation41_spill] sm:$0xff] %v4663_v59  ;;  %v197_v59 = vadd.f32 %v4639_v38, %v4654_v47 }
  0xa4   :  { %6573 = vst [vmem:[#allocation42_spill] sm:$0xff] %v4666_v62  ;;  %v3517_v62 = vld [vmem:[%s6343_s4 + $0x90] sm:$0xf0] }
  0xa8   :  { %v259_v6 = vpop.f32.mrf.mxu2  ;;  %v4675_v10 = vpop.f32.mrf.mxu0 }
  0xa9   :  { %v4673_v7 = vadd.f32 %v259_v6, %v4668_v1  ;;  %v288_v9 = vpop.f32.mrf.mxu3  ;;  %6577 = vst [vmem:[#allocation46_spill] sm:$0xff] %v4675_v10  ;;  %v4680_v16 = vpop.f32.mrf.mxu1 }
  0xaa   :  { %v4678_v13 = vadd.f32 %v288_v9, %v4670_v4  ;;  %6579 = vst [vmem:[#allocation48_spill] sm:$0xff] %v4680_v16 }
  0xab   :  { %6576 = vst [vmem:[#allocation45_spill] sm:$0xff] %v4673_v7 }
  0xac   :  { %6578 = vst [vmem:[#allocation47_spill] sm:$0xff] %v4678_v13 }
  0xb0   :  { %v4682_v18 = vpop.f32.mrf.mxu2  ;;  %v206_v22 = vpop.f32.mrf.mxu0 }
  0xb1   :  { %6580 = vst [vmem:[#allocation49_spill] sm:$0xff] %v4682_v18  ;;  %v4684_v21 = vpop.f32.mrf.mxu3  ;;  %v4687_v26 = vadd.f32 %v206_v22, %v4654_v47  ;;  %v235_v28 = vpop.f32.mrf.mxu1 }
  0xb2   :  { %6581 = vst [vmem:[#allocation50_spill] sm:$0xff] %v4684_v21  ;;  %v4690_v32 = vadd.f32 %v235_v28, %v4658_v51 }
  0xb3   :  { %6582 = vst [vmem:[#allocation51_spill] sm:$0xff] %v4687_v26 }
  0xb4   :  { %6583 = vst [vmem:[#allocation52_spill] sm:$0xff] %v4690_v32 }
  0xb8   :  { %v264_v33 = vpop.f32.mrf.mxu2  ;;  %v4695_v46 = vpop.f32.mrf.mxu0 }
  0xb9   :  { %v4693_v34 = vadd.f32 %v264_v33, %v4668_v1  ;;  %v293_v35 = vpop.f32.mrf.mxu3  ;;  %6585 = vst [vmem:[#allocation54_spill] sm:$0xff] %v4695_v46  ;;  %v4700_v61 = vpop.f32.mrf.mxu1  ;;  %v3563_v33 = vld [vmem:[%s6343_s4 + $0xe0] sm:$0xf]  ;;  %v3565_v46 = vld [vmem:[%s6343_s4 + $0xf0] sm:$0xf0] }
  0xba   :  { %v4698_v58 = vadd.f32 %v293_v35, %v4670_v4  ;;  %6587 = vst [vmem:[#allocation56_spill] sm:$0xff] %v4700_v61  ;;  %v3832_v35 = vld [vmem:[%s6343_s4 + $0xec] sm:$0xf0]  ;;  %v3691_v61 = vld [vmem:[%s6343_s4 + $0x1e0] sm:$0xf] }
  0xbb   :  { %6584 = vst [vmem:[#allocation53_spill] sm:$0xff] %v4693_v34 }
  0xbc   :  { %6586 = vst [vmem:[#allocation55_spill] sm:$0xff] %v4698_v58 }
  0xc0   :  { %v4702_v6 = vpop.f32.mrf.mxu2  ;;  %v211_v22 = vpop.f32.mrf.mxu0 }
  0xc1   :  { %6588 = vst [vmem:[#allocation57_spill] sm:$0xff] %v4702_v6  ;;  %v4704_v9 = vpop.f32.mrf.mxu3  ;;  %v4707_v28 = vadd.f32 %v211_v22, %v4654_v47  ;;  %v240_v32 = vpop.f32.mrf.mxu1  ;;  %v3864_v22 = vld [vmem:[%s6343_s4 + $0x1ec] sm:$0xf0] }
  0xc2   :  { %6589 = vst [vmem:[#allocation58_spill] sm:$0xff] %v4704_v9  ;;  %v4719_v6 = vadd.f32 %v240_v32, %v4658_v51  ;;  %v4721_v9 = vor.u32 %v3832_v35, %v3563_v33  ;;  %v4732_v58 = vor.u32 %v3864_v22, %v3691_v61  ;;  %v3862_v32 = vld [vmem:[%s6343_s4 + $0x1e4] sm:$0xf]  ;;  %v3693_v33 = vld [vmem:[%s6343_s4 + $0x1f0] sm:$0xf0] }
  0xc3   :  { %6590 = vst [vmem:[#allocation59_spill] sm:$0xff] %v4707_v28  ;;  %v3830_v28 = vld [vmem:[%s6343_s4 + $0xe4] sm:$0xf]  ;;  %v4743_v35 = vor.u32 %v3862_v32, %v3693_v33  ;;  %v3828_v61 = vld [vmem:[%s6343_s4 + $0xcc] sm:$0xf0] }
  0xc4   :  { %6591 = vst [vmem:[#allocation60_spill] sm:$0xff] %v4719_v6  ;;  %v4734_v34 = vor.u32 %v3830_v28, %v3565_v46  ;;  %1128 = vmatpush.bf16.msrb.mxu0 %v4721_v9  ;;  %1141 = vmatpush.bf16.msrb.mxu1 %v4732_v58  ;;  %v3547_v46 = vld [vmem:[%s6343_s4 + $0xc0] sm:$0xf]  ;;  %v3860_v32 = vld [vmem:[%s6343_s4 + $0x1cc] sm:$0xf0] }
  0xc5   :  { %6592 = vst [vmem:[#allocation61_spill] sm:$0xff] %v4721_v9  ;;  %v3675_v28 = vld [vmem:[%s6343_s4 + $0x1c0] sm:$0xf]  ;;  %1167 = vmatpush.bf16.msrb.mxu3 %v4743_v35  ;;  %v4757_v22 = vor.u32 %v3828_v61, %v3547_v46  ;;  %v3826_v33 = vld [vmem:[%s6343_s4 + $0xc4] sm:$0xf] }
  0xc6   :  { %6593 = vst [vmem:[#allocation62_spill] sm:$0xff] %v4732_v58  ;;  %1154 = vmatpush.bf16.msrb.mxu2 %v4734_v34  ;;  %v3549_v6 = vld [vmem:[%s6343_s4 + $0xd0] sm:$0xf0]  ;;  %v4768_v21 = vor.u32 %v3860_v32, %v3675_v28  ;;  %v3858_v46 = vld [vmem:[%s6343_s4 + $0x1c4] sm:$0xf] }
  0xc7   :  { %6594 = vst [vmem:[#allocation63_spill] sm:$0xff] %v4734_v34  ;;  %v4770_v18 = vor.u32 %v3826_v33, %v3549_v6  ;;  %v3677_v61 = vld [vmem:[%s6343_s4 + $0x1d0] sm:$0xf0]  ;;  %v3824_v33 = vld [vmem:[%s6343_s4 + $0xac] sm:$0xf0] }
  0xc8   :  { %6595 = vst [vmem:[#allocation64_spill] sm:$0xff] %v4743_v35  ;;  %v269_v26 = vpop.f32.mrf.mxu2  ;;  %v4781_v13 = vpop.f32.mrf.mxu0  ;;  %1129 = vmatpush.bf16.msrb.mxu0 %v4757_v22  ;;  %v4784_v28 = vor.u32 %v3858_v46, %v3677_v61  ;;  %1142 = vmatpush.bf16.msrb.mxu1 %v4768_v21  ;;  %v3659_v46 = vld [vmem:[%s6343_s4 + $0x1a0] sm:$0xf]  ;;  %v3856_v61 = vld [vmem:[%s6343_s4 + $0x1ac] sm:$0xf0] }
  0xc9   :  { %6596 = vst [vmem:[#allocation65_spill] sm:$0xff] %v4757_v22  ;;  %v4779_v16 = vadd.f32 %v269_v26, %v4668_v1  ;;  %v298_v10 = vpop.f32.mrf.mxu3  ;;  %v4789_v32 = vpop.f32.mrf.mxu1  ;;  %v3531_v26 = vld [vmem:[%s6343_s4 + $0xa0] sm:$0xf] }
  0xca   :  { %6597 = vst [vmem:[#allocation66_spill] sm:$0xff] %v4768_v21  ;;  %v4787_v6 = vadd.f32 %v298_v10, %v4670_v4  ;;  %1155 = vmatpush.bf16.msrb.mxu2 %v4770_v18  ;;  %1168 = vmatpush.bf16.msrb.mxu3 %v4784_v28  ;;  %v4803_v10 = vor.u32 %v3824_v33, %v3531_v26  ;;  %v3854_v26 = vld [vmem:[%s6343_s4 + $0x1a4] sm:$0xf]  ;;  %v3661_v33 = vld [vmem:[%s6343_s4 + $0x1b0] sm:$0xf0] }
  0xcb   :  { %6598 = vst [vmem:[#allocation67_spill] sm:$0xff] %v4770_v18  ;;  %v4825_v7 = vor.u32 %v3854_v26, %v3661_v33  ;;  %v3852_v26 = vld [vmem:[%s6343_s4 + $0x18c] sm:$0xf0]  ;;  %v3818_v33 = vld [vmem:[%s6343_s4 + $0x84] sm:$0xf] }
  0xcc   :  { %6599 = vst [vmem:[#allocation68_spill] sm:$0xff] %v4779_v16  ;;  %1130 = vmatpush.bf16.msrb.mxu0 %v4803_v10 }
  0xcd   :  { %6600 = vst [vmem:[#allocation69_spill] sm:$0xff] %v4781_v13  ;;  %v3533_v13 = vld [vmem:[%s6343_s4 + $0xb0] sm:$0xf0] }
  0xce   :  { %6601 = vst [vmem:[#allocation70_spill] sm:$0xff] %v4784_v28  ;;  %1169 = vmatpush.bf16.msrb.mxu3 %v4825_v7 }
  0xcf   :  { %6602 = vst [vmem:[#allocation71_spill] sm:$0xff] %v4787_v6  ;;  %v4814_v6 = vor.u32 %v3856_v61, %v3659_v46  ;;  %v3643_v46 = vld [vmem:[%s6343_s4 + $0x180] sm:$0xf] }
  0xd0   :  { %6603 = vst [vmem:[#allocation72_spill] sm:$0xff] %v4789_v32  ;;  %v3822_v32 = vld [vmem:[%s6343_s4 + $0xa4] sm:$0xf]  ;;  %v4852_v57 = vpop.f32.mrf.mxu2  ;;  %v4854_v50 = vor.u32 %v3852_v26, %v3643_v46  ;;  %v576_v38 = vpop.f32.mrf.mxu0 }
  0xd1   :  { %6604 = vst [vmem:[#allocation73_spill] sm:$0xff] %v4803_v10  ;;  %v4816_v16 = vor.u32 %v3822_v32, %v3533_v13  ;;  %1143 = vmatpush.bf16.msrb.mxu1 %v4814_v6  ;;  %v3515_v13 = vld [vmem:[%s6343_s4 + $0x80] sm:$0xf]  ;;  %v3820_v32 = vld [vmem:[%s6343_s4 + $0x8c] sm:$0xf0]  ;;  %v589_v26 = vpop.f32.mrf.mxu1 }
  0xd2   :  { %6605 = vst [vmem:[#allocation74_spill] sm:$0xff] %v4814_v6  ;;  %v4839_v61 = vor.u32 %v3820_v32, %v3515_v13  ;;  %v4856_v13 = vor.u32 %v3818_v33, %v3517_v62  ;;  %v3850_v32 = vld [vmem:[%s6343_s4 + $0x184] sm:$0xf]  ;;  %v577_v62 = vadd.f32 %v576_v38, %v197_v59  ;;  %v3499_v33 = vld [vmem:[%s6343_s4 + $0x60] sm:$0xf] }
  0xd3   :  { %6606 = vst [vmem:[#allocation75_spill] sm:$0xff] %v4816_v16  ;;  %1156 = vmatpush.bf16.msrb.mxu2 %v4816_v16  ;;  %v4869_v46 = vor.u32 %v3850_v32, %v3645_v45  ;;  %v590_v45 = vadd.f32 %v589_v26, %v226_v44  ;;  %v4883_v59 = vor.u32 %v3816_v39, %v3499_v33  ;;  %v3848_v32 = vld [vmem:[%s6343_s4 + $0x16c] sm:$0xf0]  ;;  %v3814_v38 = vld [vmem:[%s6343_s4 + $0x64] sm:$0xf] }
  0xd4   :  { %6607 = vst [vmem:[#allocation76_spill] sm:$0xff] %v4825_v7  ;;  %v4866_v7 = vpop.f32.mrf.mxu3  ;;  %1131 = vmatpush.bf16.msrb.mxu0 %v4839_v61  ;;  %v3443_v51 = vmul.f32 -1.442695, %v577_v62  ;;  %v3846_v26 = vld [vmem:[%s6343_s4 + $0x164] sm:$0xf] }
  0xd5   :  { %6608 = vst [vmem:[#allocation77_spill] sm:$0xff] %v4839_v61  ;;  %1144 = vmatpush.bf16.msrb.mxu1 %v4854_v50  ;;  %1170 = vmatpush.bf16.msrb.mxu3 %v4869_v46  ;;  %v3629_v33 = vld [vmem:[%s6343_s4 + $0x170] sm:$0xf0]  ;;  %v3444_v39 = vmul.f32 -1.442695, %v590_v45  ;;  %v255_v45 = vadd.f32 %v4643_v41, %v4668_v1 }
  0xd6   :  { %6609 = vst [vmem:[#allocation78_spill] sm:$0xff] %v4852_v57  ;;  %v3501_v57 = vld [vmem:[%s6343_s4 + $0x70] sm:$0xf0]  ;;  %3867 = vpow2.f32 %v3443_v51  ;;  %v3611_v62 = vld [vmem:[%s6343_s4 + $0x140] sm:$0xf] }
  0xd7   :  { %6610 = vst [vmem:[#allocation79_spill] sm:$0xff] %v4854_v50  ;;  %1157 = vmatpush.bf16.msrb.mxu2 %v4856_v13  ;;  %v4896_v44 = vor.u32 %v3814_v38, %v3501_v57  ;;  %v3483_v57 = vld [vmem:[%s6343_s4 + $0x40] sm:$0xf]  ;;  %3869 = vpow2.f32 %v3444_v39  ;;  %v3810_v38 = vld [vmem:[%s6343_s4 + $0x44] sm:$0xf] }
  0xd8   :  { %6611 = vst [vmem:[#allocation80_spill] sm:$0xff] %v4856_v13  ;;  %1132 = vmatpush.bf16.msrb.mxu0 %v4883_v59  ;;  %v3842_v39 = vld [vmem:[%s6343_s4 + $0x144] sm:$0xf] }
  0xd9   :  { %6612 = vst [vmem:[#allocation81_spill] sm:$0xff] %v4866_v7  ;;  %v3627_v7 = vld [vmem:[%s6343_s4 + $0x160] sm:$0xf] }
  0xda   :  { %6613 = vst [vmem:[#allocation82_spill] sm:$0xff] %v4869_v46  ;;  %v4894_v47 = vor.u32 %v3848_v32, %v3627_v7  ;;  %v4905_v46 = vor.u32 %v3846_v26, %v3629_v33  ;;  %v3812_v7 = vld [vmem:[%s6343_s4 + $0x4c] sm:$0xf0]  ;;  %v3485_v26 = vld [vmem:[%s6343_s4 + $0x50] sm:$0xf0]  ;;  %v602_v33 = vpop.f32.mrf.mxu2 }
  0xdb   :  { %6614 = vst [vmem:[#allocation83_spill] sm:$0xff] %v4883_v59  ;;  %1158 = vmatpush.bf16.msrb.mxu2 %v4896_v44  ;;  %v4921_v51 = vor.u32 %v3812_v7, %v3483_v57  ;;  %v3844_v32 = vld [vmem:[%s6343_s4 + $0x14c] sm:$0xf0]  ;;  %v4934_v41 = vor.u32 %v3810_v38, %v3485_v26  ;;  %v3613_v57 = vld [vmem:[%s6343_s4 + $0x150] sm:$0xf0]  ;;  %v603_v7 = vadd.f32 %v602_v33, %v255_v45  ;;  %v591_v59 = vpop.f32.mrf.mxu1 }
  0xdc   :  { %6615 = vst [vmem:[#allocation84_spill] sm:$0xff] %v4894_v47  ;;  %1145 = vmatpush.bf16.msrb.mxu1 %v4894_v47  ;;  %1171 = vmatpush.bf16.msrb.mxu3 %v4905_v46  ;;  %v4932_v47 = vor.u32 %v3844_v32, %v3611_v62  ;;  %v615_v1 = vpop.f32.mrf.mxu3  ;;  %v3467_v62 = vld [vmem:[%s6343_s4 + $0x20] sm:$0xf]  ;;  %v3808_v32 = vld [vmem:[%s6343_s4 + $0x2c] sm:$0xf0]  ;;  %v3868_v33 = vpop.eup %3867 }
  0xdd   :  { %6616 = vst [vmem:[#allocation85_spill] sm:$0xff] %v4896_v44  ;;  %1133 = vmatpush.bf16.msrb.mxu0 %v4921_v51  ;;  %v4943_v44 = vor.u32 %v3842_v39, %v3613_v57  ;;  %v3445_v45 = vmul.f32 -1.442695, %v603_v7  ;;  %v4957_v59 = vor.u32 %v3808_v32, %v3467_v62  ;;  %v3840_v38 = vld [vmem:[%s6343_s4 + $0x12c] sm:$0xf0]  ;;  %v3870_v32 = vpop.eup %3869 }
  0xde   :  { %6617 = vst [vmem:[#allocation86_spill] sm:$0xff] %v4905_v46  ;;  %v578_v46 = vpop.f32.mrf.mxu0  ;;  %v3806_v26 = vld [vmem:[%s6343_s4 + $0x24] sm:$0xf]  ;;  %v3469_v57 = vld [vmem:[%s6343_s4 + $0x30] sm:$0xf0] }
  0xdf   :  { %6618 = vst [vmem:[#allocation87_spill] sm:$0xff] %v4921_v51  ;;  %1159 = vmatpush.bf16.msrb.mxu2 %v4934_v41  ;;  %v3595_v46 = vld [vmem:[%s6343_s4 + $0x120] sm:$0xf]  ;;  %v3838_v7 = vld [vmem:[%s6343_s4 + $0x124] sm:$0xf]  ;;  %3871 = vpow2.f32 %v3445_v45 }
  0xe0   :  { %6619 = vst [vmem:[#allocation88_spill] sm:$0xff] %v4932_v47  ;;  %1146 = vmatpush.bf16.msrb.mxu1 %v4932_v47  ;;  %1172 = vmatpush.bf16.msrb.mxu3 %v4943_v44  ;;  %v4965_v39 = vor.u32 %v3840_v38, %v3595_v46  ;;  %v3597_v62 = vld [vmem:[%s6343_s4 + $0x130] sm:$0xf0]  ;;  %v4979_v46 = vor.u32 %v3806_v26, %v3469_v57  ;;  %v4983_v47 = vadd.f32 1.0, %v3870_v32  ;;  %v3579_v45 = vld [vmem:[%s6343_s4 + $0x100] sm:$0xf] }
  0xe1   :  { %6620 = vst [vmem:[#allocation89_spill] sm:$0xff] %v4934_v41  ;;  %1134 = vmatpush.bf16.msrb.mxu0 %v4957_v59  ;;  %v4981_v38 = vor.u32 %v3838_v7, %v3597_v62  ;;  %v3451_v41 = vld [vmem:[%s6343_s4] sm:$0xf]  ;;  %v3836_v57 = vld [vmem:[%s6343_s4 + $0x10c] sm:$0xf0] }
  0xe2   :  { %6621 = vst [vmem:[#allocation90_spill] sm:$0xff] %v4943_v44  ;;  %v4976_v44 = vadd.f32 1.0, %v3868_v33  ;;  %v3804_v33 = vld [vmem:[%s6343_s4 + $0xc] sm:$0xf0]  ;;  %v604_v26 = vpop.f32.mrf.mxu2  ;;  %v5004_v32 = vor.u32 %v3836_v57, %v3579_v45  ;;  %v284_v45 = vadd.f32 %v4645_v43, %v4670_v4  ;;  %vm651_vm4 = vweird.f32 %v4983_v47 }
  0xe3   :  { %6622 = vst [vmem:[#allocation91_spill] sm:$0xff] %v4957_v59  ;;  %1160 = vmatpush.bf16.msrb.mxu2 %v4979_v46  ;;  %v5002_v62 = vor.u32 %v3804_v33, %v3451_v41  ;;  %v3834_v26 = vld [vmem:[%s6343_s4 + $0x104] sm:$0xf]  ;;  %v3581_v41 = vld [vmem:[%s6343_s4 + $0x110] sm:$0xf0] }
  0xe4   :  { %6623 = vst [vmem:[#allocation92_spill] sm:$0xff] %v4965_v39  ;;  %1147 = vmatpush.bf16.msrb.mxu1 %v4965_v39  ;;  %3873 = vrcp.f32 %v4976_v44  ;;  %1173 = vmatpush.bf16.msrb.mxu3 %v4981_v38  ;;  %v617_v7 = vpop.f32.mrf.mxu3  ;;  %v3453_v39 = vld [vmem:[%s6343_s4 + $0x10] sm:$0xf0]  ;;  %v5024_v57 = vor.u32 %v3834_v26, %v3581_v41  ;;  %v657_v26 = vand.u32 2147483648, %v4983_v47  ;;  %vm636_vm3 = vweird.f32 %v4976_v44 }
  0xe5   :  { %6624 = vst [vmem:[#allocation93_spill] sm:$0xff] %v4979_v46  ;;  %3875 = vrcp.f32 %v4983_v47  ;;  %v3872_v33 = vpop.eup %3871  ;;  %1135 = vmatpush.bf16.msrb.mxu0 %v5002_v62  ;;  %v616_v7 = vadd.f32 %v615_v1, %v284_v45  ;;  %v655_v45 = vand.u32 2147483647, %v4983_v47 }
  0xe6   :  { %6625 = vst [vmem:[#allocation94_spill] sm:$0xff] %v4981_v38  ;;  %v3802_v38 = vld [vmem:[%s6343_s4 + $0x4] sm:$0xf] }
  0xe7   :  { %6626 = vst [vmem:[#allocation95_spill] sm:$0xff] %v5002_v62  ;;  %v5012_v46 = vor.u32 %v3802_v38, %v3453_v39  ;;  %v630_v39 = vadd.f32 1.0, %v3872_v33  ;;  %v642_v62 = vand.u32 2147483648, %v4976_v44  ;;  %v640_v33 = vand.u32 2147483647, %v4976_v44 }
  0xe8   :  { %6627 = vst [vmem:[#allocation96_spill] sm:$0xff] %v5004_v32  ;;  %1148 = vmatpush.bf16.msrb.mxu1 %v5004_v32  ;;  %1174 = vmatpush.bf16.msrb.mxu3 %v5024_v57  ;;  %vm656_vm8 = vcmp.eq.f32.partialorder %v655_v45, 8.507059e+37  ;;  %v3701_v45 = vld [vmem:[%s6343_s4 + $0x1f8] sm:$0xf0] }
  0xe9   :  { %6628 = vst [vmem:[#allocation97_spill] sm:$0xff] %v5012_v46  ;;  %1161 = vmatpush.bf16.msrb.mxu2 %v5012_v46  ;;  %3877 = vrcp.f32 %v630_v39  ;;  %v658_v46 = vor.u32 1.1754944e-38, %v657_v26  ;;  %vm641_vm7 = vcmp.eq.f32.partialorder %v640_v33, 8.507059e+37  ;;  %v672_v26 = vand.u32 2147483648, %v630_v39  ;;  %v3863_v33 = vld [vmem:[%s6343_s4 + $0x1ec] sm:$0xf] }
  0xea   :  { %6629 = vst [vmem:[#allocation98_spill] sm:$0xff] %v5024_v57  ;;  %v3874_v38 = vpop.eup %3873  ;;  %3879 = vtanh.f32 %v616_v7  ;;  %vm666_vm10 = vweird.f32 %v630_v39 }
  0xeb   :  { %v3876_v59 = vpop.eup %3875  ;;  %v632_v51 = vmul.f32 %v3874_v38, %v4976_v44  ;;  %vm637_vm1 = vweird.f32 %v3874_v38 }
  0xec   :  { %v647_v50 = vmul.f32 %v3876_v59, %v4983_v47  ;;  %vm652_vm2 = vweird.f32 %v3876_v59  ;;  %vm638_vm5 = vmor %vm636_vm3, %vm637_vm1 }
  0xed   :  { %v633_v43 = vsub.f32 1.0, %v632_v51  ;;  %v643_v51 = vor.u32 1.1754944e-38, %v642_v62  ;;  %vm653_vm6 = vmor %vm651_vm4, %vm652_vm2 }
  0xee   :  { %v648_v4 = vsub.f32 1.0, %v647_v50 }
  0xef   :  { %v634_v41 = vmul.f32 %v3874_v38, %v633_v43  ;;  %v3878_v57 = vpop.eup %3877  ;;  %v401_v43 = vld [vmem:[%s6344_s9] sm:$0xff] }
  0xf0   :  { %v649_v1 = vmul.f32 %v3876_v59, %v648_v4  ;;  %v662_v50 = vmul.f32 %v3878_v57, %v630_v39  ;;  %v3880_v13 = vpop.eup %3879  ;;  %vm667_vm9 = vweird.f32 %v3878_v57 }
  0xf1   :  { %v635_v32 = vadd.f32 %v3874_v38, %v634_v41  ;;  %vm668_vm11 = vmor %vm666_vm10, %vm667_vm9 }
  0xf2   :  { %v650_v7 = vadd.f32 %v3876_v59, %v649_v1  ;;  %v663_v61 = vsub.f32 1.0, %v662_v50  ;;  %v670_v1 = vand.u32 2147483647, %v630_v39  ;;  %v3573_v39 = vld [vmem:[%s6343_s4 + $0xf8] sm:$0xf0] }
  0xf3   :  { %v639_v4 = vsel %vm638_vm5, %v3874_v38, %v635_v32  ;;  %v673_v38 = vor.u32 1.1754944e-38, %v672_v26  ;;  %v3827_v26 = vld [vmem:[%s6343_s4 + $0xcc] sm:$0xf] }
  0xf4   :  { %v644_v6 = vsel %vm641_vm7, %v643_v51, %v639_v4  ;;  %v654_v41 = vsel %vm653_vm6, %v3876_v59, %v650_v7  ;;  %v664_v47 = vmul.f32 %v3878_v57, %v663_v61  ;;  %vm671_vm12 = vcmp.eq.f32.partialorder %v670_v1, 8.507059e+37  ;;  %v3571_v59 = vld [vmem:[%s6343_s4 + $0xe8] sm:$0xf]  ;;  %v3829_v4 = vld [vmem:[%s6343_s4 + $0xd4] sm:$0xf0] }
  0xf5   :  { %v659_v44 = vsel %vm656_vm8, %v658_v46, %v654_v41  ;;  %v678_v16 = vmul.f32 %v3880_v13, %v644_v6  ;;  %v3699_v61 = vld [vmem:[%s6343_s4 + $0x1e8] sm:$0xf]  ;;  %v3865_v13 = vld [vmem:[%s6343_s4 + $0x1f4] sm:$0xf0]  ;;  %v3831_v46 = vld [vmem:[%s6343_s4 + $0xec] sm:$0xf] }
  0xf6   :  { %v677_v10 = vmul.f32 %v659_v44, %v401_v43  ;;  %v665_v62 = vadd.f32 %v3878_v57, %v664_v47  ;;  %v5070_v7 = vor.u32 %v3865_v13, %v3699_v61  ;;  %v3555_v43 = vld [vmem:[%s6343_s4 + $0xc8] sm:$0xf]  ;;  %v5078_v41 = vor.u32 %v3831_v46, %v3573_v39  ;;  %v3557_v1 = vld [vmem:[%s6343_s4 + $0xd8] sm:$0xf0]  ;;  %v3823_v39 = vld [vmem:[%s6343_s4 + $0xac] sm:$0xf] }
  0xf7   :  { %v5080_v44 = vor.u32 %v3863_v33, %v3701_v45  ;;  %v3683_v47 = vld [vmem:[%s6343_s4 + $0x1c8] sm:$0xf]  ;;  %v5118_v61 = vor.u32 %v3827_v26, %v3557_v1  ;;  %v3541_v33 = vld [vmem:[%s6343_s4 + $0xb8] sm:$0xf0]  ;;  %v3855_v45 = vld [vmem:[%s6343_s4 + $0x1ac] sm:$0xf] }
  0xf8   :  { %v5039_v28 = vadd.f32 %v678_v16, %v677_v10  ;;  %v669_v32 = vsel %vm668_vm11, %v3878_v57, %v665_v62  ;;  %v3833_v16 = vld [vmem:[%s6343_s4 + $0xf4] sm:$0xf0]  ;;  %v3667_v46 = vld [vmem:[%s6343_s4 + $0x1a8] sm:$0xf]  ;;  %v5154_v1 = vor.u32 %v3823_v39, %v3541_v33  ;;  %v3653_v39 = vld [vmem:[%s6343_s4 + $0x198] sm:$0xf0] }
  0xf9   :  { %v674_v10 = vsel %vm671_vm12, %v673_v38, %v669_v32  ;;  %v5068_v51 = vor.u32 %v3833_v16, %v3571_v59  ;;  %v3861_v62 = vld [vmem:[%s6343_s4 + $0x1d4] sm:$0xf0]  ;;  %v3859_v32 = vld [vmem:[%s6343_s4 + $0x1cc] sm:$0xf]  ;;  %v3685_v38 = vld [vmem:[%s6343_s4 + $0x1d8] sm:$0xf0]  ;;  %v5106_v59 = vor.u32 %v3829_v4, %v3555_v43 }
  0xfa   :  { %3881 = vtanh.f32 %v5039_v28  ;;  %v5108_v16 = vor.u32 %v3861_v62, %v3683_v47  ;;  %6631 = vst [vmem:[#allocation100_spill] sm:$0xff] %v5118_v61  ;;  %v5120_v13 = vor.u32 %v3859_v32, %v3685_v38  ;;  %v3669_v43 = vld [vmem:[%s6343_s4 + $0x1b8] sm:$0xf0]  ;;  %v3523_v62 = vld [vmem:[%s6343_s4 + $0x88] sm:$0xf] }
  0xfb   :  { %v3821_v26 = vld [vmem:[%s6343_s4 + $0x94] sm:$0xf0]  ;;  %6635 = vst [vmem:[#allocation104_spill] sm:$0xff] %v5154_v1  ;;  %v5156_v32 = vor.u32 %v3855_v45, %v3669_v43  ;;  %v3651_v38 = vld [vmem:[%s6343_s4 + $0x188] sm:$0xf] }
  0xfc   :  { %6630 = vst [vmem:[#allocation99_spill] sm:$0xff] %v5108_v16  ;;  %v3313_v33 = vld [vmem:[%s6341_s8 + $0x8] sm:$0xff]  ;;  %v5181_v45 = vor.u32 %v3821_v26, %v3523_v62  ;;  %v3849_v26 = vld [vmem:[%s6343_s4 + $0x174] sm:$0xf0] }
  0xfd   :  { %6632 = vst [vmem:[#allocation101_spill] sm:$0xff] %v5120_v13  ;;  %v3635_v62 = vld [vmem:[%s6343_s4 + $0x168] sm:$0xf] }
  0xfe   :  { %6636 = vst [vmem:[#allocation105_spill] sm:$0xff] %v5156_v32 }
  0xff   :  { %6637 = vst [vmem:[#allocation106_spill] sm:$0xff] %v5181_v45 }
 0x100   :  { %v3882_v6 = vpop.eup %3881 }
 0x101   :  { %v681_v57 = vmul.f32 %v3882_v6, %v674_v10  ;;  %v3539_v6 = vld [vmem:[%s6343_s4 + $0xa8] sm:$0xf]  ;;  %v3825_v10 = vld [vmem:[%s6343_s4 + $0xb4] sm:$0xf0] }
 0x102   :  { %v5142_v4 = vor.u32 %v3825_v10, %v3539_v6  ;;  %v3853_v6 = vld [vmem:[%s6343_s4 + $0x194] sm:$0xf0]  ;;  %v3819_v10 = vld [vmem:[%s6343_s4 + $0x8c] sm:$0xf] }
 0x103   :  { %v5066_v50 = vpack.c.bf16 %v681_v57, %v681_v57  ;;  %v3857_v57 = vld [vmem:[%s6343_s4 + $0x1b4] sm:$0xf0]  ;;  %v5183_v43 = vor.u32 %v3853_v6, %v3651_v38  ;;  %v3815_v38 = vld [vmem:[%s6343_s4 + $0x6c] sm:$0xf]  ;;  %v5206_v6 = vpack.c.bf16 %v3313_v33, %v3313_v33  ;;  %v5221_v33 = vor.u32 %v3849_v26, %v3635_v62  ;;  %v3493_v26 = vld [vmem:[%s6343_s4 + $0x58] sm:$0xf0] }
 0x104   :  { %6633 = vst [vmem:[#allocation102_spill] sm:$0xff] %v5142_v4  ;;  %v5144_v47 = vor.u32 %v3857_v57, %v3667_v46  ;;  %v3525_v46 = vld [vmem:[%s6343_s4 + $0x98] sm:$0xf0]  ;;  %v3851_v57 = vld [vmem:[%s6343_s4 + $0x18c] sm:$0xf] }
 0x105   :  { %691 = vmatmul.bf16.vlgmr.msra.gmra.mxu0 %v5066_v50  ;;  %704 = vmatmul.bf16.vlgmr.msra.gmra.mxu1 %v5066_v50  ;;  %6638 = vst [vmem:[#allocation107_spill] sm:$0xff] %v5183_v43  ;;  %v3811_v62 = vld [vmem:[%s6343_s4 + $0x4c] sm:$0xf] }
 0x106   :  { %717 = vmatmul.bf16.vlgmr.msra.gmra.mxu2 %v5066_v50  ;;  %730 = vmatmul.bf16.vlgmr.msra.gmra.mxu3 %v5066_v50  ;;  %6634 = vst [vmem:[#allocation103_spill] sm:$0xff] %v5144_v47 }
 0x107   :  { %1180 = vmatpush.bf16.msra.mxu0 %v5068_v51  ;;  %1193 = vmatpush.bf16.msra.mxu1 %v5070_v7  ;;  %6642 = vst [vmem:[#allocation111_spill] sm:$0xff] %v5221_v33 }
 0x108   :  { %1206 = vmatpush.bf16.msra.mxu2 %v5078_v41  ;;  %1219 = vmatpush.bf16.msra.mxu3 %v5080_v44 }
 0x10b   :  { %1181 = vmatpush.bf16.msra.mxu0 %v5106_v59  ;;  %1194 = vmatpush.bf16.msra.mxu1 %v5108_v16  ;;  %v3817_v16 = vld [vmem:[%s6343_s4 + $0x74] sm:$0xf0] }
 0x10c   :  { %1207 = vmatpush.bf16.msra.mxu2 %v5118_v61  ;;  %1220 = vmatpush.bf16.msra.mxu3 %v5120_v13  ;;  %v3507_v13 = vld [vmem:[%s6343_s4 + $0x68] sm:$0xf]  ;;  %v5193_v61 = vor.u32 %v3819_v10, %v3525_v46  ;;  %v3509_v10 = vld [vmem:[%s6343_s4 + $0x78] sm:$0xf0]  ;;  %v3847_v46 = vld [vmem:[%s6343_s4 + $0x16c] sm:$0xf] }
 0x10e   :  { %6639 = vst [vmem:[#allocation108_spill] sm:$0xff] %v5193_v61 }
 0x10f   :  { %1182 = vmatpush.bf16.msra.mxu0 %v5142_v4  ;;  %1195 = vmatpush.bf16.msra.mxu1 %v5144_v47  ;;  %v5195_v4 = vor.u32 %v3851_v57, %v3653_v39  ;;  %v3637_v57 = vld [vmem:[%s6343_s4 + $0x178] sm:$0xf0]  ;;  %v5219_v39 = vor.u32 %v3817_v16, %v3507_v13  ;;  %v3813_v47 = vld [vmem:[%s6343_s4 + $0x54] sm:$0xf0]  ;;  %v3619_v16 = vld [vmem:[%s6343_s4 + $0x148] sm:$0xf] }
 0x110   :  { %1208 = vmatpush.bf16.msra.mxu2 %v5154_v1  ;;  %1221 = vmatpush.bf16.msra.mxu3 %v5156_v32  ;;  %v3491_v32 = vld [vmem:[%s6343_s4 + $0x48] sm:$0xf]  ;;  %v5231_v1 = vor.u32 %v3815_v38, %v3509_v10  ;;  %v3845_v13 = vld [vmem:[%s6343_s4 + $0x154] sm:$0xf0]  ;;  %v3843_v38 = vld [vmem:[%s6343_s4 + $0x14c] sm:$0xf] }
 0x111   :  { %6640 = vst [vmem:[#allocation109_spill] sm:$0xff] %v5195_v4  ;;  %v3621_v10 = vld [vmem:[%s6343_s4 + $0x158] sm:$0xf0] }
 0x112   :  { %6641 = vst [vmem:[#allocation110_spill] sm:$0xff] %v5219_v39 }
 0x113   :  { %1183 = vmatpush.bf16.msra.mxu0 %v5181_v45  ;;  %1196 = vmatpush.bf16.msra.mxu1 %v5183_v43  ;;  %6643 = vst [vmem:[#allocation112_spill] sm:$0xff] %v5231_v1  ;;  %v5233_v45 = vor.u32 %v3847_v46, %v3637_v57  ;;  %v5259_v46 = vor.u32 %v3813_v47, %v3491_v32  ;;  %v3809_v43 = vld [vmem:[%s6343_s4 + $0x34] sm:$0xf0]  ;;  %v3603_v47 = vld [vmem:[%s6343_s4 + $0x128] sm:$0xf] }
 0x114   :  { %1209 = vmatpush.bf16.msra.mxu2 %v5193_v61  ;;  %1222 = vmatpush.bf16.msra.mxu3 %v5195_v4  ;;  %v5261_v57 = vor.u32 %v3845_v13, %v3619_v16  ;;  %v3475_v4 = vld [vmem:[%s6343_s4 + $0x28] sm:$0xf]  ;;  %v5271_v61 = vor.u32 %v3811_v62, %v3493_v26  ;;  %v3841_v32 = vld [vmem:[%s6343_s4 + $0x134] sm:$0xf0]  ;;  %v3807_v16 = vld [vmem:[%s6343_s4 + $0x2c] sm:$0xf] }
 0x115   :  { %6644 = vst [vmem:[#allocation113_spill] sm:$0xff] %v5233_v45  ;;  %1136 = vmatmul.bf16.vlgmr.msrb.gmra.mxu0 %v5066_v50  ;;  %1149 = vmatmul.bf16.vlgmr.msrb.gmra.mxu1 %v5206_v6  ;;  %v3477_v13 = vld [vmem:[%s6343_s4 + $0x38] sm:$0xf0]  ;;  %v3839_v62 = vld [vmem:[%s6343_s4 + $0x12c] sm:$0xf] }
 0x116   :  { %1162 = vmatmul.bf16.vlgmr.msrb.gmra.mxu2 %v5066_v50  ;;  %1175 = vmatmul.bf16.vlgmr.msrb.gmra.mxu3 %v5206_v6  ;;  %6645 = vst [vmem:[#allocation114_spill] sm:$0xff] %v5259_v46  ;;  %v3605_v26 = vld [vmem:[%s6343_s4 + $0x138] sm:$0xf0] }
 0x117   :  { %1184 = vmatpush.bf16.msra.mxu0 %v5219_v39  ;;  %1197 = vmatpush.bf16.msra.mxu1 %v5221_v33  ;;  %6646 = vst [vmem:[#allocation115_spill] sm:$0xff] %v5261_v57  ;;  %v5273_v39 = vor.u32 %v3843_v38, %v3621_v10  ;;  %v5295_v38 = vor.u32 %v3809_v43, %v3475_v4  ;;  %v3805_v33 = vld [vmem:[%s6343_s4 + $0x14] sm:$0xf0]  ;;  %v3587_v4 = vld [vmem:[%s6343_s4 + $0x108] sm:$0xf] }
 0x118   :  { %1210 = vmatpush.bf16.msra.mxu2 %v5231_v1  ;;  %1223 = vmatpush.bf16.msra.mxu3 %v5233_v45  ;;  %v5297_v10 = vor.u32 %v3841_v32, %v3603_v47  ;;  %v3459_v45 = vld [vmem:[%s6343_s4 + $0x8] sm:$0xf]  ;;  %v5307_v1 = vor.u32 %v3807_v16, %v3477_v13  ;;  %v3837_v43 = vld [vmem:[%s6343_s4 + $0x114] sm:$0xf0]  ;;  %v3803_v47 = vld [vmem:[%s6343_s4 + $0xc] sm:$0xf] }
 0x119   :  { %6647 = vst [vmem:[#allocation116_spill] sm:$0xff] %v5273_v39  ;;  %v3461_v32 = vld [vmem:[%s6343_s4 + $0x18] sm:$0xf0]  ;;  %v3835_v16 = vld [vmem:[%s6343_s4 + $0x10c] sm:$0xf] }
 0x11a   :  { %v3589_v13 = vld [vmem:[%s6343_s4 + $0x118] sm:$0xf0] }
 0x11b   :  { %1185 = vmatpush.bf16.msra.mxu0 %v5259_v46  ;;  %1198 = vmatpush.bf16.msra.mxu1 %v5261_v57  ;;  %v5309_v46 = vor.u32 %v3839_v62, %v3605_v26  ;;  %v5331_v62 = vor.u32 %v3805_v33, %v3459_v45  ;;  %v5333_v26 = vor.u32 %v3837_v43, %v3587_v4  ;;  %v6652_v45 = vld [vmem:[#allocation73_spill] sm:$0xff]  ;;  %v6654_v33 = vld [vmem:[#allocation74_spill] sm:$0xff]  ;;  %v6655_v4 = vld [vmem:[#allocation76_spill] sm:$0xff] }
 0x11c   :  { %1211 = vmatpush.bf16.msra.mxu2 %v5271_v61  ;;  %1224 = vmatpush.bf16.msra.mxu3 %v5273_v39  ;;  %v5337_v39 = vor.u32 %v3803_v47, %v3461_v32  ;;  %v5339_v57 = vor.u32 %v3835_v16, %v3589_v13  ;;  %v6656_v43 = vld [vmem:[#allocation77_spill] sm:$0xff]  ;;  %v6657_v47 = vld [vmem:[#allocation80_spill] sm:$0xff]  ;;  %v6658_v32 = vld [vmem:[#allocation79_spill] sm:$0xff] }
 0x11d   :  { %6648 = vst [vmem:[#allocation117_spill] sm:$0xff] %v5333_v26  ;;  %v6659_v16 = vld [vmem:[#allocation82_spill] sm:$0xff]  ;;  %v6660_v13 = vld [vmem:[#allocation83_spill] sm:$0xff] }
 0x11e   :  { %6649 = vst [vmem:[#allocation118_spill] sm:$0xff] %v5337_v39 }
 0x11f   :  { %1186 = vmatpush.bf16.msra.mxu0 %v5295_v38  ;;  %1199 = vmatpush.bf16.msra.mxu1 %v5297_v10  ;;  %6650 = vst [vmem:[#allocation119_spill] sm:$0xff] %v5339_v57 }
 0x120   :  { %1212 = vmatpush.bf16.msra.mxu2 %v5307_v1  ;;  %1225 = vmatpush.bf16.msra.mxu3 %v5309_v46 }
 0x123   :  { %1187 = vmatpush.bf16.msra.mxu0 %v5331_v62  ;;  %1200 = vmatpush.bf16.msra.mxu1 %v5333_v26 }
 0x124   :  { %1213 = vmatpush.bf16.msra.mxu2 %v5337_v39  ;;  %1226 = vmatpush.bf16.msra.mxu3 %v5339_v57 }
 0x126   :  { %1188 = vmatmul.bf16.vlgmr.msra.gmra.mxu0 %v5066_v50  ;;  %1201 = vmatmul.bf16.vlgmr.msra.gmra.mxu1 %v5206_v6 }
 0x127   :  { %1296 = vmatpush.bf16.msrb.mxu0 %v4303_v53  ;;  %1214 = vmatmul.bf16.vlgmr.msra.gmra.mxu2 %v5066_v50  ;;  %v6651_v50 = vld [vmem:[#allocation70_spill] sm:$0xff] }
 0x128   :  { %1322 = vmatpush.bf16.msrb.mxu2 %v4331_v63  ;;  %1227 = vmatmul.bf16.vlgmr.msra.gmra.mxu3 %v5206_v6  ;;  %v6653_v6 = vld [vmem:[#allocation75_spill] sm:$0xff] }
 0x129   :  { %1309 = vmatpush.bf16.msrb.mxu1 %v4311_v56  ;;  %1335 = vmatpush.bf16.msrb.mxu3 %v4342_v3 }
 0x12b   :  { %1297 = vmatpush.bf16.msrb.mxu0 %v4334_v0 }
 0x12c   :  { %1323 = vmatpush.bf16.msrb.mxu2 %v4370_v11 }
 0x12d   :  { %1310 = vmatpush.bf16.msrb.mxu1 %v4349_v5  ;;  %1336 = vmatpush.bf16.msrb.mxu3 %v4382_v15 }
 0x12f   :  { %1298 = vmatpush.bf16.msrb.mxu0 %v4374_v12 }
 0x130   :  { %1324 = vmatpush.bf16.msrb.mxu2 %v4406_v23 }
 0x131   :  { %1311 = vmatpush.bf16.msrb.mxu1 %v4388_v17  ;;  %1337 = vmatpush.bf16.msrb.mxu3 %v4418_v27 }
 0x133   :  { %1299 = vmatpush.bf16.msrb.mxu0 %v4410_v24 }
 0x134   :  { %1325 = vmatpush.bf16.msrb.mxu2 %v4445_v36 }
 0x135   :  { %1312 = vmatpush.bf16.msrb.mxu1 %v4424_v29  ;;  %1338 = vmatpush.bf16.msrb.mxu3 %v4457_v40 }
 0x137   :  { %1300 = vmatpush.bf16.msrb.mxu0 %v4449_v37 }
 0x138   :  { %1326 = vmatpush.bf16.msrb.mxu2 %v4481_v48 }
 0x139   :  { %1313 = vmatpush.bf16.msrb.mxu1 %v4463_v42  ;;  %1339 = vmatpush.bf16.msrb.mxu3 %v4493_v52 }
 0x13b   :  { %1301 = vmatpush.bf16.msrb.mxu0 %v4485_v49 }
 0x13c   :  { %1327 = vmatpush.bf16.msrb.mxu2 %v4503_v55 }
 0x13d   :  { %1314 = vmatpush.bf16.msrb.mxu1 %v4497_v54  ;;  %1340 = vmatpush.bf16.msrb.mxu3 %v4539_v8 }
 0x13f   :  { %1302 = vmatpush.bf16.msrb.mxu0 %v4516_v60 }
 0x140   :  { %1328 = vmatpush.bf16.msrb.mxu2 %v4551_v14 }
 0x141   :  { %1315 = vmatpush.bf16.msrb.mxu1 %v4528_v2  ;;  %1341 = vmatpush.bf16.msrb.mxu3 %v4563_v20 }
 0x143   :  { %1303 = vmatpush.bf16.msrb.mxu0 %v4561_v19 }
 0x144   :  { %1329 = vmatpush.bf16.msrb.mxu2 %v4581_v30 }
 0x145   :  { %1316 = vmatpush.bf16.msrb.mxu1 %v4572_v25  ;;  %1342 = vmatpush.bf16.msrb.mxu3 %v4585_v31  ;;  %v6681_v25 = vld [vmem:[#allocation38_spill] sm:$0xff] }
 0x147   :  { %1412 = vmatpush.bf16.msra.mxu0 %v4721_v9 }
 0x148   :  { %1438 = vmatpush.bf16.msra.mxu2 %v4734_v34 }
 0x149   :  { %1425 = vmatpush.bf16.msra.mxu1 %v4732_v58  ;;  %1451 = vmatpush.bf16.msra.mxu3 %v4743_v35 }
 0x14b   :  { %1413 = vmatpush.bf16.msra.mxu0 %v4757_v22  ;;  %v6679_v22 = vld [vmem:[#allocation36_spill] sm:$0xff] }
 0x14c   :  { %1439 = vmatpush.bf16.msra.mxu2 %v4770_v18 }
 0x14d   :  { %1426 = vmatpush.bf16.msra.mxu1 %v4768_v21  ;;  %1452 = vmatpush.bf16.msra.mxu3 %v6651_v50  ;;  %v6661_v21 = vld [vmem:[#allocation85_spill] sm:$0xff]  ;;  %v6662_v50 = vld [vmem:[#allocation84_spill] sm:$0xff] }
 0x14f   :  { %1414 = vmatpush.bf16.msra.mxu0 %v6652_v45  ;;  %v6663_v45 = vld [vmem:[#allocation86_spill] sm:$0xff] }
 0x150   :  { %1440 = vmatpush.bf16.msra.mxu2 %v6653_v6  ;;  %v6664_v6 = vld [vmem:[#allocation87_spill] sm:$0xff] }
 0x151   :  { %1427 = vmatpush.bf16.msra.mxu1 %v6654_v33  ;;  %1453 = vmatpush.bf16.msra.mxu3 %v6655_v4  ;;  %v6665_v33 = vld [vmem:[#allocation89_spill] sm:$0xff]  ;;  %v6666_v4 = vld [vmem:[#allocation88_spill] sm:$0xff] }
 0x153   :  { %1415 = vmatpush.bf16.msra.mxu0 %v6656_v43  ;;  %v6667_v43 = vld [vmem:[#allocation90_spill] sm:$0xff] }
 0x154   :  { %1441 = vmatpush.bf16.msra.mxu2 %v6657_v47  ;;  %v6668_v47 = vld [vmem:[#allocation91_spill] sm:$0xff] }
 0x155   :  { %1428 = vmatpush.bf16.msra.mxu1 %v6658_v32  ;;  %1454 = vmatpush.bf16.msra.mxu3 %v6659_v16  ;;  %v6669_v32 = vld [vmem:[#allocation93_spill] sm:$0xff]  ;;  %v6670_v16 = vld [vmem:[#allocation92_spill] sm:$0xff] }
 0x157   :  { %1416 = vmatpush.bf16.msra.mxu0 %v6660_v13  ;;  %v6671_v13 = vld [vmem:[#allocation94_spill] sm:$0xff] }
 0x158   :  { %1442 = vmatpush.bf16.msra.mxu2 %v6661_v21  ;;  %v6672_v21 = vld [vmem:[#allocation95_spill] sm:$0xff] }
 0x159   :  { %1429 = vmatpush.bf16.msra.mxu1 %v6662_v50  ;;  %1455 = vmatpush.bf16.msra.mxu3 %v6663_v45  ;;  %v6673_v50 = vld [vmem:[#allocation97_spill] sm:$0xff]  ;;  %v6674_v45 = vld [vmem:[#allocation96_spill] sm:$0xff] }
 0x15b   :  { %1417 = vmatpush.bf16.msra.mxu0 %v6664_v6  ;;  %v6675_v6 = vld [vmem:[#allocation98_spill] sm:$0xff] }
 0x15c   :  { %1443 = vmatpush.bf16.msra.mxu2 %v6665_v33  ;;  %v6676_v33 = vld [vmem:[#allocation37_spill] sm:$0xff] }
 0x15d   :  { %1430 = vmatpush.bf16.msra.mxu1 %v6666_v4  ;;  %1456 = vmatpush.bf16.msra.mxu3 %v6667_v43  ;;  %v6677_v4 = vld [vmem:[#allocation35_spill] sm:$0xff] }
 0x15e   :  { %v199_v18 = vadd.f32 %v6677_v4, %v6676_v33  ;;  %v6678_v43 = vld [vmem:[#allocation39_spill] sm:$0xff] }
 0x15f   :  { %1418 = vmatpush.bf16.msra.mxu0 %v6668_v47  ;;  %v228_v47 = vadd.f32 %v6679_v22, %v6678_v43  ;;  %v5422_v22 = vld [vmem:[%s6345_s5] sm:$0xf] }
 0x160   :  { %1444 = vmatpush.bf16.msra.mxu2 %v6669_v32  ;;  %v5433_v43 = vperm.slane %v5422_v22, 1 }
 0x161   :  { %1431 = vmatpush.bf16.msra.mxu1 %v6670_v16  ;;  %1457 = vmatpush.bf16.msra.mxu3 %v6671_v13 }
 0x162   :  { %6685 = vst [vmem:[#allocation36_spill] sm:$0xff] %v5433_v43 }
 0x163   :  { %1419 = vmatpush.bf16.msra.mxu0 %v6672_v21  ;;  %v6680_v21 = vld [vmem:[#allocation43_spill] sm:$0xff] }
 0x164   :  { %1445 = vmatpush.bf16.msra.mxu2 %v6673_v50  ;;  %v257_v50 = vadd.f32 %v6681_v25, %v6680_v21 }
 0x165   :  { %1432 = vmatpush.bf16.msra.mxu1 %v6674_v45  ;;  %1458 = vmatpush.bf16.msra.mxu3 %v6675_v6 }
 0x182   :  { %v692_v35 = vpop.f32.mrf.mxu0  ;;  %v705_v32 = vpop.f32.mrf.mxu1 }
 0x183   :  { %v693_v58 = vadd.f32 %v692_v35, %v199_v18  ;;  %v706_v16 = vadd.f32 %v705_v32, %v228_v47  ;;  %v5425_v47 = vperm.slane %v5422_v22, 0 }
 0x185   :  { %v3446_v31 = vmul.f32 -1.442695, %v693_v58  ;;  %v3447_v13 = vmul.f32 -1.442695, %v706_v16  ;;  %6682 = vst [vmem:[#allocation35_spill] sm:$0xff] %v5425_v47 }
 0x187   :  { %3883 = vpow2.f32 %v3446_v31 }
 0x188   :  { %3885 = vpow2.f32 %v3447_v13 }
 0x189   :  { %v718_v45 = vpop.f32.mrf.mxu2  ;;  %v731_v34 = vpop.f32.mrf.mxu3 }
 0x18a   :  { %v719_v6 = vadd.f32 %v718_v45, %v257_v50  ;;  %v694_v9 = vpop.f32.mrf.mxu0  ;;  %v707_v30 = vpop.f32.mrf.mxu1  ;;  %v6683_v45 = vld [vmem:[#allocation44_spill] sm:$0xff] }
 0x18c   :  { %v3448_v4 = vmul.f32 -1.442695, %v719_v6  ;;  %v6684_v6 = vld [vmem:[#allocation40_spill] sm:$0xff] }
 0x18d   :  { %v3884_v18 = vpop.eup %3883  ;;  %v286_v32 = vadd.f32 %v6684_v6, %v6683_v45 }
 0x18e   :  { %v3886_v35 = vpop.eup %3885  ;;  %v744_v58 = vadd.f32 1.0, %v3884_v18  ;;  %3887 = vpow2.f32 %v3448_v4 }
 0x18f   :  { %v745_v31 = vadd.f32 1.0, %v3886_v35  ;;  %v732_v18 = vadd.f32 %v731_v34, %v286_v32 }
 0x190   :  { %3889 = vrcp.f32 %v744_v58  ;;  %v756_v20 = vand.u32 2147483647, %v744_v58  ;;  %v758_v2 = vand.u32 2147483648, %v744_v58  ;;  %vm752_vm0 = vweird.f32 %v744_v58 }
 0x191   :  { %3891 = vrcp.f32 %v745_v31  ;;  %v720_v25 = vpop.f32.mrf.mxu2  ;;  %v733_v50 = vpop.f32.mrf.mxu3  ;;  %v771_v14 = vand.u32 2147483647, %v745_v31  ;;  %vm767_vm15 = vweird.f32 %v745_v31 }
 0x192   :  { %v1137_v9 = vpop.f32.mrf.mxu0  ;;  %v1150_v30 = vpop.f32.mrf.mxu1  ;;  %vm757_vm3 = vcmp.eq.f32.partialorder %v756_v20, 8.507059e+37 }
 0x193   :  { %v1138_v16 = vadd.f32 %v1137_v9, %v5425_v47  ;;  %vm772_vm4 = vcmp.eq.f32.partialorder %v771_v14, 8.507059e+37 }
 0x194   :  { %v3888_v13 = vpop.eup %3887 }
 0x195   :  { %v5430_v21 = vadd.f32 1.0, %v3888_v13  ;;  %v1151_v4 = vadd.f32 %v1150_v30, %v1138_v16  ;;  %v773_v13 = vand.u32 2147483648, %v745_v31 }
 0x196   :  { %v3890_v35 = vpop.eup %3889 }
 0x197   :  { %v3892_v33 = vpop.eup %3891  ;;  %v748_v19 = vmul.f32 %v3890_v35, %v744_v58  ;;  %3893 = vrcp.f32 %v5430_v21  ;;  %v3705_v6 = vmul.f32 -1.442695, %v1151_v4  ;;  %vm753_vm13 = vweird.f32 %v3890_v35 }
 0x198   :  { %v763_v25 = vmul.f32 %v3892_v33, %v745_v31  ;;  %3895 = vtanh.f32 %v732_v18  ;;  %vm768_vm14 = vweird.f32 %v3892_v33  ;;  %v5438_v4 = vperm.slane %v5422_v22, 2  ;;  %vm754_vm1 = vmor %vm752_vm0, %vm753_vm13 }
 0x199   :  { %v749_v50 = vsub.f32 1.0, %v748_v19  ;;  %v1163_v45 = vpop.f32.mrf.mxu2  ;;  %v1176_v9 = vpop.f32.mrf.mxu3  ;;  %3897 = vpow2.f32 %v3705_v6  ;;  %vm769_vm2 = vmor %vm767_vm15, %vm768_vm14  ;;  %vm782_vm6 = vweird.f32 %v5430_v21 }
 0x19a   :  { %v764_v47 = vsub.f32 1.0, %v763_v25  ;;  %v1164_v34 = vadd.f32 %v1163_v45, %v5433_v43  ;;  %v1139_v30 = vpop.f32.mrf.mxu0  ;;  %v1152_v32 = vpop.f32.mrf.mxu1  ;;  %v759_v45 = vor.u32 1.1754944e-38, %v758_v2  ;;  %v774_v43 = vor.u32 1.1754944e-38, %v773_v13 }
 0x19b   :  { %v750_v16 = vmul.f32 %v3890_v35, %v749_v50 }
 0x19c   :  { %v765_v60 = vmul.f32 %v3892_v33, %v764_v47  ;;  %v1177_v8 = vadd.f32 %v1176_v9, %v1164_v34 }
 0x19d   :  { %v3894_v19 = vpop.eup %3893  ;;  %v751_v18 = vadd.f32 %v3890_v35, %v750_v16 }
 0x19e   :  { %v778_v25 = vmul.f32 %v3894_v19, %v5430_v21  ;;  %v766_v30 = vadd.f32 %v3892_v33, %v765_v60  ;;  %v3706_v32 = vmul.f32 -1.442695, %v1177_v8  ;;  %v3896_v50 = vpop.eup %3895  ;;  %vm783_vm5 = vweird.f32 %v3894_v19 }
 0x19f   :  { %v755_v6 = vsel %vm754_vm1, %v3890_v35, %v751_v18  ;;  %v3898_v58 = vpop.eup %3897  ;;  %v5455_v35 = vperm.slane %v5422_v22, 3  ;;  %vm5457_vm7 = vmor %vm782_vm6, %vm783_vm5 }
 0x1a0   :  { %v779_v47 = vsub.f32 1.0, %v778_v25  ;;  %v760_v9 = vsel %vm757_vm3, %v759_v45, %v755_v6  ;;  %v770_v31 = vsel %vm769_vm2, %v3892_v33, %v766_v30  ;;  %3899 = vpow2.f32 %v3706_v32 }
 0x1a1   :  { %v775_v34 = vsel %vm772_vm4, %v774_v43, %v770_v31  ;;  %v794_v16 = vmul.f32 %v3896_v50, %v760_v9  ;;  %v1165_v54 = vpop.f32.mrf.mxu2  ;;  %v1178_v55 = vpop.f32.mrf.mxu3  ;;  %v5442_v60 = vadd.f32 1.0, %v3898_v58  ;;  %v788_v43 = vand.u32 2147483648, %v5430_v21 }
 0x1a2   :  { %v780_v49 = vmul.f32 %v3894_v19, %v779_v47  ;;  %v793_v2 = vmul.f32 %v775_v34, %v5039_v28  ;;  %v786_v55 = vand.u32 2147483647, %v5430_v21 }
 0x1a3   :  { %v1189_v8 = vpop.f32.mrf.mxu0  ;;  %v1202_v52 = vpop.f32.mrf.mxu1  ;;  %3901 = vrcp.f32 %v5442_v60  ;;  %v789_v45 = vor.u32 1.1754944e-38, %v788_v43  ;;  %v1255_v43 = vand.u32 2147483648, %v5442_v60  ;;  %vm1249_vm10 = vweird.f32 %v5442_v60 }
 0x1a4   :  { %v5444_v13 = vadd.f32 %v794_v16, %v793_v2  ;;  %v1190_v14 = vadd.f32 %v1189_v8, %v5438_v4  ;;  %v781_v20 = vadd.f32 %v3894_v19, %v780_v49  ;;  %vm787_vm8 = vcmp.eq.f32.partialorder %v786_v55, 8.507059e+37 }
 0x1a5   :  { %v1253_v55 = vand.u32 2147483647, %v5442_v60 }
 0x1a6   :  { %v3900_v33 = vpop.eup %3899  ;;  %3903 = vtanh.f32 %v5444_v13  ;;  %v1203_v54 = vadd.f32 %v1202_v52, %v1190_v14  ;;  %v785_v25 = vsel %vm5457_vm7, %v3894_v19, %v781_v20 }
 0x1a7   :  { %v5452_v28 = vadd.f32 1.0, %v3900_v33  ;;  %v790_v9 = vsel %vm787_vm8, %v789_v45, %v785_v25  ;;  %vm1254_vm14 = vcmp.eq.f32.partialorder %v1253_v55, 8.507059e+37 }
 0x1a8   :  { %v3707_v49 = vmul.f32 -1.442695, %v1203_v54 }
 0x1a9   :  { %3905 = vrcp.f32 %v5452_v28  ;;  %v3902_v52 = vpop.eup %3901  ;;  %v1270_v25 = vand.u32 2147483648, %v5452_v28  ;;  %vm1264_vm13 = vweird.f32 %v5452_v28 }
 0x1aa   :  { %3907 = vpow2.f32 %v3707_v49  ;;  %v1215_v30 = vpop.f32.mrf.mxu2  ;;  %v1245_v32 = vmul.f32 %v3902_v52, %v5442_v60  ;;  %vm1250_vm9 = vweird.f32 %v3902_v52 }
 0x1ab   :  { %v1228_v21 = vpop.f32.mrf.mxu3  ;;  %v1216_v22 = vadd.f32 %v1215_v30, %v5455_v35  ;;  %v1191_v50 = vpop.f32.mrf.mxu0  ;;  %vm5481_vm11 = vmor %vm1249_vm10, %vm1250_vm9 }
 0x1ac   :  { %v1204_v6 = vpop.f32.mrf.mxu1  ;;  %v3904_v47 = vpop.eup %3903  ;;  %v1246_v58 = vsub.f32 1.0, %v1245_v32  ;;  %v1256_v32 = vor.u32 1.1754944e-38, %v1255_v43  ;;  %v6693_v43 = vld [vmem:[#allocation102_spill] sm:$0xff] }
 0x1ad   :  { %v797_v31 = vmul.f32 %v3904_v47, %v790_v9  ;;  %v1229_v34 = vadd.f32 %v1228_v21, %v1216_v22  ;;  %v1268_v21 = vand.u32 2147483647, %v5452_v28  ;;  %v1271_v6 = vor.u32 1.1754944e-38, %v1270_v25  ;;  %v3314_v47 = vld [vmem:[%s6344_s9 + $0x8] sm:$0xff] }
 0x1ae   :  { %v1247_v2 = vmul.f32 %v3902_v52, %v1246_v58  ;;  %v6691_v58 = vld [vmem:[#allocation99_spill] sm:$0xff] }
 0x1af   :  { %v3906_v19 = vpop.eup %3905  ;;  %v5466_v16 = vpack.c.bf16 %v797_v31, %v797_v31  ;;  %3909 = vtanh.f32 %v1229_v34  ;;  %vm1269_vm0 = vcmp.eq.f32.partialorder %v1268_v21, 8.507059e+37  ;;  %v6692_v34 = vld [vmem:[#allocation101_spill] sm:$0xff]  ;;  %v6698_v21 = vld [vmem:[#allocation108_spill] sm:$0xff] }
 0x1b0   :  { %v3908_v8 = vpop.eup %3907  ;;  %v1260_v14 = vmul.f32 %v3906_v19, %v5452_v28  ;;  %v1248_v33 = vadd.f32 %v3902_v52, %v1247_v2  ;;  %vm1265_vm12 = vweird.f32 %v3906_v19 }
 0x1b1   :  { %v5469_v20 = vadd.f32 1.0, %v3908_v8  ;;  %1304 = vmatmul.bf16.vlgmr.msrb.gmra.mxu0 %v5466_v16  ;;  %1317 = vmatmul.bf16.vlgmr.msrb.gmra.mxu1 %v5466_v16  ;;  %vm1266_vm15 = vmor %vm1264_vm13, %vm1265_vm12 }
 0x1b2   :  { %v1261_v54 = vsub.f32 1.0, %v1260_v14  ;;  %v1217_v18 = vpop.f32.mrf.mxu2  ;;  %1330 = vmatmul.bf16.vlgmr.msrb.gmra.mxu2 %v5466_v16  ;;  %1343 = vmatmul.bf16.vlgmr.msrb.gmra.mxu3 %v5466_v16  ;;  %v1252_v30 = vsel %vm5481_vm11, %v3902_v52, %v1248_v33  ;;  %v6690_v52 = vld [vmem:[#allocation100_spill] sm:$0xff] }
 0x1b3   :  { %v1230_v49 = vpop.f32.mrf.mxu3  ;;  %3911 = vrcp.f32 %v5469_v20  ;;  %1464 = vmatpush.bf16.msrb.mxu0 %v5068_v51  ;;  %1490 = vmatpush.bf16.msrb.mxu2 %v5078_v41  ;;  %v1257_v9 = vsel %vm1254_vm14, %v1256_v32, %v1252_v30  ;;  %v1285_v25 = vand.u32 2147483648, %v5469_v20  ;;  %v6697_v30 = vld [vmem:[#allocation106_spill] sm:$0xff]  ;;  %v6699_v32 = vld [vmem:[#allocation107_spill] sm:$0xff]  ;;  %vm1279_vm2 = vweird.f32 %v5469_v20 }
 0x1b4   :  { %v1262_v60 = vmul.f32 %v3906_v19, %v1261_v54  ;;  %1477 = vmatpush.bf16.msrb.mxu1 %v5070_v7  ;;  %1503 = vmatpush.bf16.msrb.mxu3 %v5080_v44  ;;  %v6694_v54 = vld [vmem:[#allocation104_spill] sm:$0xff]  ;;  %v6695_v49 = vld [vmem:[#allocation103_spill] sm:$0xff] }
 0x1b5   :  { %v3910_v50 = vpop.eup %3909 }
 0x1b6   :  { %v1263_v22 = vadd.f32 %v3906_v19, %v1262_v60  ;;  %v1291_v33 = vmul.f32 %v3910_v50, %v1257_v9  ;;  %v1283_v60 = vand.u32 2147483647, %v5469_v20  ;;  %v6701_v9 = vld [vmem:[#allocation110_spill] sm:$0xff] }
 0x1b7   :  { %1465 = vmatpush.bf16.msrb.mxu0 %v5106_v59  ;;  %1491 = vmatpush.bf16.msrb.mxu2 %v6690_v52 }
 0x1b8   :  { %v1267_v31 = vsel %vm1266_vm15, %v3906_v19, %v1263_v22  ;;  %1478 = vmatpush.bf16.msrb.mxu1 %v6691_v58  ;;  %1504 = vmatpush.bf16.msrb.mxu3 %v6692_v34  ;;  %v6696_v19 = vld [vmem:[#allocation105_spill] sm:$0xff]  ;;  %vm1284_vm4 = vcmp.eq.f32.partialorder %v1283_v60, 8.507059e+37  ;;  %v6709_v60 = vld [vmem:[#allocation22_spill] sm:$0xff] }
 0x1b9   :  { %v3912_v28 = vpop.eup %3911  ;;  %v1272_v2 = vsel %vm1269_vm0, %v1271_v6, %v1267_v31  ;;  %v6700_v22 = vld [vmem:[#allocation109_spill] sm:$0xff]  ;;  %v1286_v6 = vor.u32 1.1754944e-38, %v1285_v25  ;;  %v6702_v31 = vld [vmem:[#allocation112_spill] sm:$0xff] }
 0x1ba   :  { %v1275_v8 = vmul.f32 %v3912_v28, %v5469_v20  ;;  %v1290_v14 = vmul.f32 %v3314_v47, %v1272_v2  ;;  %vm1280_vm1 = vweird.f32 %v3912_v28  ;;  %v6705_v20 = vld [vmem:[#allocation114_spill] sm:$0xff] }
 0x1bb   :  { %1466 = vmatpush.bf16.msrb.mxu0 %v6693_v43  ;;  %1492 = vmatpush.bf16.msrb.mxu2 %v6694_v54  ;;  %vm1281_vm3 = vmor %vm1279_vm2, %vm1280_vm1 }
 0x1bc   :  { %v1276_v55 = vsub.f32 1.0, %v1275_v8  ;;  %v5503_v18 = vadd.f32 %v1291_v33, %v1290_v14  ;;  %1479 = vmatpush.bf16.msrb.mxu1 %v6695_v49  ;;  %1505 = vmatpush.bf16.msrb.mxu3 %v6696_v19  ;;  %v6703_v14 = vld [vmem:[#allocation111_spill] sm:$0xff]  ;;  %v6704_v33 = vld [vmem:[#allocation113_spill] sm:$0xff] }
 0x1be   :  { %3913 = vtanh.f32 %v5503_v18  ;;  %v1277_v45 = vmul.f32 %v3912_v28, %v1276_v55 }
 0x1bf   :  { %1467 = vmatpush.bf16.msrb.mxu0 %v6697_v30  ;;  %1493 = vmatpush.bf16.msrb.mxu2 %v6698_v21 }
 0x1c0   :  { %1480 = vmatpush.bf16.msrb.mxu1 %v6699_v32  ;;  %1506 = vmatpush.bf16.msrb.mxu3 %v6700_v22  ;;  %v1278_v50 = vadd.f32 %v3912_v28, %v1277_v45  ;;  %v6706_v45 = vld [vmem:[#allocation115_spill] sm:$0xff] }
 0x1c1   :  { %1420 = vmatmul.bf16.vlgmr.msra.gmra.mxu0 %v5466_v16 }
 0x1c2   :  { %1446 = vmatmul.bf16.vlgmr.msra.gmra.mxu2 %v5466_v16  ;;  %v1282_v47 = vsel %vm1281_vm3, %v3912_v28, %v1278_v50  ;;  %v6707_v28 = vld [vmem:[#allocation116_spill] sm:$0xff]  ;;  %v6710_v50 = vld [vmem:[#allocation25_spill] sm:$0xff] }
 0x1c3   :  { %1468 = vmatpush.bf16.msrb.mxu0 %v6701_v9  ;;  %1494 = vmatpush.bf16.msrb.mxu2 %v6702_v31  ;;  %v1287_v2 = vsel %vm1284_vm4, %v1286_v6, %v1282_v47  ;;  %v6711_v6 = vld [vmem:[#allocation24_spill] sm:$0xff] }
 0x1c4   :  { %v3914_v8 = vpop.eup %3913  ;;  %1481 = vmatpush.bf16.msrb.mxu1 %v6703_v14  ;;  %1507 = vmatpush.bf16.msrb.mxu3 %v6704_v33  ;;  %v6712_v47 = vld [vmem:[#allocation28_spill] sm:$0xff] }
 0x1c5   :  { %v1294_v55 = vmul.f32 %v3914_v8, %v1287_v2  ;;  %v6713_v2 = vld [vmem:[#allocation26_spill] sm:$0xff]  ;;  %v6714_v8 = vld [vmem:[#allocation29_spill] sm:$0xff] }
 0x1c7   :  { %1469 = vmatpush.bf16.msrb.mxu0 %v6705_v20  ;;  %1495 = vmatpush.bf16.msrb.mxu2 %v5271_v61  ;;  %v1411_v25 = vpack.c.bf16 %v1294_v55, %v1294_v55  ;;  %v6715_v55 = vld [vmem:[#allocation27_spill] sm:$0xff] }
 0x1c8   :  { %1482 = vmatpush.bf16.msrb.mxu1 %v6706_v45  ;;  %1508 = vmatpush.bf16.msrb.mxu3 %v6707_v28 }
 0x1c9   :  { %1433 = vmatmul.bf16.vlgmr.msra.gmra.mxu1 %v1411_v25  ;;  %1459 = vmatmul.bf16.vlgmr.msra.gmra.mxu3 %v1411_v25 }
 0x1cb   :  { %1470 = vmatpush.bf16.msrb.mxu0 %v5295_v38  ;;  %1496 = vmatpush.bf16.msrb.mxu2 %v5307_v1 }
 0x1cc   :  { %1483 = vmatpush.bf16.msrb.mxu1 %v5297_v10  ;;  %1509 = vmatpush.bf16.msrb.mxu3 %v5309_v46 }
 0x1cf   :  { %1471 = vmatpush.bf16.msrb.mxu0 %v5331_v62  ;;  %1497 = vmatpush.bf16.msrb.mxu2 %v5337_v39 }
 0x1d0   :  { %1484 = vmatpush.bf16.msrb.mxu1 %v5333_v26  ;;  %1510 = vmatpush.bf16.msrb.mxu3 %v5339_v57 }
 0x1d2   :  { %1472 = vmatmul.bf16.vlgmr.msrb.gmra.mxu0 %v5466_v16  ;;  %1498 = vmatmul.bf16.vlgmr.msrb.gmra.mxu2 %v5466_v16  ;;  %v6708_v16 = vld [vmem:[#allocation23_spill] sm:$0xff] }
 0x1d3   :  { %1580 = vmatpush.bf16.msra.mxu0 %v4303_v53  ;;  %1606 = vmatpush.bf16.msra.mxu2 %v4331_v63 }
 0x1d4   :  { %1593 = vmatpush.bf16.msra.mxu1 %v4311_v56  ;;  %1619 = vmatpush.bf16.msra.mxu3 %v4342_v3 }
 0x1d7   :  { %1581 = vmatpush.bf16.msra.mxu0 %v4334_v0  ;;  %1607 = vmatpush.bf16.msra.mxu2 %v4370_v11 }
 0x1d8   :  { %1594 = vmatpush.bf16.msra.mxu1 %v4349_v5  ;;  %1620 = vmatpush.bf16.msra.mxu3 %v4382_v15 }
 0x1d9   :  { %1485 = vmatmul.bf16.vlgmr.msrb.gmra.mxu1 %v1411_v25  ;;  %1511 = vmatmul.bf16.vlgmr.msrb.gmra.mxu3 %v1411_v25  ;;  %v6716_v25 = vld [vmem:[#allocation31_spill] sm:$0xff] }
 0x1db   :  { %1582 = vmatpush.bf16.msra.mxu0 %v4374_v12  ;;  %1608 = vmatpush.bf16.msra.mxu2 %v4406_v23 }
 0x1dc   :  { %1595 = vmatpush.bf16.msra.mxu1 %v4388_v17  ;;  %1621 = vmatpush.bf16.msra.mxu3 %v4418_v27 }
 0x1df   :  { %1583 = vmatpush.bf16.msra.mxu0 %v4410_v24  ;;  %1609 = vmatpush.bf16.msra.mxu2 %v4445_v36  ;;  %v6755_v36 = vld [vmem:[#allocation45_spill] sm:$0xff] }
 0x1e0   :  { %1596 = vmatpush.bf16.msra.mxu1 %v4424_v29  ;;  %1622 = vmatpush.bf16.msra.mxu3 %v4457_v40  ;;  %v6754_v40 = vld [vmem:[#allocation42_spill] sm:$0xff] }
 0x1e3   :  { %1584 = vmatpush.bf16.msra.mxu0 %v4449_v37  ;;  %1610 = vmatpush.bf16.msra.mxu2 %v4481_v48  ;;  %v6717_v48 = vld [vmem:[#allocation30_spill] sm:$0xff]  ;;  %v6753_v37 = vld [vmem:[#allocation41_spill] sm:$0xff] }
 0x1e4   :  { %1597 = vmatpush.bf16.msra.mxu1 %v4463_v42  ;;  %1623 = vmatpush.bf16.msra.mxu3 %v6708_v16  ;;  %v6718_v42 = vld [vmem:[#allocation33_spill] sm:$0xff] }
 0x1e5   :  { %v6719_v16 = vld [vmem:[#allocation61_spill] sm:$0xff] }
 0x1e7   :  { %1585 = vmatpush.bf16.msra.mxu0 %v6709_v60  ;;  %1611 = vmatpush.bf16.msra.mxu2 %v6710_v50  ;;  %v6720_v60 = vld [vmem:[#allocation63_spill] sm:$0xff]  ;;  %v6721_v50 = vld [vmem:[#allocation32_spill] sm:$0xff] }
 0x1e8   :  { %1598 = vmatpush.bf16.msra.mxu1 %v6711_v6  ;;  %1624 = vmatpush.bf16.msra.mxu3 %v6712_v47  ;;  %v6722_v6 = vld [vmem:[#allocation34_spill] sm:$0xff] }
 0x1e9   :  { %v6723_v47 = vld [vmem:[#allocation62_spill] sm:$0xff] }
 0x1eb   :  { %1586 = vmatpush.bf16.msra.mxu0 %v6713_v2  ;;  %1612 = vmatpush.bf16.msra.mxu2 %v6714_v8  ;;  %v6724_v2 = vld [vmem:[#allocation64_spill] sm:$0xff]  ;;  %v6725_v8 = vld [vmem:[#allocation65_spill] sm:$0xff] }
 0x1ec   :  { %1599 = vmatpush.bf16.msra.mxu1 %v6715_v55  ;;  %1625 = vmatpush.bf16.msra.mxu3 %v6716_v25  ;;  %v6726_v55 = vld [vmem:[#allocation67_spill] sm:$0xff]  ;;  %v6727_v25 = vld [vmem:[#allocation66_spill] sm:$0xff] }
 0x1ef   :  { %1587 = vmatpush.bf16.msra.mxu0 %v6717_v48  ;;  %1613 = vmatpush.bf16.msra.mxu2 %v6718_v42  ;;  %v6728_v48 = vld [vmem:[#allocation70_spill] sm:$0xff]  ;;  %v6729_v42 = vld [vmem:[#allocation73_spill] sm:$0xff] }
 0x1f0   :  { %1600 = vmatpush.bf16.msra.mxu1 %v6721_v50  ;;  %1626 = vmatpush.bf16.msra.mxu3 %v6722_v6  ;;  %v6732_v50 = vld [vmem:[#allocation76_spill] sm:$0xff]  ;;  %v6733_v6 = vld [vmem:[#allocation77_spill] sm:$0xff] }
 0x1f3   :  { %1696 = vmatpush.bf16.msrb.mxu0 %v6719_v16  ;;  %1722 = vmatpush.bf16.msrb.mxu2 %v6720_v60  ;;  %v6730_v16 = vld [vmem:[#allocation75_spill] sm:$0xff]  ;;  %v6731_v60 = vld [vmem:[#allocation74_spill] sm:$0xff] }
 0x1f4   :  { %1709 = vmatpush.bf16.msrb.mxu1 %v6723_v47  ;;  %1735 = vmatpush.bf16.msrb.mxu3 %v6724_v2  ;;  %v6734_v47 = vld [vmem:[#allocation80_spill] sm:$0xff]  ;;  %v6735_v2 = vld [vmem:[#allocation79_spill] sm:$0xff] }
 0x1f7   :  { %1697 = vmatpush.bf16.msrb.mxu0 %v6725_v8  ;;  %1723 = vmatpush.bf16.msrb.mxu2 %v6726_v55  ;;  %v6736_v8 = vld [vmem:[#allocation82_spill] sm:$0xff]  ;;  %v6737_v55 = vld [vmem:[#allocation83_spill] sm:$0xff] }
 0x1f8   :  { %1710 = vmatpush.bf16.msrb.mxu1 %v6727_v25  ;;  %1736 = vmatpush.bf16.msrb.mxu3 %v6728_v48  ;;  %v6738_v25 = vld [vmem:[#allocation85_spill] sm:$0xff]  ;;  %v6739_v48 = vld [vmem:[#allocation84_spill] sm:$0xff] }
 0x1fb   :  { %1698 = vmatpush.bf16.msrb.mxu0 %v6729_v42  ;;  %1724 = vmatpush.bf16.msrb.mxu2 %v6730_v16  ;;  %v6740_v42 = vld [vmem:[#allocation86_spill] sm:$0xff]  ;;  %v6741_v16 = vld [vmem:[#allocation87_spill] sm:$0xff] }
 0x1fc   :  { %1711 = vmatpush.bf16.msrb.mxu1 %v6731_v60  ;;  %1737 = vmatpush.bf16.msrb.mxu3 %v6732_v50  ;;  %v6742_v60 = vld [vmem:[#allocation89_spill] sm:$0xff]  ;;  %v6743_v50 = vld [vmem:[#allocation88_spill] sm:$0xff] }
 0x1ff   :  { %1699 = vmatpush.bf16.msrb.mxu0 %v6733_v6  ;;  %1725 = vmatpush.bf16.msrb.mxu2 %v6734_v47  ;;  %v6744_v6 = vld [vmem:[#allocation90_spill] sm:$0xff]  ;;  %v6745_v47 = vld [vmem:[#allocation91_spill] sm:$0xff] }
 0x200   :  { %1712 = vmatpush.bf16.msrb.mxu1 %v6735_v2  ;;  %1738 = vmatpush.bf16.msrb.mxu3 %v6736_v8  ;;  %v6746_v2 = vld [vmem:[#allocation93_spill] sm:$0xff]  ;;  %v6747_v8 = vld [vmem:[#allocation92_spill] sm:$0xff] }
 0x203   :  { %1700 = vmatpush.bf16.msrb.mxu0 %v6737_v55  ;;  %1726 = vmatpush.bf16.msrb.mxu2 %v6738_v25  ;;  %v6748_v55 = vld [vmem:[#allocation94_spill] sm:$0xff]  ;;  %v6749_v25 = vld [vmem:[#allocation95_spill] sm:$0xff] }
 0x204   :  { %1713 = vmatpush.bf16.msrb.mxu1 %v6739_v48  ;;  %1739 = vmatpush.bf16.msrb.mxu3 %v6740_v42  ;;  %v6750_v48 = vld [vmem:[#allocation97_spill] sm:$0xff]  ;;  %v6751_v42 = vld [vmem:[#allocation96_spill] sm:$0xff] }
 0x207   :  { %1701 = vmatpush.bf16.msrb.mxu0 %v6741_v16  ;;  %1727 = vmatpush.bf16.msrb.mxu2 %v6742_v60  ;;  %v6752_v16 = vld [vmem:[#allocation98_spill] sm:$0xff] }
 0x208   :  { %1714 = vmatpush.bf16.msrb.mxu1 %v6743_v50  ;;  %1740 = vmatpush.bf16.msrb.mxu3 %v6744_v6 }
 0x20b   :  { %1702 = vmatpush.bf16.msrb.mxu0 %v6745_v47  ;;  %1728 = vmatpush.bf16.msrb.mxu2 %v6746_v2 }
 0x20c   :  { %1715 = vmatpush.bf16.msrb.mxu1 %v6747_v8  ;;  %1741 = vmatpush.bf16.msrb.mxu3 %v6748_v55 }
 0x20f   :  { %1703 = vmatpush.bf16.msrb.mxu0 %v6749_v25  ;;  %1729 = vmatpush.bf16.msrb.mxu2 %v6750_v48 }
 0x210   :  { %1716 = vmatpush.bf16.msrb.mxu1 %v6751_v42  ;;  %1742 = vmatpush.bf16.msrb.mxu3 %v6752_v16 }
 0x22e   :  { %v1305_v60 = vpop.f32.mrf.mxu0  ;;  %v1318_v50 = vpop.f32.mrf.mxu1 }
 0x22f   :  { %v1306_v6 = vadd.f32 %v1305_v60, %v6753_v37  ;;  %v1319_v47 = vadd.f32 %v1318_v50, %v6754_v40 }
 0x231   :  { %v3708_v29 = vmul.f32 -1.442695, %v1306_v6  ;;  %v3709_v2 = vmul.f32 -1.442695, %v1319_v47  ;;  %v6756_v47 = vld [vmem:[#allocation47_spill] sm:$0xff] }
 0x233   :  { %3915 = vpow2.f32 %v3708_v29 }
 0x234   :  { %3917 = vpow2.f32 %v3709_v2 }
 0x235   :  { %v1331_v8 = vpop.f32.mrf.mxu2  ;;  %v1344_v55 = vpop.f32.mrf.mxu3 }
 0x236   :  { %v1332_v25 = vadd.f32 %v1331_v8, %v6755_v36  ;;  %v1307_v24 = vpop.f32.mrf.mxu0  ;;  %v1320_v48 = vpop.f32.mrf.mxu1  ;;  %v1345_v2 = vadd.f32 %v1344_v55, %v6756_v47 }
 0x238   :  { %v3710_v27 = vmul.f32 -1.442695, %v1332_v25 }
 0x239   :  { %v3916_v42 = vpop.eup %3915 }
 0x23a   :  { %v3918_v17 = vpop.eup %3917  ;;  %v1357_v16 = vadd.f32 1.0, %v3916_v42  ;;  %3919 = vpow2.f32 %v3710_v27  ;;  %v6757_v42 = vld [vmem:[#allocation35_spill] sm:$0xff] }
 0x23b   :  { %v1358_v23 = vadd.f32 1.0, %v3918_v17 }
 0x23c   :  { %3921 = vrcp.f32 %v1357_v16  ;;  %v1369_v12 = vand.u32 2147483647, %v1357_v16  ;;  %vm1365_vm8 = vweird.f32 %v1357_v16 }
 0x23d   :  { %3923 = vrcp.f32 %v1358_v23  ;;  %v1333_v37 = vpop.f32.mrf.mxu2  ;;  %v1346_v40 = vpop.f32.mrf.mxu3  ;;  %v1384_v47 = vand.u32 2147483647, %v1358_v23  ;;  %vm1380_vm7 = vweird.f32 %v1358_v23 }
 0x23e   :  { %v1421_v60 = vpop.f32.mrf.mxu0  ;;  %v1371_v37 = vand.u32 2147483648, %v1357_v16  ;;  %vm1370_vm10 = vcmp.eq.f32.partialorder %v1369_v12, 8.507059e+37 }
 0x23f   :  { %v1422_v27 = vadd.f32 %v1421_v60, %v6757_v42  ;;  %vm1385_vm12 = vcmp.eq.f32.partialorder %v1384_v47, 8.507059e+37 }
 0x240   :  { %v3920_v50 = vpop.eup %3919 }
 0x241   :  { %v5602_v29 = vadd.f32 1.0, %v3920_v50  ;;  %v1386_v50 = vand.u32 2147483648, %v1358_v23 }
 0x242   :  { %v3922_v6 = vpop.eup %3921 }
 0x243   :  { %v3924_v36 = vpop.eup %3923  ;;  %v1361_v24 = vmul.f32 %v3922_v6, %v1357_v16  ;;  %3925 = vrcp.f32 %v5602_v29  ;;  %vm1366_vm5 = vweird.f32 %v3922_v6  ;;  %vm1395_vm14 = vweird.f32 %v5602_v29 }
 0x244   :  { %v1376_v48 = vmul.f32 %v3924_v36, %v1358_v23  ;;  %3927 = vtanh.f32 %v1345_v2  ;;  %vm1381_vm6 = vweird.f32 %v3924_v36  ;;  %vm1367_vm9 = vmor %vm1365_vm8, %vm1366_vm5 }
 0x245   :  { %v1362_v8 = vsub.f32 1.0, %v1361_v24  ;;  %v1447_v17 = vpop.f32.mrf.mxu2  ;;  %vm1382_vm11 = vmor %vm1380_vm7, %vm1381_vm6 }
 0x246   :  { %v1377_v25 = vsub.f32 1.0, %v1376_v48  ;;  %v1423_v40 = vpop.f32.mrf.mxu0  ;;  %v1434_v15 = vpop.f32.mrf.mxu1  ;;  %v1372_v48 = vor.u32 1.1754944e-38, %v1371_v37 }
 0x247   :  { %v1363_v5 = vmul.f32 %v3922_v6, %v1362_v8  ;;  %v1435_v11 = vadd.f32 %v1434_v15, %v1422_v27  ;;  %v1387_v40 = vor.u32 1.1754944e-38, %v1386_v50  ;;  %v6758_v8 = vld [vmem:[#allocation36_spill] sm:$0xff] }
 0x248   :  { %v1378_v55 = vmul.f32 %v3924_v36, %v1377_v25  ;;  %v1448_v56 = vadd.f32 %v1447_v17, %v6758_v8 }
 0x249   :  { %v3926_v0 = vpop.eup %3925  ;;  %v1364_v3 = vadd.f32 %v3922_v6, %v1363_v5  ;;  %v3711_v24 = vmul.f32 -1.442695, %v1435_v11 }
 0x24a   :  { %v1391_v60 = vmul.f32 %v3926_v0, %v5602_v29  ;;  %v1379_v2 = vadd.f32 %v3924_v36, %v1378_v55  ;;  %v3928_v15 = vpop.eup %3927  ;;  %vm1396_vm13 = vweird.f32 %v3926_v0 }
 0x24b   :  { %v1368_v42 = vsel %vm1367_vm9, %v3922_v6, %v1364_v3  ;;  %3929 = vpow2.f32 %v3711_v24  ;;  %vm1397_vm15 = vmor %vm1395_vm14, %vm1396_vm13 }
 0x24c   :  { %v1392_v27 = vsub.f32 1.0, %v1391_v60  ;;  %v1373_v25 = vsel %vm1370_vm10, %v1372_v48, %v1368_v42  ;;  %v1383_v63 = vsel %vm1382_vm11, %v3924_v36, %v1379_v2  ;;  %v1460_v5 = vpop.f32.mrf.mxu3  ;;  %v1401_v36 = vand.u32 2147483648, %v5602_v29 }
 0x24d   :  { %v1388_v23 = vsel %vm1385_vm12, %v1387_v40, %v1383_v63  ;;  %v1407_v11 = vmul.f32 %v3928_v15, %v1373_v25  ;;  %v1449_v16 = vpop.f32.mrf.mxu2  ;;  %v1461_v53 = vadd.f32 %v1460_v5, %v1448_v56  ;;  %v1399_v56 = vand.u32 2147483647, %v5602_v29 }
 0x24e   :  { %v1393_v57 = vmul.f32 %v3926_v0, %v1392_v27  ;;  %v1406_v12 = vmul.f32 %v1388_v23, %v5444_v13  ;;  %v1436_v37 = vpop.f32.mrf.mxu1  ;;  %v1402_v47 = vor.u32 1.1754944e-38, %v1401_v36 }
 0x24f   :  { %v3712_v55 = vmul.f32 -1.442695, %v1461_v53  ;;  %v1473_v50 = vpop.f32.mrf.mxu0  ;;  %vm1400_vm0 = vcmp.eq.f32.partialorder %v1399_v56, 8.507059e+37 }
 0x250   :  { %v5610_v3 = vadd.f32 %v1407_v11, %v1406_v12  ;;  %v1394_v17 = vadd.f32 %v3926_v0, %v1393_v57  ;;  %v1474_v42 = vadd.f32 %v1473_v50, %v5438_v4 }
 0x251   :  { %v3930_v6 = vpop.eup %3929  ;;  %3931 = vpow2.f32 %v3712_v55 }
 0x252   :  { %3933 = vtanh.f32 %v5610_v3  ;;  %v5614_v63 = vadd.f32 1.0, %v3930_v6  ;;  %v1398_v13 = vsel %vm1397_vm15, %v3926_v0, %v1394_v17 }
 0x253   :  { %v1403_v15 = vsel %vm1400_vm0, %v1402_v47, %v1398_v13 }
 0x254   :  { %3935 = vrcp.f32 %v5614_v63  ;;  %v1462_v53 = vpop.f32.mrf.mxu3  ;;  %vm1533_vm2 = vweird.f32 %v5614_v63  ;;  %v1537_v47 = vand.u32 2147483647, %v5614_v63 }
 0x255   :  { %v1499_v57 = vpop.f32.mrf.mxu2 }
 0x256   :  { %v1486_v24 = vpop.f32.mrf.mxu1  ;;  %v1500_v11 = vadd.f32 %v1499_v57, %v5455_v35  ;;  %vm1538_vm6 = vcmp.eq.f32.partialorder %v1537_v47, 8.507059e+37 }
 0x257   :  { %v3932_v60 = vpop.eup %3931  ;;  %v1475_v48 = vpop.f32.mrf.mxu0  ;;  %v1487_v2 = vadd.f32 %v1486_v24, %v1474_v42  ;;  %v1539_v42 = vand.u32 2147483648, %v5614_v63 }
 0x258   :  { %v3934_v40 = vpop.eup %3933  ;;  %v1526_v27 = vadd.f32 1.0, %v3932_v60  ;;  %v6761_v60 = vld [vmem:[#allocation119_spill] sm:$0xff] }
 0x259   :  { %v1410_v25 = vmul.f32 %v3934_v40, %v1403_v15  ;;  %v3713_v5 = vmul.f32 -1.442695, %v1487_v2  ;;  %v1540_v15 = vor.u32 1.1754944e-38, %v1539_v42 }
 0x25a   :  { %v3936_v29 = vpop.eup %3935  ;;  %3937 = vrcp.f32 %v1526_v27  ;;  %v1554_v24 = vand.u32 2147483648, %v1526_v27  ;;  %v1552_v40 = vand.u32 2147483647, %v1526_v27  ;;  %vm1548_vm5 = vweird.f32 %v1526_v27 }
 0x25b   :  { %v5620_v23 = vpack.c.bf16 %v1410_v25, %v1410_v25  ;;  %v1529_v0 = vmul.f32 %v3936_v29, %v5614_v63  ;;  %3939 = vpow2.f32 %v3713_v5  ;;  %vm1534_vm1 = vweird.f32 %v3936_v29 }
 0x25c   :  { %v1512_v16 = vpop.f32.mrf.mxu3  ;;  %vm5637_vm3 = vmor %vm1533_vm2, %vm1534_vm1  ;;  %vm1553_vm8 = vcmp.eq.f32.partialorder %v1552_v40, 8.507059e+37  ;;  %v6765_v40 = vld [vmem:[#allocation7_spill] sm:$0xff] }
 0x25d   :  { %v1530_v12 = vsub.f32 1.0, %v1529_v0  ;;  %v1501_v37 = vpop.f32.mrf.mxu2  ;;  %1588 = vmatmul.bf16.vlgmr.msra.gmra.mxu0 %v5620_v23  ;;  %1601 = vmatmul.bf16.vlgmr.msra.gmra.mxu1 %v5620_v23  ;;  %v1513_v55 = vadd.f32 %v1512_v16, %v1500_v11  ;;  %v1555_v0 = vor.u32 1.1754944e-38, %v1554_v24 }
 0x25e   :  { %1614 = vmatmul.bf16.vlgmr.msra.gmra.mxu2 %v5620_v23  ;;  %1627 = vmatmul.bf16.vlgmr.msra.gmra.mxu3 %v5620_v23  ;;  %v1488_v50 = vpop.f32.mrf.mxu1 }
 0x25f   :  { %v1531_v6 = vmul.f32 %v3936_v29, %v1530_v12  ;;  %1748 = vmatpush.bf16.msra.mxu0 %v5068_v51  ;;  %1774 = vmatpush.bf16.msra.mxu2 %v5078_v41  ;;  %3941 = vtanh.f32 %v1513_v55 }
 0x260   :  { %v3938_v17 = vpop.eup %3937  ;;  %1761 = vmatpush.bf16.msra.mxu1 %v5070_v7  ;;  %1787 = vmatpush.bf16.msra.mxu3 %v5080_v44 }
 0x261   :  { %v3940_v36 = vpop.eup %3939  ;;  %v1544_v56 = vmul.f32 %v3938_v17, %v1526_v27  ;;  %v1532_v53 = vadd.f32 %v3936_v29, %v1531_v6  ;;  %vm1549_vm4 = vweird.f32 %v3938_v17 }
 0x262   :  { %v1527_v13 = vadd.f32 1.0, %v3940_v36  ;;  %vm1550_vm7 = vmor %vm1548_vm5, %vm1549_vm4 }
 0x263   :  { %v1545_v57 = vsub.f32 1.0, %v1544_v56  ;;  %1749 = vmatpush.bf16.msra.mxu0 %v5106_v59  ;;  %1775 = vmatpush.bf16.msra.mxu2 %v6690_v52  ;;  %v1536_v63 = vsel %vm5637_vm3, %v3936_v29, %v1532_v53 }
 0x264   :  { %3943 = vrcp.f32 %v1527_v13  ;;  %v1514_v48 = vpop.f32.mrf.mxu3  ;;  %1762 = vmatpush.bf16.msra.mxu1 %v6691_v58  ;;  %1788 = vmatpush.bf16.msra.mxu3 %v6692_v34  ;;  %v1541_v11 = vsel %vm1538_vm6, %v1540_v15, %v1536_v63  ;;  %vm1563_vm10 = vweird.f32 %v1527_v13  ;;  %v6764_v63 = vld [vmem:[#allocation4_spill] sm:$0xff]  ;;  %v6766_v15 = vld [vmem:[#allocation6_spill] sm:$0xff] }
 0x265   :  { %v1546_v2 = vmul.f32 %v3938_v17, %v1545_v57  ;;  %v3942_v5 = vpop.eup %3941  ;;  %v6762_v48 = vld [vmem:[#allocation3_spill] sm:$0xff] }
 0x266   :  { %v1575_v55 = vmul.f32 %v3942_v5, %v1541_v11  ;;  %v6768_v5 = vld [vmem:[#allocation8_spill] sm:$0xff]  ;;  %v6770_v11 = vld [vmem:[#allocation10_spill] sm:$0xff] }
 0x267   :  { %v1547_v25 = vadd.f32 %v3938_v17, %v1546_v2  ;;  %1750 = vmatpush.bf16.msra.mxu0 %v6693_v43  ;;  %1776 = vmatpush.bf16.msra.mxu2 %v6694_v54  ;;  %v6763_v2 = vld [vmem:[#allocation5_spill] sm:$0xff] }
 0x268   :  { %1763 = vmatpush.bf16.msra.mxu1 %v6695_v49  ;;  %1789 = vmatpush.bf16.msra.mxu3 %v6696_v19 }
 0x269   :  { %v1551_v16 = vsel %vm1550_vm7, %v3938_v17, %v1547_v25  ;;  %v1569_v17 = vand.u32 2147483648, %v1527_v13  ;;  %v6767_v25 = vld [vmem:[#allocation9_spill] sm:$0xff] }
 0x26a   :  { %v3944_v29 = vpop.eup %3943  ;;  %v1556_v12 = vsel %vm1553_vm8, %v1555_v0, %v1551_v16  ;;  %v6769_v0 = vld [vmem:[#allocation11_spill] sm:$0xff]  ;;  %v6771_v16 = vld [vmem:[#allocation13_spill] sm:$0xff] }
 0x26b   :  { %v1559_v37 = vmul.f32 %v3944_v29, %v1527_v13  ;;  %v1574_v27 = vmul.f32 %v1556_v12, %v5503_v18  ;;  %1751 = vmatpush.bf16.msra.mxu0 %v6697_v30  ;;  %1777 = vmatpush.bf16.msra.mxu2 %v6698_v21  ;;  %vm1564_vm9 = vweird.f32 %v3944_v29  ;;  %v1567_v18 = vand.u32 2147483647, %v1527_v13  ;;  %v6773_v12 = vld [vmem:[#allocation15_spill] sm:$0xff] }
 0x26c   :  { %1764 = vmatpush.bf16.msra.mxu1 %v6699_v32  ;;  %1790 = vmatpush.bf16.msra.mxu3 %v6700_v22  ;;  %vm1565_vm11 = vmor %vm1563_vm10, %vm1564_vm9  ;;  %v1570_v53 = vor.u32 1.1754944e-38, %v1569_v17  ;;  %v6779_v17 = vld [vmem:[#allocation21_spill] sm:$0xff] }
 0x26d   :  { %v1560_v50 = vsub.f32 1.0, %v1559_v37  ;;  %v5654_v6 = vadd.f32 %v1575_v55, %v1574_v27  ;;  %1704 = vmatmul.bf16.vlgmr.msrb.gmra.mxu0 %v5620_v23  ;;  %vm1568_vm12 = vcmp.eq.f32.partialorder %v1567_v18, 8.507059e+37  ;;  %v6775_v37 = vld [vmem:[#allocation17_spill] sm:$0xff]  ;;  %v6776_v27 = vld [vmem:[#allocation16_spill] sm:$0xff]  ;;  %v6777_v55 = vld [vmem:[#allocation19_spill] sm:$0xff] }
 0x26e   :  { %1730 = vmatmul.bf16.vlgmr.msrb.gmra.mxu2 %v5620_v23  ;;  %v6781_v18 = vld [vmem:[#allocation23_spill] sm:$0xff] }
 0x26f   :  { %v1561_v36 = vmul.f32 %v3944_v29, %v1560_v50  ;;  %3945 = vtanh.f32 %v5654_v6  ;;  %1752 = vmatpush.bf16.msra.mxu0 %v6701_v9  ;;  %1778 = vmatpush.bf16.msra.mxu2 %v6702_v31  ;;  %v6778_v50 = vld [vmem:[#allocation18_spill] sm:$0xff] }
 0x270   :  { %1765 = vmatpush.bf16.msra.mxu1 %v6703_v14  ;;  %1791 = vmatpush.bf16.msra.mxu3 %v6704_v33 }
 0x271   :  { %v1562_v56 = vadd.f32 %v3944_v29, %v1561_v36  ;;  %v6780_v36 = vld [vmem:[#allocation20_spill] sm:$0xff] }
 0x273   :  { %1753 = vmatpush.bf16.msra.mxu0 %v6705_v20  ;;  %1779 = vmatpush.bf16.msra.mxu2 %v5271_v61  ;;  %v1566_v42 = vsel %vm1565_vm11, %v3944_v29, %v1562_v56  ;;  %v6772_v29 = vld [vmem:[#allocation12_spill] sm:$0xff]  ;;  %v6782_v56 = vld [vmem:[#allocation22_spill] sm:$0xff] }
 0x274   :  { %v1571_v57 = vsel %vm1568_vm12, %v1570_v53, %v1566_v42  ;;  %1766 = vmatpush.bf16.msra.mxu1 %v6706_v45  ;;  %1792 = vmatpush.bf16.msra.mxu3 %v6707_v28  ;;  %v6783_v53 = vld [vmem:[#allocation25_spill] sm:$0xff]  ;;  %v6784_v42 = vld [vmem:[#allocation24_spill] sm:$0xff] }
 0x275   :  { %v3946_v47 = vpop.eup %3945 }
 0x276   :  { %v1578_v24 = vmul.f32 %v3946_v47, %v1571_v57  ;;  %v6785_v57 = vld [vmem:[#allocation28_spill] sm:$0xff]  ;;  %v6786_v47 = vld [vmem:[#allocation26_spill] sm:$0xff] }
 0x277   :  { %1754 = vmatpush.bf16.msra.mxu0 %v5295_v38  ;;  %1780 = vmatpush.bf16.msra.mxu2 %v5307_v1 }
 0x278   :  { %v1695_v13 = vpack.c.bf16 %v1578_v24, %v1578_v24  ;;  %1767 = vmatpush.bf16.msra.mxu1 %v5297_v10  ;;  %1793 = vmatpush.bf16.msra.mxu3 %v5309_v46  ;;  %v6787_v24 = vld [vmem:[#allocation29_spill] sm:$0xff] }
 0x27a   :  { %1717 = vmatmul.bf16.vlgmr.msrb.gmra.mxu1 %v1695_v13  ;;  %1743 = vmatmul.bf16.vlgmr.msrb.gmra.mxu3 %v1695_v13 }
 0x27b   :  { %1755 = vmatpush.bf16.msra.mxu0 %v5331_v62  ;;  %1781 = vmatpush.bf16.msra.mxu2 %v5337_v39 }
 0x27c   :  { %1768 = vmatpush.bf16.msra.mxu1 %v5333_v26  ;;  %1794 = vmatpush.bf16.msra.mxu3 %v6761_v60 }
 0x27e   :  { %1756 = vmatmul.bf16.vlgmr.msra.gmra.mxu0 %v5620_v23  ;;  %1782 = vmatmul.bf16.vlgmr.msra.gmra.mxu2 %v5620_v23  ;;  %v6774_v23 = vld [vmem:[#allocation14_spill] sm:$0xff] }
 0x27f   :  { %1864 = vmatpush.bf16.msrb.mxu0 %v6762_v48  ;;  %1890 = vmatpush.bf16.msrb.mxu2 %v6763_v2 }
 0x280   :  { %1877 = vmatpush.bf16.msrb.mxu1 %v6764_v63  ;;  %1903 = vmatpush.bf16.msrb.mxu3 %v6765_v40 }
 0x283   :  { %1865 = vmatpush.bf16.msrb.mxu0 %v6766_v15  ;;  %1891 = vmatpush.bf16.msrb.mxu2 %v6767_v25 }
 0x284   :  { %1878 = vmatpush.bf16.msrb.mxu1 %v6768_v5  ;;  %1904 = vmatpush.bf16.msrb.mxu3 %v6769_v0 }
 0x287   :  { %1866 = vmatpush.bf16.msrb.mxu0 %v6770_v11  ;;  %1892 = vmatpush.bf16.msrb.mxu2 %v6771_v16 }
 0x288   :  { %1879 = vmatpush.bf16.msrb.mxu1 %v6772_v29  ;;  %1905 = vmatpush.bf16.msrb.mxu3 %v6773_v12  ;;  %v6831_v29 = vld [vmem:[#allocation49_spill] sm:$0xff] }
 0x28a   :  { %1769 = vmatmul.bf16.vlgmr.msra.gmra.mxu1 %v1695_v13  ;;  %1795 = vmatmul.bf16.vlgmr.msra.gmra.mxu3 %v1695_v13  ;;  %v6788_v13 = vld [vmem:[#allocation27_spill] sm:$0xff] }
 0x28b   :  { %1867 = vmatpush.bf16.msrb.mxu0 %v6774_v23  ;;  %1893 = vmatpush.bf16.msrb.mxu2 %v6775_v37 }
 0x28c   :  { %1880 = vmatpush.bf16.msrb.mxu1 %v6776_v27  ;;  %1906 = vmatpush.bf16.msrb.mxu3 %v6777_v55  ;;  %v6829_v27 = vld [vmem:[#allocation48_spill] sm:$0xff] }
 0x28f   :  { %1868 = vmatpush.bf16.msrb.mxu0 %v6778_v50  ;;  %1894 = vmatpush.bf16.msrb.mxu2 %v6779_v17  ;;  %v6789_v50 = vld [vmem:[#allocation31_spill] sm:$0xff]  ;;  %v6790_v17 = vld [vmem:[#allocation30_spill] sm:$0xff] }
 0x290   :  { %1881 = vmatpush.bf16.msrb.mxu1 %v6780_v36  ;;  %1907 = vmatpush.bf16.msrb.mxu3 %v6781_v18  ;;  %v6791_v36 = vld [vmem:[#allocation33_spill] sm:$0xff] }
 0x291   :  { %v6792_v18 = vld [vmem:[#allocation61_spill] sm:$0xff] }
 0x293   :  { %1869 = vmatpush.bf16.msrb.mxu0 %v6782_v56  ;;  %1895 = vmatpush.bf16.msrb.mxu2 %v6783_v53  ;;  %v6793_v56 = vld [vmem:[#allocation63_spill] sm:$0xff]  ;;  %v6794_v53 = vld [vmem:[#allocation32_spill] sm:$0xff] }
 0x294   :  { %1882 = vmatpush.bf16.msrb.mxu1 %v6784_v42  ;;  %1908 = vmatpush.bf16.msrb.mxu3 %v6785_v57  ;;  %v6795_v42 = vld [vmem:[#allocation34_spill] sm:$0xff] }
 0x295   :  { %v6796_v57 = vld [vmem:[#allocation62_spill] sm:$0xff] }
 0x297   :  { %1870 = vmatpush.bf16.msrb.mxu0 %v6786_v47  ;;  %1896 = vmatpush.bf16.msrb.mxu2 %v6787_v24  ;;  %v6797_v47 = vld [vmem:[#allocation64_spill] sm:$0xff]  ;;  %v6798_v24 = vld [vmem:[#allocation65_spill] sm:$0xff] }
 0x298   :  { %1883 = vmatpush.bf16.msrb.mxu1 %v6788_v13  ;;  %1909 = vmatpush.bf16.msrb.mxu3 %v6789_v50  ;;  %v6799_v13 = vld [vmem:[#allocation67_spill] sm:$0xff]  ;;  %v6800_v50 = vld [vmem:[#allocation66_spill] sm:$0xff] }
 0x29b   :  { %1871 = vmatpush.bf16.msrb.mxu0 %v6790_v17  ;;  %1897 = vmatpush.bf16.msrb.mxu2 %v6791_v36  ;;  %v6801_v17 = vld [vmem:[#allocation70_spill] sm:$0xff]  ;;  %v6802_v36 = vld [vmem:[#allocation73_spill] sm:$0xff] }
 0x29c   :  { %1884 = vmatpush.bf16.msrb.mxu1 %v6794_v53  ;;  %1910 = vmatpush.bf16.msrb.mxu3 %v6795_v42  ;;  %v6805_v53 = vld [vmem:[#allocation76_spill] sm:$0xff]  ;;  %v6806_v42 = vld [vmem:[#allocation77_spill] sm:$0xff] }
 0x29f   :  { %1980 = vmatpush.bf16.msra.mxu0 %v6792_v18  ;;  %2006 = vmatpush.bf16.msra.mxu2 %v6793_v56  ;;  %v6803_v18 = vld [vmem:[#allocation75_spill] sm:$0xff]  ;;  %v6804_v56 = vld [vmem:[#allocation74_spill] sm:$0xff] }
 0x2a0   :  { %1993 = vmatpush.bf16.msra.mxu1 %v6796_v57  ;;  %2019 = vmatpush.bf16.msra.mxu3 %v6797_v47  ;;  %v6807_v57 = vld [vmem:[#allocation80_spill] sm:$0xff]  ;;  %v6808_v47 = vld [vmem:[#allocation79_spill] sm:$0xff] }
 0x2a3   :  { %1981 = vmatpush.bf16.msra.mxu0 %v6798_v24  ;;  %2007 = vmatpush.bf16.msra.mxu2 %v6799_v13  ;;  %v6809_v24 = vld [vmem:[#allocation82_spill] sm:$0xff]  ;;  %v6810_v13 = vld [vmem:[#allocation83_spill] sm:$0xff] }
 0x2a4   :  { %1994 = vmatpush.bf16.msra.mxu1 %v6800_v50  ;;  %2020 = vmatpush.bf16.msra.mxu3 %v6801_v17  ;;  %v6811_v50 = vld [vmem:[#allocation85_spill] sm:$0xff]  ;;  %v6812_v17 = vld [vmem:[#allocation84_spill] sm:$0xff] }
 0x2a7   :  { %1982 = vmatpush.bf16.msra.mxu0 %v6802_v36  ;;  %2008 = vmatpush.bf16.msra.mxu2 %v6803_v18  ;;  %v6813_v36 = vld [vmem:[#allocation86_spill] sm:$0xff]  ;;  %v6814_v18 = vld [vmem:[#allocation87_spill] sm:$0xff] }
 0x2a8   :  { %1995 = vmatpush.bf16.msra.mxu1 %v6804_v56  ;;  %2021 = vmatpush.bf16.msra.mxu3 %v6805_v53  ;;  %v6815_v56 = vld [vmem:[#allocation89_spill] sm:$0xff]  ;;  %v6816_v53 = vld [vmem:[#allocation88_spill] sm:$0xff] }
 0x2ab   :  { %1983 = vmatpush.bf16.msra.mxu0 %v6806_v42  ;;  %2009 = vmatpush.bf16.msra.mxu2 %v6807_v57  ;;  %v6817_v42 = vld [vmem:[#allocation90_spill] sm:$0xff]  ;;  %v6818_v57 = vld [vmem:[#allocation91_spill] sm:$0xff] }
 0x2ac   :  { %1996 = vmatpush.bf16.msra.mxu1 %v6808_v47  ;;  %2022 = vmatpush.bf16.msra.mxu3 %v6809_v24  ;;  %v6819_v47 = vld [vmem:[#allocation93_spill] sm:$0xff]  ;;  %v6820_v24 = vld [vmem:[#allocation92_spill] sm:$0xff] }
 0x2af   :  { %1984 = vmatpush.bf16.msra.mxu0 %v6810_v13  ;;  %2010 = vmatpush.bf16.msra.mxu2 %v6811_v50  ;;  %v6821_v13 = vld [vmem:[#allocation94_spill] sm:$0xff]  ;;  %v6822_v50 = vld [vmem:[#allocation95_spill] sm:$0xff] }
 0x2b0   :  { %1997 = vmatpush.bf16.msra.mxu1 %v6812_v17  ;;  %2023 = vmatpush.bf16.msra.mxu3 %v6813_v36  ;;  %v6823_v17 = vld [vmem:[#allocation97_spill] sm:$0xff]  ;;  %v6824_v36 = vld [vmem:[#allocation96_spill] sm:$0xff] }
 0x2b3   :  { %1985 = vmatpush.bf16.msra.mxu0 %v6814_v18  ;;  %2011 = vmatpush.bf16.msra.mxu2 %v6815_v56  ;;  %v6825_v18 = vld [vmem:[#allocation98_spill] sm:$0xff]  ;;  %v6826_v56 = vld [vmem:[#allocation37_spill] sm:$0xff] }
 0x2b4   :  { %1998 = vmatpush.bf16.msra.mxu1 %v6816_v53  ;;  %2024 = vmatpush.bf16.msra.mxu3 %v6817_v42  ;;  %v6827_v53 = vld [vmem:[#allocation46_spill] sm:$0xff]  ;;  %v6828_v42 = vld [vmem:[#allocation39_spill] sm:$0xff] }
 0x2b5   :  { %v204_v55 = vadd.f32 %v6827_v53, %v6826_v56 }
 0x2b7   :  { %1986 = vmatpush.bf16.msra.mxu0 %v6818_v57  ;;  %2012 = vmatpush.bf16.msra.mxu2 %v6819_v47  ;;  %v233_v57 = vadd.f32 %v6829_v27, %v6828_v42 }
 0x2b8   :  { %1999 = vmatpush.bf16.msra.mxu1 %v6820_v24  ;;  %2025 = vmatpush.bf16.msra.mxu3 %v6821_v13 }
 0x2bb   :  { %1987 = vmatpush.bf16.msra.mxu0 %v6822_v50  ;;  %2013 = vmatpush.bf16.msra.mxu2 %v6823_v17  ;;  %v6830_v50 = vld [vmem:[#allocation43_spill] sm:$0xff] }
 0x2bc   :  { %2000 = vmatpush.bf16.msra.mxu1 %v6824_v36  ;;  %2026 = vmatpush.bf16.msra.mxu3 %v6825_v18  ;;  %v262_v17 = vadd.f32 %v6831_v29, %v6830_v50  ;;  %v6833_v29 = vld [vmem:[#allocation50_spill] sm:$0xff] }
 0x2da   :  { %v1589_v37 = vpop.f32.mrf.mxu0  ;;  %v1602_v47 = vpop.f32.mrf.mxu1 }
 0x2db   :  { %v1590_v23 = vadd.f32 %v1589_v37, %v204_v55  ;;  %v1603_v24 = vadd.f32 %v1602_v47, %v233_v57  ;;  %v6832_v57 = vld [vmem:[#allocation44_spill] sm:$0xff] }
 0x2dc   :  { %v291_v47 = vadd.f32 %v6833_v29, %v6832_v57 }
 0x2dd   :  { %v3714_v12 = vmul.f32 -1.442695, %v1590_v23  ;;  %v3715_v13 = vmul.f32 -1.442695, %v1603_v24 }
 0x2df   :  { %3947 = vpow2.f32 %v3714_v12 }
 0x2e0   :  { %3949 = vpow2.f32 %v3715_v13 }
 0x2e1   :  { %v1615_v36 = vpop.f32.mrf.mxu2  ;;  %v1628_v16 = vpop.f32.mrf.mxu3 }
 0x2e2   :  { %v1616_v18 = vadd.f32 %v1615_v36, %v262_v17  ;;  %v1591_v11 = vpop.f32.mrf.mxu0  ;;  %v1604_v0 = vpop.f32.mrf.mxu1 }
 0x2e3   :  { %v1629_v11 = vadd.f32 %v1628_v16, %v291_v47 }
 0x2e4   :  { %v3716_v53 = vmul.f32 -1.442695, %v1616_v18 }
 0x2e5   :  { %v3948_v56 = vpop.eup %3947 }
 0x2e6   :  { %v3950_v5 = vpop.eup %3949  ;;  %v1641_v27 = vadd.f32 1.0, %v3948_v56  ;;  %3951 = vpow2.f32 %v3716_v53 }
 0x2e7   :  { %v1642_v42 = vadd.f32 1.0, %v3950_v5 }
 0x2e8   :  { %3953 = vrcp.f32 %v1641_v27  ;;  %v1653_v53 = vand.u32 2147483647, %v1641_v27  ;;  %vm1649_vm0 = vweird.f32 %v1641_v27 }
 0x2e9   :  { %3955 = vrcp.f32 %v1642_v42  ;;  %v1617_v23 = vpop.f32.mrf.mxu2  ;;  %v1630_v37 = vpop.f32.mrf.mxu3  ;;  %v1670_v50 = vand.u32 2147483648, %v1642_v42  ;;  %v1668_v29 = vand.u32 2147483647, %v1642_v42  ;;  %vm1664_vm15 = vweird.f32 %v1642_v42 }
 0x2ea   :  { %v1705_v12 = vpop.f32.mrf.mxu0  ;;  %v1655_v23 = vand.u32 2147483648, %v1641_v27  ;;  %vm1654_vm3 = vcmp.eq.f32.partialorder %v1653_v53, 8.507059e+37 }
 0x2eb   :  { %vm1669_vm4 = vcmp.eq.f32.partialorder %v1668_v29, 8.507059e+37 }
 0x2ec   :  { %v3952_v55 = vpop.eup %3951 }
 0x2ed   :  { %v5749_v24 = vadd.f32 1.0, %v3952_v55 }
 0x2ee   :  { %v3954_v17 = vpop.eup %3953 }
 0x2ef   :  { %v3956_v0 = vpop.eup %3955  ;;  %v1645_v36 = vmul.f32 %v3954_v17, %v1641_v27  ;;  %3957 = vrcp.f32 %v5749_v24  ;;  %vm1650_vm13 = vweird.f32 %v3954_v17  ;;  %v1685_v29 = vand.u32 2147483648, %v5749_v24 }
 0x2f0   :  { %v1660_v18 = vmul.f32 %v3956_v0, %v1642_v42  ;;  %3959 = vtanh.f32 %v1629_v11  ;;  %vm1665_vm14 = vweird.f32 %v3956_v0  ;;  %vm1651_vm1 = vmor %vm1649_vm0, %vm1650_vm13  ;;  %v1671_v11 = vor.u32 1.1754944e-38, %v1670_v50 }
 0x2f1   :  { %v1646_v56 = vsub.f32 1.0, %v1645_v36  ;;  %v1731_v5 = vpop.f32.mrf.mxu2  ;;  %v1656_v36 = vor.u32 1.1754944e-38, %v1655_v23  ;;  %vm1666_vm2 = vmor %vm1664_vm15, %vm1665_vm14  ;;  %vm1679_vm6 = vweird.f32 %v5749_v24 }
 0x2f2   :  { %v1661_v13 = vsub.f32 1.0, %v1660_v18  ;;  %v1707_v37 = vpop.f32.mrf.mxu0  ;;  %v6834_v18 = vld [vmem:[#allocation35_spill] sm:$0xff]  ;;  %v1732_v50 = vadd.f32 %v1731_v5, %v6758_v8 }
 0x2f3   :  { %v1647_v25 = vmul.f32 %v3954_v17, %v1646_v56  ;;  %v1706_v40 = vadd.f32 %v1705_v12, %v6834_v18 }
 0x2f4   :  { %v1662_v55 = vmul.f32 %v3956_v0, %v1661_v13 }
 0x2f5   :  { %v3958_v57 = vpop.eup %3957  ;;  %v1648_v16 = vadd.f32 %v3954_v17, %v1647_v25 }
 0x2f6   :  { %v1675_v47 = vmul.f32 %v3958_v57, %v5749_v24  ;;  %v1663_v15 = vadd.f32 %v3956_v0, %v1662_v55  ;;  %v3960_v63 = vpop.eup %3959  ;;  %vm1680_vm5 = vweird.f32 %v3958_v57 }
 0x2f7   :  { %v1652_v37 = vsel %vm1651_vm1, %v3954_v17, %v1648_v16  ;;  %v1718_v56 = vpop.f32.mrf.mxu1  ;;  %vm1681_vm7 = vmor %vm1679_vm6, %vm1680_vm5 }
 0x2f8   :  { %v1676_v13 = vsub.f32 1.0, %v1675_v47  ;;  %v1657_v2 = vsel %vm1654_vm3, %v1656_v36, %v1652_v37  ;;  %v1667_v48 = vsel %vm1666_vm2, %v3956_v0, %v1663_v15  ;;  %v1719_v42 = vadd.f32 %v1718_v56, %v1706_v40 }
 0x2f9   :  { %v1672_v25 = vsel %vm1669_vm4, %v1671_v11, %v1667_v48  ;;  %v1691_v27 = vmul.f32 %v3960_v63, %v1657_v2  ;;  %v1733_v60 = vpop.f32.mrf.mxu2  ;;  %v1686_v0 = vor.u32 1.1754944e-38, %v1685_v29 }
 0x2fa   :  { %v1677_v26 = vmul.f32 %v3958_v57, %v1676_v13  ;;  %v1690_v23 = vmul.f32 %v1672_v25, %v5610_v3  ;;  %v3717_v55 = vmul.f32 -1.442695, %v1719_v42  ;;  %v1683_v60 = vand.u32 2147483647, %v5749_v24 }
 0x2fb   :  { %v1757_v39 = vpop.f32.mrf.mxu0 }
 0x2fc   :  { %v5755_v12 = vadd.f32 %v1691_v27, %v1690_v23  ;;  %3961 = vpow2.f32 %v3717_v55  ;;  %v1678_v17 = vadd.f32 %v3958_v57, %v1677_v26  ;;  %vm1684_vm8 = vcmp.eq.f32.partialorder %v1683_v60, 8.507059e+37 }
 0x2fd   :  { %v1744_v53 = vpop.f32.mrf.mxu3  ;;  %v1758_v24 = vadd.f32 %v1757_v39, %v5438_v4 }
 0x2fe   :  { %3963 = vtanh.f32 %v5755_v12  ;;  %v1745_v48 = vadd.f32 %v1744_v53, %v1732_v50  ;;  %v1682_v63 = vsel %vm1681_vm7, %v3958_v57, %v1678_v17 }
 0x2ff   :  { %v1720_v3 = vpop.f32.mrf.mxu1  ;;  %v1687_v47 = vsel %vm1684_vm8, %v1686_v0, %v1682_v63 }
 0x300   :  { %v3718_v2 = vmul.f32 -1.442695, %v1745_v48 }
 0x301   :  { %v1783_v40 = vpop.f32.mrf.mxu2 }
 0x302   :  { %v3962_v15 = vpop.eup %3961  ;;  %3965 = vpow2.f32 %v3718_v2  ;;  %v1784_v55 = vadd.f32 %v1783_v40, %v5455_v35 }
 0x303   :  { %v5762_v26 = vadd.f32 1.0, %v3962_v15  ;;  %v1759_v5 = vpop.f32.mrf.mxu0 }
 0x304   :  { %v3964_v16 = vpop.eup %3963 }
 0x305   :  { %v1694_v36 = vmul.f32 %v3964_v16, %v1687_v47  ;;  %3967 = vrcp.f32 %v5762_v26  ;;  %v1746_v11 = vpop.f32.mrf.mxu3  ;;  %v1823_v15 = vand.u32 2147483648, %v5762_v26  ;;  %vm1817_vm10 = vweird.f32 %v5762_v26  ;;  %v6839_v47 = vld [vmem:[#allocation119_spill] sm:$0xff] }
 0x306   :  { %v1821_v5 = vand.u32 2147483647, %v5762_v26 }
 0x307   :  { %v5766_v37 = vpack.c.bf16 %v1694_v36, %v1694_v36  ;;  %v1770_v56 = vpop.f32.mrf.mxu1 }
 0x308   :  { %v3966_v57 = vpop.eup %3965  ;;  %v1771_v13 = vadd.f32 %v1770_v56, %v1758_v24  ;;  %vm1822_vm14 = vcmp.eq.f32.partialorder %v1821_v5, 8.507059e+37  ;;  %v6837_v5 = vld [vmem:[#allocation118_spill] sm:$0xff] }
 0x309   :  { %v5768_v42 = vadd.f32 1.0, %v3966_v57  ;;  %v1785_v25 = vpop.f32.mrf.mxu2  ;;  %1872 = vmatmul.bf16.vlgmr.msrb.gmra.mxu0 %v5766_v37  ;;  %1885 = vmatmul.bf16.vlgmr.msrb.gmra.mxu1 %v5766_v37 }
 0x30a   :  { %v3719_v27 = vmul.f32 -1.442695, %v1771_v13  ;;  %1898 = vmatmul.bf16.vlgmr.msrb.gmra.mxu2 %v5766_v37  ;;  %1911 = vmatmul.bf16.vlgmr.msrb.gmra.mxu3 %v5766_v37 }
 0x30b   :  { %v3968_v23 = vpop.eup %3967  ;;  %3969 = vrcp.f32 %v5768_v42  ;;  %2032 = vmatpush.bf16.msrb.mxu0 %v5068_v51  ;;  %2058 = vmatpush.bf16.msrb.mxu2 %v5078_v41  ;;  %v1838_v16 = vand.u32 2147483648, %v5768_v42  ;;  %v1836_v56 = vand.u32 2147483647, %v5768_v42  ;;  %vm1832_vm13 = vweird.f32 %v5768_v42 }
 0x30c   :  { %v1813_v39 = vmul.f32 %v3968_v23, %v5762_v26  ;;  %3971 = vpow2.f32 %v3719_v27  ;;  %2045 = vmatpush.bf16.msrb.mxu1 %v5070_v7  ;;  %2071 = vmatpush.bf16.msrb.mxu3 %v5080_v44  ;;  %vm1818_vm9 = vweird.f32 %v3968_v23  ;;  %v1824_v26 = vor.u32 1.1754944e-38, %v1823_v15 }
 0x30d   :  { %v1796_v50 = vpop.f32.mrf.mxu3  ;;  %vm5794_vm11 = vmor %vm1817_vm10, %vm1818_vm9  ;;  %v1839_v25 = vor.u32 1.1754944e-38, %v1838_v16  ;;  %vm1837_vm0 = vcmp.eq.f32.partialorder %v1836_v56, 8.507059e+37  ;;  %v6838_v16 = vld [vmem:[#allocation117_spill] sm:$0xff]  ;;  %v6842_v56 = vld [vmem:[#allocation4_spill] sm:$0xff] }
 0x30e   :  { %v1814_v17 = vsub.f32 1.0, %v1813_v39  ;;  %v1797_v53 = vadd.f32 %v1796_v50, %v1784_v55 }
 0x30f   :  { %2033 = vmatpush.bf16.msrb.mxu0 %v5106_v59  ;;  %2059 = vmatpush.bf16.msrb.mxu2 %v6690_v52  ;;  %v1772_v29 = vpop.f32.mrf.mxu1 }
 0x310   :  { %v1815_v48 = vmul.f32 %v3968_v23, %v1814_v17  ;;  %2046 = vmatpush.bf16.msrb.mxu1 %v6691_v58  ;;  %2072 = vmatpush.bf16.msrb.mxu3 %v6692_v34  ;;  %3973 = vtanh.f32 %v1797_v53 }
 0x311   :  { %v3970_v60 = vpop.eup %3969 }
 0x312   :  { %v3972_v3 = vpop.eup %3971  ;;  %v1828_v2 = vmul.f32 %v3970_v60, %v5768_v42  ;;  %v1816_v63 = vadd.f32 %v3968_v23, %v1815_v48  ;;  %vm1833_vm12 = vweird.f32 %v3970_v60 }
 0x313   :  { %v1811_v40 = vadd.f32 1.0, %v3972_v3  ;;  %2034 = vmatpush.bf16.msrb.mxu0 %v6693_v43  ;;  %2060 = vmatpush.bf16.msrb.mxu2 %v6694_v54  ;;  %vm1834_vm15 = vmor %vm1832_vm13, %vm1833_vm12 }
 0x314   :  { %v1829_v0 = vsub.f32 1.0, %v1828_v2  ;;  %2047 = vmatpush.bf16.msrb.mxu1 %v6695_v49  ;;  %2073 = vmatpush.bf16.msrb.mxu3 %v6696_v19  ;;  %v1820_v24 = vsel %vm5794_vm11, %v3968_v23, %v1816_v63 }
 0x315   :  { %3975 = vrcp.f32 %v1811_v40  ;;  %v1798_v36 = vpop.f32.mrf.mxu3  ;;  %v1825_v27 = vsel %vm1822_vm14, %v1824_v26, %v1820_v24  ;;  %v1853_v48 = vand.u32 2147483648, %v1811_v40  ;;  %v1851_v3 = vand.u32 2147483647, %v1811_v40  ;;  %v6841_v24 = vld [vmem:[#allocation5_spill] sm:$0xff]  ;;  %v6843_v26 = vld [vmem:[#allocation7_spill] sm:$0xff] }
 0x316   :  { %v1830_v11 = vmul.f32 %v3970_v60, %v1829_v0  ;;  %v3974_v13 = vpop.eup %3973  ;;  %vm1847_vm2 = vweird.f32 %v1811_v40 }
 0x317   :  { %2035 = vmatpush.bf16.msrb.mxu0 %v6697_v30  ;;  %2061 = vmatpush.bf16.msrb.mxu2 %v6698_v21  ;;  %v1859_v17 = vmul.f32 %v3974_v13, %v1825_v27  ;;  %v1854_v2 = vor.u32 1.1754944e-38, %v1853_v48  ;;  %vm1852_vm4 = vcmp.eq.f32.partialorder %v1851_v3, 8.507059e+37  ;;  %v6845_v13 = vld [vmem:[#allocation9_spill] sm:$0xff]  ;;  %v6847_v27 = vld [vmem:[#allocation11_spill] sm:$0xff]  ;;  %v6856_v48 = vld [vmem:[#allocation18_spill] sm:$0xff] }
 0x318   :  { %v1831_v57 = vadd.f32 %v3970_v60, %v1830_v11  ;;  %2048 = vmatpush.bf16.msrb.mxu1 %v6699_v32  ;;  %2074 = vmatpush.bf16.msrb.mxu3 %v6700_v22  ;;  %v6840_v11 = vld [vmem:[#allocation3_spill] sm:$0xff]  ;;  %v6858_v3 = vld [vmem:[#allocation20_spill] sm:$0xff] }
 0x319   :  { %1988 = vmatmul.bf16.vlgmr.msra.gmra.mxu0 %v5766_v37 }
 0x31a   :  { %v1835_v23 = vsel %vm1834_vm15, %v3970_v60, %v1831_v57  ;;  %2014 = vmatmul.bf16.vlgmr.msra.gmra.mxu2 %v5766_v37  ;;  %v6844_v57 = vld [vmem:[#allocation6_spill] sm:$0xff] }
 0x31b   :  { %v3976_v39 = vpop.eup %3975  ;;  %v1840_v55 = vsel %vm1837_vm0, %v1839_v25, %v1835_v23  ;;  %2036 = vmatpush.bf16.msrb.mxu0 %v6701_v9  ;;  %2062 = vmatpush.bf16.msrb.mxu2 %v6702_v31  ;;  %v6846_v25 = vld [vmem:[#allocation8_spill] sm:$0xff]  ;;  %v6848_v23 = vld [vmem:[#allocation10_spill] sm:$0xff] }
 0x31c   :  { %v1843_v42 = vmul.f32 %v3976_v39, %v1811_v40  ;;  %v1858_v50 = vmul.f32 %v1840_v55, %v5654_v6  ;;  %2049 = vmatpush.bf16.msrb.mxu1 %v6703_v14  ;;  %2075 = vmatpush.bf16.msrb.mxu3 %v6704_v33  ;;  %vm1848_vm1 = vweird.f32 %v3976_v39  ;;  %v6850_v55 = vld [vmem:[#allocation12_spill] sm:$0xff] }
 0x31d   :  { %vm1849_vm3 = vmor %vm1847_vm2, %vm1848_vm1 }
 0x31e   :  { %v1844_v53 = vsub.f32 1.0, %v1843_v42  ;;  %v5813_v29 = vadd.f32 %v1859_v17, %v1858_v50  ;;  %v6852_v42 = vld [vmem:[#allocation14_spill] sm:$0xff]  ;;  %v6853_v50 = vld [vmem:[#allocation17_spill] sm:$0xff]  ;;  %v6854_v17 = vld [vmem:[#allocation16_spill] sm:$0xff] }
 0x31f   :  { %2037 = vmatpush.bf16.msrb.mxu0 %v6705_v20  ;;  %2063 = vmatpush.bf16.msrb.mxu2 %v5271_v61 }
 0x320   :  { %v1845_v60 = vmul.f32 %v3976_v39, %v1844_v53  ;;  %3977 = vtanh.f32 %v5813_v29  ;;  %2050 = vmatpush.bf16.msrb.mxu1 %v6706_v45  ;;  %2076 = vmatpush.bf16.msrb.mxu3 %v6707_v28  ;;  %v6855_v53 = vld [vmem:[#allocation19_spill] sm:$0xff] }
 0x322   :  { %v1846_v6 = vadd.f32 %v3976_v39, %v1845_v60  ;;  %v6857_v60 = vld [vmem:[#allocation21_spill] sm:$0xff] }
 0x323   :  { %2038 = vmatpush.bf16.msrb.mxu0 %v5295_v38  ;;  %2064 = vmatpush.bf16.msrb.mxu2 %v5307_v1 }
 0x324   :  { %v1850_v63 = vsel %vm1849_vm3, %v3976_v39, %v1846_v6  ;;  %2051 = vmatpush.bf16.msrb.mxu1 %v5297_v10  ;;  %2077 = vmatpush.bf16.msrb.mxu3 %v5309_v46  ;;  %v6849_v39 = vld [vmem:[#allocation13_spill] sm:$0xff]  ;;  %v6859_v6 = vld [vmem:[#allocation23_spill] sm:$0xff] }
 0x325   :  { %v1855_v15 = vsel %vm1852_vm4, %v1854_v2, %v1850_v63  ;;  %v6860_v2 = vld [vmem:[#allocation22_spill] sm:$0xff]  ;;  %v6861_v63 = vld [vmem:[#allocation25_spill] sm:$0xff] }
 0x326   :  { %v3978_v0 = vpop.eup %3977 }
 0x327   :  { %2039 = vmatpush.bf16.msrb.mxu0 %v5331_v62  ;;  %2065 = vmatpush.bf16.msrb.mxu2 %v6837_v5  ;;  %v1862_v40 = vmul.f32 %v3978_v0, %v1855_v15  ;;  %v6862_v15 = vld [vmem:[#allocation24_spill] sm:$0xff] }
 0x328   :  { %2052 = vmatpush.bf16.msrb.mxu1 %v6838_v16  ;;  %2078 = vmatpush.bf16.msrb.mxu3 %v6839_v47  ;;  %v6863_v0 = vld [vmem:[#allocation28_spill] sm:$0xff] }
 0x329   :  { %v1979_v36 = vpack.c.bf16 %v1862_v40, %v1862_v40  ;;  %v6864_v40 = vld [vmem:[#allocation26_spill] sm:$0xff] }
 0x32a   :  { %2040 = vmatmul.bf16.vlgmr.msrb.gmra.mxu0 %v5766_v37  ;;  %2066 = vmatmul.bf16.vlgmr.msrb.gmra.mxu2 %v5766_v37  ;;  %v6851_v37 = vld [vmem:[#allocation15_spill] sm:$0xff] }
 0x32b   :  { %2148 = vmatpush.bf16.msra.mxu0 %v6840_v11  ;;  %2174 = vmatpush.bf16.msra.mxu2 %v6841_v24 }
 0x32c   :  { %2001 = vmatmul.bf16.vlgmr.msra.gmra.mxu1 %v1979_v36  ;;  %2027 = vmatmul.bf16.vlgmr.msra.gmra.mxu3 %v1979_v36 }
 0x32d   :  { %2161 = vmatpush.bf16.msra.mxu1 %v6842_v56  ;;  %2187 = vmatpush.bf16.msra.mxu3 %v6843_v26 }
 0x32f   :  { %2149 = vmatpush.bf16.msra.mxu0 %v6844_v57  ;;  %2175 = vmatpush.bf16.msra.mxu2 %v6845_v13 }
 0x331   :  { %2162 = vmatpush.bf16.msra.mxu1 %v6846_v25  ;;  %2188 = vmatpush.bf16.msra.mxu3 %v6847_v27  ;;  %v6906_v27 = vld [vmem:[#allocation53_spill] sm:$0xff] }
 0x333   :  { %2150 = vmatpush.bf16.msra.mxu0 %v6848_v23  ;;  %2176 = vmatpush.bf16.msra.mxu2 %v6849_v39 }
 0x335   :  { %2163 = vmatpush.bf16.msra.mxu1 %v6850_v55  ;;  %2189 = vmatpush.bf16.msra.mxu3 %v6851_v37  ;;  %v6867_v37 = vld [vmem:[#allocation31_spill] sm:$0xff] }
 0x336   :  { %v6904_v55 = vld [vmem:[#allocation51_spill] sm:$0xff] }
 0x337   :  { %2151 = vmatpush.bf16.msra.mxu0 %v6852_v42  ;;  %2177 = vmatpush.bf16.msra.mxu2 %v6853_v50 }
 0x339   :  { %2164 = vmatpush.bf16.msra.mxu1 %v6854_v17  ;;  %2190 = vmatpush.bf16.msra.mxu3 %v6855_v53  ;;  %v6865_v53 = vld [vmem:[#allocation29_spill] sm:$0xff]  ;;  %v6866_v17 = vld [vmem:[#allocation27_spill] sm:$0xff] }
 0x33b   :  { %2152 = vmatpush.bf16.msra.mxu0 %v6856_v48  ;;  %2178 = vmatpush.bf16.msra.mxu2 %v6857_v60  ;;  %v6905_v60 = vld [vmem:[#allocation52_spill] sm:$0xff] }
 0x33c   :  { %2053 = vmatmul.bf16.vlgmr.msrb.gmra.mxu1 %v1979_v36  ;;  %2079 = vmatmul.bf16.vlgmr.msrb.gmra.mxu3 %v1979_v36  ;;  %v6868_v36 = vld [vmem:[#allocation30_spill] sm:$0xff] }
 0x33d   :  { %2165 = vmatpush.bf16.msra.mxu1 %v6858_v3  ;;  %2191 = vmatpush.bf16.msra.mxu3 %v6859_v6  ;;  %v6869_v3 = vld [vmem:[#allocation33_spill] sm:$0xff] }
 0x33e   :  { %v6870_v6 = vld [vmem:[#allocation61_spill] sm:$0xff] }
 0x33f   :  { %2153 = vmatpush.bf16.msra.mxu0 %v6860_v2  ;;  %2179 = vmatpush.bf16.msra.mxu2 %v6861_v63  ;;  %v6871_v2 = vld [vmem:[#allocation63_spill] sm:$0xff]  ;;  %v6872_v63 = vld [vmem:[#allocation32_spill] sm:$0xff] }
 0x341   :  { %2166 = vmatpush.bf16.msra.mxu1 %v6862_v15  ;;  %2192 = vmatpush.bf16.msra.mxu3 %v6863_v0  ;;  %v6873_v15 = vld [vmem:[#allocation34_spill] sm:$0xff] }
 0x342   :  { %v6874_v0 = vld [vmem:[#allocation62_spill] sm:$0xff] }
 0x343   :  { %2154 = vmatpush.bf16.msra.mxu0 %v6864_v40  ;;  %2180 = vmatpush.bf16.msra.mxu2 %v6865_v53  ;;  %v6875_v40 = vld [vmem:[#allocation64_spill] sm:$0xff]  ;;  %v6876_v53 = vld [vmem:[#allocation65_spill] sm:$0xff] }
 0x345   :  { %2167 = vmatpush.bf16.msra.mxu1 %v6866_v17  ;;  %2193 = vmatpush.bf16.msra.mxu3 %v6867_v37  ;;  %v6877_v17 = vld [vmem:[#allocation67_spill] sm:$0xff]  ;;  %v6878_v37 = vld [vmem:[#allocation66_spill] sm:$0xff] }
 0x347   :  { %2155 = vmatpush.bf16.msra.mxu0 %v6868_v36  ;;  %2181 = vmatpush.bf16.msra.mxu2 %v6869_v3  ;;  %v6879_v36 = vld [vmem:[#allocation70_spill] sm:$0xff]  ;;  %v6880_v3 = vld [vmem:[#allocation73_spill] sm:$0xff] }
 0x349   :  { %2168 = vmatpush.bf16.msra.mxu1 %v6872_v63  ;;  %2194 = vmatpush.bf16.msra.mxu3 %v6873_v15  ;;  %v6883_v63 = vld [vmem:[#allocation76_spill] sm:$0xff]  ;;  %v6884_v15 = vld [vmem:[#allocation77_spill] sm:$0xff] }
 0x34b   :  { %2264 = vmatpush.bf16.msrb.mxu0 %v6870_v6  ;;  %2290 = vmatpush.bf16.msrb.mxu2 %v6871_v2  ;;  %v6881_v6 = vld [vmem:[#allocation75_spill] sm:$0xff]  ;;  %v6882_v2 = vld [vmem:[#allocation74_spill] sm:$0xff] }
 0x34d   :  { %2277 = vmatpush.bf16.msrb.mxu1 %v6874_v0  ;;  %2303 = vmatpush.bf16.msrb.mxu3 %v6875_v40  ;;  %v6885_v0 = vld [vmem:[#allocation80_spill] sm:$0xff]  ;;  %v6886_v40 = vld [vmem:[#allocation79_spill] sm:$0xff] }
 0x34f   :  { %2265 = vmatpush.bf16.msrb.mxu0 %v6876_v53  ;;  %2291 = vmatpush.bf16.msrb.mxu2 %v6877_v17  ;;  %v6887_v53 = vld [vmem:[#allocation82_spill] sm:$0xff]  ;;  %v6888_v17 = vld [vmem:[#allocation83_spill] sm:$0xff] }
 0x351   :  { %2278 = vmatpush.bf16.msrb.mxu1 %v6878_v37  ;;  %2304 = vmatpush.bf16.msrb.mxu3 %v6879_v36  ;;  %v6889_v37 = vld [vmem:[#allocation85_spill] sm:$0xff]  ;;  %v6890_v36 = vld [vmem:[#allocation84_spill] sm:$0xff] }
 0x353   :  { %2266 = vmatpush.bf16.msrb.mxu0 %v6880_v3  ;;  %2292 = vmatpush.bf16.msrb.mxu2 %v6881_v6  ;;  %v6891_v3 = vld [vmem:[#allocation86_spill] sm:$0xff]  ;;  %v6892_v6 = vld [vmem:[#allocation87_spill] sm:$0xff] }
 0x355   :  { %2279 = vmatpush.bf16.msrb.mxu1 %v6882_v2  ;;  %2305 = vmatpush.bf16.msrb.mxu3 %v6883_v63  ;;  %v6893_v2 = vld [vmem:[#allocation89_spill] sm:$0xff]  ;;  %v6894_v63 = vld [vmem:[#allocation88_spill] sm:$0xff] }
 0x357   :  { %2267 = vmatpush.bf16.msrb.mxu0 %v6884_v15  ;;  %2293 = vmatpush.bf16.msrb.mxu2 %v6885_v0  ;;  %v6895_v15 = vld [vmem:[#allocation90_spill] sm:$0xff]  ;;  %v6896_v0 = vld [vmem:[#allocation91_spill] sm:$0xff] }
 0x359   :  { %2280 = vmatpush.bf16.msrb.mxu1 %v6886_v40  ;;  %2306 = vmatpush.bf16.msrb.mxu3 %v6887_v53  ;;  %v6897_v40 = vld [vmem:[#allocation93_spill] sm:$0xff]  ;;  %v6898_v53 = vld [vmem:[#allocation92_spill] sm:$0xff] }
 0x35b   :  { %2268 = vmatpush.bf16.msrb.mxu0 %v6888_v17  ;;  %2294 = vmatpush.bf16.msrb.mxu2 %v6889_v37  ;;  %v6899_v17 = vld [vmem:[#allocation94_spill] sm:$0xff]  ;;  %v6900_v37 = vld [vmem:[#allocation95_spill] sm:$0xff] }
 0x35d   :  { %2281 = vmatpush.bf16.msrb.mxu1 %v6890_v36  ;;  %2307 = vmatpush.bf16.msrb.mxu3 %v6891_v3  ;;  %v6901_v36 = vld [vmem:[#allocation97_spill] sm:$0xff]  ;;  %v6902_v3 = vld [vmem:[#allocation96_spill] sm:$0xff] }
 0x35f   :  { %2269 = vmatpush.bf16.msrb.mxu0 %v6892_v6  ;;  %2295 = vmatpush.bf16.msrb.mxu2 %v6893_v2  ;;  %v6903_v6 = vld [vmem:[#allocation98_spill] sm:$0xff] }
 0x361   :  { %2282 = vmatpush.bf16.msrb.mxu1 %v6894_v63  ;;  %2308 = vmatpush.bf16.msrb.mxu3 %v6895_v15 }
 0x363   :  { %2270 = vmatpush.bf16.msrb.mxu0 %v6896_v0  ;;  %2296 = vmatpush.bf16.msrb.mxu2 %v6897_v40 }
 0x365   :  { %2283 = vmatpush.bf16.msrb.mxu1 %v6898_v53  ;;  %2309 = vmatpush.bf16.msrb.mxu3 %v6899_v17 }
 0x367   :  { %2271 = vmatpush.bf16.msrb.mxu0 %v6900_v37  ;;  %2297 = vmatpush.bf16.msrb.mxu2 %v6901_v36 }
 0x369   :  { %2284 = vmatpush.bf16.msrb.mxu1 %v6902_v3  ;;  %2310 = vmatpush.bf16.msrb.mxu3 %v6903_v6 }
 0x386   :  { %v1873_v2 = vpop.f32.mrf.mxu0  ;;  %v1886_v63 = vpop.f32.mrf.mxu1 }
 0x387   :  { %v1874_v15 = vadd.f32 %v1873_v2, %v6904_v55  ;;  %v1887_v0 = vadd.f32 %v1886_v63, %v6905_v60 }
 0x389   :  { %v3720_v48 = vmul.f32 -1.442695, %v1874_v15  ;;  %v3721_v40 = vmul.f32 -1.442695, %v1887_v0  ;;  %v6907_v0 = vld [vmem:[#allocation55_spill] sm:$0xff] }
 0x38b   :  { %3979 = vpow2.f32 %v3720_v48 }
 0x38c   :  { %3981 = vpow2.f32 %v3721_v40 }
 0x38d   :  { %v1899_v53 = vpop.f32.mrf.mxu2  ;;  %v1912_v17 = vpop.f32.mrf.mxu3 }
 0x38e   :  { %v1900_v37 = vadd.f32 %v1899_v53, %v6906_v27  ;;  %v1875_v25 = vpop.f32.mrf.mxu0  ;;  %v1888_v36 = vpop.f32.mrf.mxu1  ;;  %v1913_v40 = vadd.f32 %v1912_v17, %v6907_v0 }
 0x390   :  { %v3722_v50 = vmul.f32 -1.442695, %v1900_v37 }
 0x391   :  { %v3980_v3 = vpop.eup %3979 }
 0x392   :  { %v3982_v42 = vpop.eup %3981  ;;  %v1925_v6 = vadd.f32 1.0, %v3980_v3  ;;  %3983 = vpow2.f32 %v3722_v50 }
 0x393   :  { %v1926_v26 = vadd.f32 1.0, %v3982_v42 }
 0x394   :  { %3985 = vrcp.f32 %v1925_v6  ;;  %v1939_v3 = vand.u32 2147483648, %v1925_v6  ;;  %vm1933_vm7 = vweird.f32 %v1925_v6 }
 0x395   :  { %3987 = vrcp.f32 %v1926_v26  ;;  %v1901_v55 = vpop.f32.mrf.mxu2  ;;  %v1914_v60 = vpop.f32.mrf.mxu3  ;;  %v1954_v50 = vand.u32 2147483648, %v1926_v26  ;;  %vm1948_vm8 = vweird.f32 %v1926_v26 }
 0x396   :  { %v1989_v2 = vpop.f32.mrf.mxu0  ;;  %v1937_v55 = vand.u32 2147483647, %v1925_v6  ;;  %v1940_v0 = vor.u32 1.1754944e-38, %v1939_v3 }
 0x398   :  { %v3984_v63 = vpop.eup %3983  ;;  %vm1938_vm11 = vcmp.eq.f32.partialorder %v1937_v55, 8.507059e+37 }
 0x399   :  { %v1927_v48 = vadd.f32 1.0, %v3984_v63  ;;  %v1952_v63 = vand.u32 2147483647, %v1926_v26 }
 0x39a   :  { %v3986_v15 = vpop.eup %3985 }
 0x39b   :  { %v3988_v56 = vpop.eup %3987  ;;  %v1929_v27 = vmul.f32 %v3986_v15, %v1925_v6  ;;  %3989 = vrcp.f32 %v1927_v48  ;;  %vm1934_vm5 = vweird.f32 %v3986_v15  ;;  %vm1953_vm12 = vcmp.eq.f32.partialorder %v1952_v63, 8.507059e+37 }
 0x39c   :  { %v1944_v25 = vmul.f32 %v3988_v56, %v1926_v26  ;;  %3991 = vtanh.f32 %v1913_v40  ;;  %vm1949_vm6 = vweird.f32 %v3988_v56  ;;  %vm1935_vm9 = vmor %vm1933_vm7, %vm1934_vm5  ;;  %v1990_v26 = vadd.f32 %v1989_v2, %v6834_v18 }
 0x39d   :  { %v1930_v37 = vsub.f32 1.0, %v1929_v27  ;;  %v2015_v53 = vpop.f32.mrf.mxu2  ;;  %vm1950_vm10 = vmor %vm1948_vm8, %vm1949_vm6  ;;  %vm1963_vm14 = vweird.f32 %v1927_v48 }
 0x39e   :  { %v1945_v36 = vsub.f32 1.0, %v1944_v25  ;;  %v1991_v42 = vpop.f32.mrf.mxu0  ;;  %v1955_v25 = vor.u32 1.1754944e-38, %v1954_v50 }
 0x39f   :  { %v1931_v39 = vmul.f32 %v3986_v15, %v1930_v37 }
 0x3a0   :  { %v1946_v60 = vmul.f32 %v3988_v56, %v1945_v36 }
 0x3a1   :  { %v3990_v23 = vpop.eup %3989  ;;  %v1932_v13 = vadd.f32 %v3986_v15, %v1931_v39 }
 0x3a2   :  { %v1959_v17 = vmul.f32 %v3990_v23, %v1927_v48  ;;  %v1947_v27 = vadd.f32 %v3988_v56, %v1946_v60  ;;  %v3992_v40 = vpop.eup %3991  ;;  %vm1964_vm13 = vweird.f32 %v3990_v23 }
 0x3a3   :  { %v1936_v57 = vsel %vm1935_vm9, %v3986_v15, %v1932_v13  ;;  %v1969_v15 = vand.u32 2147483648, %v1927_v48  ;;  %vm1965_vm15 = vmor %vm1963_vm14, %vm1964_vm13 }
 0x3a4   :  { %v1960_v42 = vsub.f32 1.0, %v1959_v17  ;;  %v1941_v37 = vsel %vm1938_vm11, %v1940_v0, %v1936_v57  ;;  %v1951_v24 = vsel %vm1950_vm10, %v3988_v56, %v1947_v27  ;;  %v1967_v56 = vand.u32 2147483647, %v1927_v48 }
 0x3a5   :  { %v1956_v36 = vsel %vm1953_vm12, %v1955_v25, %v1951_v24  ;;  %v1975_v11 = vmul.f32 %v3992_v40, %v1941_v37  ;;  %v2017_v47 = vpop.f32.mrf.mxu2  ;;  %v2016_v57 = vadd.f32 %v2015_v53, %v6758_v8  ;;  %v1970_v2 = vor.u32 1.1754944e-38, %v1969_v15 }
 0x3a6   :  { %v1961_v16 = vmul.f32 %v3990_v23, %v1960_v42  ;;  %v1974_v39 = vmul.f32 %v1956_v36, %v5755_v12  ;;  %vm1968_vm0 = vcmp.eq.f32.partialorder %v1967_v56, 8.507059e+37 }
 0x3a7   :  { %v2041_v6 = vpop.f32.mrf.mxu0 }
 0x3a8   :  { %v5900_v3 = vadd.f32 %v1975_v11, %v1974_v39  ;;  %v1962_v50 = vadd.f32 %v3990_v23, %v1961_v16  ;;  %v2042_v37 = vadd.f32 %v2041_v6, %v5438_v4 }
 0x3a9   :  { %v2002_v60 = vpop.f32.mrf.mxu1 }
 0x3aa   :  { %v2003_v13 = vadd.f32 %v2002_v60, %v1990_v26  ;;  %3993 = vtanh.f32 %v5900_v3  ;;  %v1966_v47 = vsel %vm1965_vm15, %v3990_v23, %v1962_v50 }
 0x3ab   :  { %v1971_v17 = vsel %vm1968_vm0, %v1970_v2, %v1966_v47 }
 0x3ac   :  { %v3723_v24 = vmul.f32 -1.442695, %v2003_v13 }
 0x3ad   :  { %v2067_v12 = vpop.f32.mrf.mxu2 }
 0x3ae   :  { %3995 = vpow2.f32 %v3723_v24  ;;  %v2068_v15 = vadd.f32 %v2067_v12, %v5455_v35 }
 0x3af   :  { %v2028_v55 = vpop.f32.mrf.mxu3  ;;  %v2043_v11 = vpop.f32.mrf.mxu0 }
 0x3b0   :  { %v2029_v63 = vadd.f32 %v2028_v55, %v2016_v57  ;;  %v3994_v16 = vpop.eup %3993 }
 0x3b1   :  { %v2004_v0 = vpop.f32.mrf.mxu1  ;;  %v1978_v27 = vmul.f32 %v3994_v16, %v1971_v17 }
 0x3b2   :  { %v3724_v25 = vmul.f32 -1.442695, %v2029_v63 }
 0x3b3   :  { %v5904_v42 = vpack.c.bf16 %v1978_v27, %v1978_v27 }
 0x3b4   :  { %v3996_v40 = vpop.eup %3995  ;;  %3997 = vpow2.f32 %v3724_v25 }
 0x3b5   :  { %v5906_v48 = vadd.f32 1.0, %v3996_v40  ;;  %v2069_v23 = vpop.f32.mrf.mxu2  ;;  %2156 = vmatmul.bf16.vlgmr.msra.gmra.mxu0 %v5904_v42  ;;  %2169 = vmatmul.bf16.vlgmr.msra.gmra.mxu1 %v5904_v42  ;;  %v6913_v40 = vld [vmem:[#allocation5_spill] sm:$0xff] }
 0x3b6   :  { %2182 = vmatmul.bf16.vlgmr.msra.gmra.mxu2 %v5904_v42  ;;  %2195 = vmatmul.bf16.vlgmr.msra.gmra.mxu3 %v5904_v42 }
 0x3b7   :  { %3999 = vrcp.f32 %v5906_v48  ;;  %v2030_v53 = vpop.f32.mrf.mxu3  ;;  %2316 = vmatpush.bf16.msra.mxu0 %v5068_v51  ;;  %2342 = vmatpush.bf16.msra.mxu2 %v5078_v41  ;;  %v2107_v17 = vand.u32 2147483648, %v5906_v48  ;;  %vm2101_vm2 = vweird.f32 %v5906_v48  ;;  %v2105_v27 = vand.u32 2147483647, %v5906_v48 }
 0x3b8   :  { %2329 = vmatpush.bf16.msra.mxu1 %v5070_v7  ;;  %2355 = vmatpush.bf16.msra.mxu3 %v5080_v44 }
 0x3b9   :  { %v2054_v36 = vpop.f32.mrf.mxu1  ;;  %vm2106_vm6 = vcmp.eq.f32.partialorder %v2105_v27, 8.507059e+37 }
 0x3ba   :  { %v3998_v39 = vpop.eup %3997  ;;  %v2055_v26 = vadd.f32 %v2054_v36, %v2042_v37 }
 0x3bb   :  { %v2094_v60 = vadd.f32 1.0, %v3998_v39  ;;  %2317 = vmatpush.bf16.msra.mxu0 %v5106_v59  ;;  %2343 = vmatpush.bf16.msra.mxu2 %v6690_v52 }
 0x3bc   :  { %v3725_v50 = vmul.f32 -1.442695, %v2055_v26  ;;  %2330 = vmatpush.bf16.msra.mxu1 %v6691_v58  ;;  %2356 = vmatpush.bf16.msra.mxu3 %v6692_v34 }
 0x3bd   :  { %v4000_v13 = vpop.eup %3999  ;;  %4001 = vrcp.f32 %v2094_v60  ;;  %v2122_v25 = vand.u32 2147483648, %v2094_v60  ;;  %v2120_v36 = vand.u32 2147483647, %v2094_v60  ;;  %vm2116_vm5 = vweird.f32 %v2094_v60 }
 0x3be   :  { %v2097_v6 = vmul.f32 %v4000_v13, %v5906_v48  ;;  %4003 = vpow2.f32 %v3725_v50  ;;  %vm2102_vm1 = vweird.f32 %v4000_v13  ;;  %v2108_v48 = vor.u32 1.1754944e-38, %v2107_v17  ;;  %v6910_v17 = vld [vmem:[#allocation117_spill] sm:$0xff] }
 0x3bf   :  { %v2080_v56 = vpop.f32.mrf.mxu3  ;;  %2318 = vmatpush.bf16.msra.mxu0 %v6693_v43  ;;  %2344 = vmatpush.bf16.msra.mxu2 %v6694_v54  ;;  %vm5936_vm3 = vmor %vm2101_vm2, %vm2102_vm1  ;;  %v2123_v50 = vor.u32 1.1754944e-38, %v2122_v25  ;;  %vm2121_vm8 = vcmp.eq.f32.partialorder %v2120_v36, 8.507059e+37  ;;  %v6912_v25 = vld [vmem:[#allocation3_spill] sm:$0xff]  ;;  %v6915_v36 = vld [vmem:[#allocation9_spill] sm:$0xff] }
 0x3c0   :  { %v2098_v24 = vsub.f32 1.0, %v2097_v6  ;;  %v2081_v47 = vadd.f32 %v2080_v56, %v2068_v15  ;;  %2331 = vmatpush.bf16.msra.mxu1 %v6695_v49  ;;  %2357 = vmatpush.bf16.msra.mxu3 %v6696_v19 }
 0x3c1   :  { %v2056_v57 = vpop.f32.mrf.mxu1 }
 0x3c2   :  { %v2099_v2 = vmul.f32 %v4000_v13, %v2098_v24  ;;  %4005 = vtanh.f32 %v2081_v47 }
 0x3c3   :  { %v4002_v55 = vpop.eup %4001  ;;  %2319 = vmatpush.bf16.msra.mxu0 %v6697_v30  ;;  %2345 = vmatpush.bf16.msra.mxu2 %v6698_v21 }
 0x3c4   :  { %v4004_v11 = vpop.eup %4003  ;;  %v2112_v63 = vmul.f32 %v4002_v55, %v2094_v60  ;;  %v2100_v16 = vadd.f32 %v4000_v13, %v2099_v2  ;;  %2332 = vmatpush.bf16.msra.mxu1 %v6699_v32  ;;  %2358 = vmatpush.bf16.msra.mxu3 %v6700_v22  ;;  %vm2117_vm4 = vweird.f32 %v4002_v55 }
 0x3c5   :  { %v2095_v12 = vadd.f32 1.0, %v4004_v11  ;;  %2272 = vmatmul.bf16.vlgmr.msrb.gmra.mxu0 %v5904_v42  ;;  %vm2118_vm7 = vmor %vm2116_vm5, %vm2117_vm4 }
 0x3c6   :  { %v2113_v0 = vsub.f32 1.0, %v2112_v63  ;;  %2298 = vmatmul.bf16.vlgmr.msrb.gmra.mxu2 %v5904_v42  ;;  %v2104_v37 = vsel %vm5936_vm3, %v4000_v13, %v2100_v16 }
 0x3c7   :  { %4007 = vrcp.f32 %v2095_v12  ;;  %v2082_v23 = vpop.f32.mrf.mxu3  ;;  %2320 = vmatpush.bf16.msra.mxu0 %v6701_v9  ;;  %2346 = vmatpush.bf16.msra.mxu2 %v6702_v31  ;;  %v2109_v6 = vsel %vm2106_vm6, %v2108_v48, %v2104_v37  ;;  %v2135_v63 = vand.u32 2147483647, %v2095_v12  ;;  %vm2131_vm10 = vweird.f32 %v2095_v12  ;;  %v6914_v37 = vld [vmem:[#allocation6_spill] sm:$0xff] }
 0x3c8   :  { %v2114_v53 = vmul.f32 %v4002_v55, %v2113_v0  ;;  %2333 = vmatpush.bf16.msra.mxu1 %v6703_v14  ;;  %2359 = vmatpush.bf16.msra.mxu3 %v6704_v33  ;;  %v4006_v26 = vpop.eup %4005  ;;  %v6911_v0 = vld [vmem:[#allocation119_spill] sm:$0xff] }
 0x3c9   :  { %v2143_v47 = vmul.f32 %v4006_v26, %v2109_v6  ;;  %vm2136_vm12 = vcmp.eq.f32.partialorder %v2135_v63, 8.507059e+37  ;;  %v6917_v26 = vld [vmem:[#allocation13_spill] sm:$0xff]  ;;  %v6919_v6 = vld [vmem:[#allocation7_spill] sm:$0xff]  ;;  %v6930_v63 = vld [vmem:[#allocation16_spill] sm:$0xff] }
 0x3ca   :  { %v2115_v39 = vadd.f32 %v4002_v55, %v2114_v53 }
 0x3cb   :  { %2321 = vmatpush.bf16.msra.mxu0 %v6705_v20  ;;  %2347 = vmatpush.bf16.msra.mxu2 %v5271_v61 }
 0x3cc   :  { %v2119_v15 = vsel %vm2118_vm7, %v4002_v55, %v2115_v39  ;;  %2334 = vmatpush.bf16.msra.mxu1 %v6706_v45  ;;  %2360 = vmatpush.bf16.msra.mxu3 %v6707_v28  ;;  %v2137_v55 = vand.u32 2147483648, %v2095_v12  ;;  %v6916_v39 = vld [vmem:[#allocation10_spill] sm:$0xff] }
 0x3cd   :  { %v4008_v13 = vpop.eup %4007  ;;  %v2124_v56 = vsel %vm2121_vm8, %v2123_v50, %v2119_v15  ;;  %v6918_v50 = vld [vmem:[#allocation4_spill] sm:$0xff]  ;;  %v6920_v15 = vld [vmem:[#allocation14_spill] sm:$0xff] }
 0x3ce   :  { %v2127_v24 = vmul.f32 %v4008_v13, %v2095_v12  ;;  %v2142_v60 = vmul.f32 %v2124_v56, %v5813_v29  ;;  %vm2132_vm9 = vweird.f32 %v4008_v13  ;;  %v2138_v16 = vor.u32 1.1754944e-38, %v2137_v55  ;;  %v6923_v56 = vld [vmem:[#allocation11_spill] sm:$0xff]  ;;  %v6928_v55 = vld [vmem:[#allocation22_spill] sm:$0xff] }
 0x3cf   :  { %2322 = vmatpush.bf16.msra.mxu0 %v5295_v38  ;;  %2348 = vmatpush.bf16.msra.mxu2 %v5307_v1  ;;  %vm2133_vm11 = vmor %vm2131_vm10, %vm2132_vm9 }
 0x3d0   :  { %v2128_v57 = vsub.f32 1.0, %v2127_v24  ;;  %v5952_v2 = vadd.f32 %v2143_v47, %v2142_v60  ;;  %2335 = vmatpush.bf16.msra.mxu1 %v5297_v10  ;;  %2361 = vmatpush.bf16.msra.mxu3 %v5309_v46  ;;  %v6924_v24 = vld [vmem:[#allocation18_spill] sm:$0xff]  ;;  %v6925_v60 = vld [vmem:[#allocation21_spill] sm:$0xff]  ;;  %v6926_v47 = vld [vmem:[#allocation12_spill] sm:$0xff] }
 0x3d2   :  { %v2129_v11 = vmul.f32 %v4008_v13, %v2128_v57  ;;  %4009 = vtanh.f32 %v5952_v2  ;;  %v6927_v57 = vld [vmem:[#allocation15_spill] sm:$0xff] }
 0x3d3   :  { %2323 = vmatpush.bf16.msra.mxu0 %v5331_v62  ;;  %2349 = vmatpush.bf16.msra.mxu2 %v6837_v5 }
 0x3d4   :  { %v2130_v29 = vadd.f32 %v4008_v13, %v2129_v11  ;;  %2336 = vmatpush.bf16.msra.mxu1 %v6910_v17  ;;  %2362 = vmatpush.bf16.msra.mxu3 %v6911_v0  ;;  %v6929_v11 = vld [vmem:[#allocation25_spill] sm:$0xff] }
 0x3d6   :  { %v2134_v27 = vsel %vm2133_vm11, %v4008_v13, %v2130_v29  ;;  %2324 = vmatmul.bf16.vlgmr.msra.gmra.mxu0 %v5904_v42  ;;  %2350 = vmatmul.bf16.vlgmr.msra.gmra.mxu2 %v5904_v42  ;;  %v6921_v42 = vld [vmem:[#allocation17_spill] sm:$0xff]  ;;  %v6922_v13 = vld [vmem:[#allocation8_spill] sm:$0xff]  ;;  %v6931_v29 = vld [vmem:[#allocation19_spill] sm:$0xff] }
 0x3d7   :  { %2432 = vmatpush.bf16.msrb.mxu0 %v6912_v25  ;;  %2458 = vmatpush.bf16.msrb.mxu2 %v6913_v40  ;;  %v2139_v12 = vsel %vm2136_vm12, %v2138_v16, %v2134_v27  ;;  %v6932_v16 = vld [vmem:[#allocation26_spill] sm:$0xff]  ;;  %v6933_v27 = vld [vmem:[#allocation29_spill] sm:$0xff] }
 0x3d8   :  { %v4010_v23 = vpop.eup %4009 }
 0x3d9   :  { %v2146_v53 = vmul.f32 %v4010_v23, %v2139_v12  ;;  %v6934_v12 = vld [vmem:[#allocation20_spill] sm:$0xff]  ;;  %v6935_v23 = vld [vmem:[#allocation23_spill] sm:$0xff] }
 0x3db   :  { %2433 = vmatpush.bf16.msrb.mxu0 %v6914_v37  ;;  %2459 = vmatpush.bf16.msrb.mxu2 %v6915_v36  ;;  %v2263_v48 = vpack.c.bf16 %v2146_v53, %v2146_v53  ;;  %v6936_v53 = vld [vmem:[#allocation30_spill] sm:$0xff] }
 0x3dd   :  { %2285 = vmatmul.bf16.vlgmr.msrb.gmra.mxu1 %v2263_v48  ;;  %2311 = vmatmul.bf16.vlgmr.msrb.gmra.mxu3 %v2263_v48 }
 0x3de   :  { %2445 = vmatpush.bf16.msrb.mxu1 %v6918_v50  ;;  %2471 = vmatpush.bf16.msrb.mxu3 %v6919_v6  ;;  %v6981_v6 = vld [vmem:[#allocation57_spill] sm:$0xff] }
 0x3df   :  { %2434 = vmatpush.bf16.msrb.mxu0 %v6916_v39  ;;  %2460 = vmatpush.bf16.msrb.mxu2 %v6917_v26 }
 0x3e2   :  { %2446 = vmatpush.bf16.msrb.mxu1 %v6922_v13  ;;  %2472 = vmatpush.bf16.msrb.mxu3 %v6923_v56  ;;  %v6979_v56 = vld [vmem:[#allocation56_spill] sm:$0xff] }
 0x3e3   :  { %2435 = vmatpush.bf16.msrb.mxu0 %v6920_v15  ;;  %2461 = vmatpush.bf16.msrb.mxu2 %v6921_v42 }
 0x3e6   :  { %2447 = vmatpush.bf16.msrb.mxu1 %v6926_v47  ;;  %2473 = vmatpush.bf16.msrb.mxu3 %v6927_v57  ;;  %v6937_v57 = vld [vmem:[#allocation33_spill] sm:$0xff] }
 0x3e7   :  { %2436 = vmatpush.bf16.msrb.mxu0 %v6924_v24  ;;  %2462 = vmatpush.bf16.msrb.mxu2 %v6925_v60  ;;  %v6938_v47 = vld [vmem:[#allocation61_spill] sm:$0xff] }
 0x3ea   :  { %2448 = vmatpush.bf16.msrb.mxu1 %v6930_v63  ;;  %2474 = vmatpush.bf16.msrb.mxu3 %v6931_v29  ;;  %v6940_v63 = vld [vmem:[#allocation24_spill] sm:$0xff] }
 0x3eb   :  { %2437 = vmatpush.bf16.msrb.mxu0 %v6928_v55  ;;  %2463 = vmatpush.bf16.msrb.mxu2 %v6929_v11  ;;  %v6939_v11 = vld [vmem:[#allocation63_spill] sm:$0xff]  ;;  %v6941_v29 = vld [vmem:[#allocation28_spill] sm:$0xff] }
 0x3ed   :  { %2337 = vmatmul.bf16.vlgmr.msra.gmra.mxu1 %v2263_v48  ;;  %2363 = vmatmul.bf16.vlgmr.msra.gmra.mxu3 %v2263_v48  ;;  %v6942_v48 = vld [vmem:[#allocation65_spill] sm:$0xff] }
 0x3ee   :  { %2449 = vmatpush.bf16.msrb.mxu1 %v6934_v12  ;;  %2475 = vmatpush.bf16.msrb.mxu3 %v6935_v23  ;;  %v6945_v12 = vld [vmem:[#allocation31_spill] sm:$0xff]  ;;  %v6946_v23 = vld [vmem:[#allocation73_spill] sm:$0xff] }
 0x3ef   :  { %2438 = vmatpush.bf16.msrb.mxu0 %v6932_v16  ;;  %2464 = vmatpush.bf16.msrb.mxu2 %v6933_v27  ;;  %v6943_v16 = vld [vmem:[#allocation67_spill] sm:$0xff] }
 0x3f0   :  { %v6944_v27 = vld [vmem:[#allocation27_spill] sm:$0xff] }
 0x3f2   :  { %2450 = vmatpush.bf16.msrb.mxu1 %v6940_v63  ;;  %2476 = vmatpush.bf16.msrb.mxu3 %v6941_v29  ;;  %v6951_v63 = vld [vmem:[#allocation64_spill] sm:$0xff]  ;;  %v6952_v29 = vld [vmem:[#allocation77_spill] sm:$0xff] }
 0x3f3   :  { %2439 = vmatpush.bf16.msrb.mxu0 %v6936_v53  ;;  %2465 = vmatpush.bf16.msrb.mxu2 %v6937_v57  ;;  %v6947_v53 = vld [vmem:[#allocation75_spill] sm:$0xff]  ;;  %v6948_v57 = vld [vmem:[#allocation32_spill] sm:$0xff] }
 0x3f6   :  { %2451 = vmatpush.bf16.msrb.mxu1 %v6944_v27  ;;  %2477 = vmatpush.bf16.msrb.mxu3 %v6945_v12  ;;  %v6955_v27 = vld [vmem:[#allocation70_spill] sm:$0xff]  ;;  %v6956_v12 = vld [vmem:[#allocation83_spill] sm:$0xff] }
 0x3f7   :  { %2548 = vmatpush.bf16.msra.mxu0 %v6938_v47  ;;  %2574 = vmatpush.bf16.msra.mxu2 %v6939_v11  ;;  %v6949_v47 = vld [vmem:[#allocation34_spill] sm:$0xff] }
 0x3f8   :  { %v6950_v11 = vld [vmem:[#allocation62_spill] sm:$0xff] }
 0x3fa   :  { %2452 = vmatpush.bf16.msrb.mxu1 %v6948_v57  ;;  %2478 = vmatpush.bf16.msrb.mxu3 %v6949_v47  ;;  %v6959_v57 = vld [vmem:[#allocation76_spill] sm:$0xff]  ;;  %v6960_v47 = vld [vmem:[#allocation87_spill] sm:$0xff] }
 0x3fb   :  { %2549 = vmatpush.bf16.msra.mxu0 %v6942_v48  ;;  %2575 = vmatpush.bf16.msra.mxu2 %v6943_v16  ;;  %v6953_v48 = vld [vmem:[#allocation80_spill] sm:$0xff]  ;;  %v6954_v16 = vld [vmem:[#allocation66_spill] sm:$0xff] }
 0x3fe   :  { %2561 = vmatpush.bf16.msra.mxu1 %v6950_v11  ;;  %2587 = vmatpush.bf16.msra.mxu3 %v6951_v63  ;;  %v6961_v11 = vld [vmem:[#allocation89_spill] sm:$0xff]  ;;  %v6962_v63 = vld [vmem:[#allocation79_spill] sm:$0xff] }
 0x3ff   :  { %2550 = vmatpush.bf16.msra.mxu0 %v6946_v23  ;;  %2576 = vmatpush.bf16.msra.mxu2 %v6947_v53  ;;  %v6957_v23 = vld [vmem:[#allocation85_spill] sm:$0xff]  ;;  %v6958_v53 = vld [vmem:[#allocation74_spill] sm:$0xff] }
 0x402   :  { %2562 = vmatpush.bf16.msra.mxu1 %v6954_v16  ;;  %2588 = vmatpush.bf16.msra.mxu3 %v6955_v27  ;;  %v6965_v16 = vld [vmem:[#allocation93_spill] sm:$0xff]  ;;  %v6966_v27 = vld [vmem:[#allocation84_spill] sm:$0xff] }
 0x403   :  { %2551 = vmatpush.bf16.msra.mxu0 %v6952_v29  ;;  %2577 = vmatpush.bf16.msra.mxu2 %v6953_v48  ;;  %v6963_v29 = vld [vmem:[#allocation82_spill] sm:$0xff]  ;;  %v6964_v48 = vld [vmem:[#allocation91_spill] sm:$0xff] }
 0x406   :  { %2563 = vmatpush.bf16.msra.mxu1 %v6958_v53  ;;  %2589 = vmatpush.bf16.msra.mxu3 %v6959_v57  ;;  %v6969_v53 = vld [vmem:[#allocation97_spill] sm:$0xff]  ;;  %v6970_v57 = vld [vmem:[#allocation88_spill] sm:$0xff] }
 0x407   :  { %2552 = vmatpush.bf16.msra.mxu0 %v6956_v12  ;;  %2578 = vmatpush.bf16.msra.mxu2 %v6957_v23  ;;  %v6967_v12 = vld [vmem:[#allocation86_spill] sm:$0xff]  ;;  %v6968_v23 = vld [vmem:[#allocation95_spill] sm:$0xff] }
 0x40a   :  { %2564 = vmatpush.bf16.msra.mxu1 %v6962_v63  ;;  %2590 = vmatpush.bf16.msra.mxu3 %v6963_v29  ;;  %v6973_v63 = vld [vmem:[#allocation94_spill] sm:$0xff]  ;;  %v6974_v29 = vld [vmem:[#allocation96_spill] sm:$0xff] }
 0x40b   :  { %2553 = vmatpush.bf16.msra.mxu0 %v6960_v47  ;;  %2579 = vmatpush.bf16.msra.mxu2 %v6961_v11  ;;  %v6971_v47 = vld [vmem:[#allocation90_spill] sm:$0xff]  ;;  %v6972_v11 = vld [vmem:[#allocation92_spill] sm:$0xff] }
 0x40e   :  { %2565 = vmatpush.bf16.msra.mxu1 %v6966_v27  ;;  %2591 = vmatpush.bf16.msra.mxu3 %v6967_v12  ;;  %v6977_v27 = vld [vmem:[#allocation54_spill] sm:$0xff]  ;;  %v6978_v12 = vld [vmem:[#allocation39_spill] sm:$0xff] }
 0x40f   :  { %2554 = vmatpush.bf16.msra.mxu0 %v6964_v48  ;;  %2580 = vmatpush.bf16.msra.mxu2 %v6965_v16  ;;  %v6975_v48 = vld [vmem:[#allocation98_spill] sm:$0xff]  ;;  %v6976_v16 = vld [vmem:[#allocation37_spill] sm:$0xff] }
 0x410   :  { %v209_v55 = vadd.f32 %v6977_v27, %v6976_v16 }
 0x412   :  { %2566 = vmatpush.bf16.msra.mxu1 %v6970_v57  ;;  %2592 = vmatpush.bf16.msra.mxu3 %v6971_v47 }
 0x413   :  { %2555 = vmatpush.bf16.msra.mxu0 %v6968_v23  ;;  %2581 = vmatpush.bf16.msra.mxu2 %v6969_v53  ;;  %v238_v23 = vadd.f32 %v6979_v56, %v6978_v12 }
 0x416   :  { %2567 = vmatpush.bf16.msra.mxu1 %v6972_v11  ;;  %2593 = vmatpush.bf16.msra.mxu3 %v6973_v63  ;;  %v6980_v11 = vld [vmem:[#allocation43_spill] sm:$0xff] }
 0x417   :  { %v267_v63 = vadd.f32 %v6981_v6, %v6980_v11  ;;  %v6983_v6 = vld [vmem:[#allocation58_spill] sm:$0xff] }
 0x41a   :  { %2568 = vmatpush.bf16.msra.mxu1 %v6974_v29  ;;  %2594 = vmatpush.bf16.msra.mxu3 %v6975_v48 }
 0x432   :  { %v2157_v13 = vpop.f32.mrf.mxu0  ;;  %v2170_v53 = vpop.f32.mrf.mxu1 }
 0x433   :  { %v2158_v60 = vadd.f32 %v2157_v13, %v209_v55  ;;  %v2171_v57 = vadd.f32 %v2170_v53, %v238_v23  ;;  %v6982_v55 = vld [vmem:[#allocation44_spill] sm:$0xff] }
 0x435   :  { %v3726_v24 = vmul.f32 -1.442695, %v2158_v60  ;;  %v3727_v47 = vmul.f32 -1.442695, %v2171_v57 }
 0x437   :  { %4011 = vpow2.f32 %v3726_v24 }
 0x438   :  { %4013 = vpow2.f32 %v3727_v47  ;;  %v296_v47 = vadd.f32 %v6983_v6, %v6982_v55 }
 0x439   :  { %v2183_v29 = vpop.f32.mrf.mxu2  ;;  %v2196_v50 = vpop.f32.mrf.mxu3 }
 0x43a   :  { %v2184_v48 = vadd.f32 %v2183_v29, %v267_v63  ;;  %v2159_v42 = vpop.f32.mrf.mxu0  ;;  %v2172_v15 = vpop.f32.mrf.mxu1  ;;  %v2197_v63 = vadd.f32 %v2196_v50, %v296_v47 }
 0x43c   :  { %v3728_v27 = vmul.f32 -1.442695, %v2184_v48 }
 0x43d   :  { %v4012_v16 = vpop.eup %4011 }
 0x43e   :  { %v4014_v26 = vpop.eup %4013  ;;  %v2209_v56 = vadd.f32 1.0, %v4012_v16  ;;  %4015 = vpow2.f32 %v3728_v27 }
 0x43f   :  { %v2210_v12 = vadd.f32 1.0, %v4014_v26 }
 0x440   :  { %4017 = vrcp.f32 %v2209_v56  ;;  %v2223_v26 = vand.u32 2147483648, %v2209_v56  ;;  %v2221_v39 = vand.u32 2147483647, %v2209_v56  ;;  %vm2217_vm15 = vweird.f32 %v2209_v56 }
 0x441   :  { %4019 = vrcp.f32 %v2210_v12  ;;  %v2185_v13 = vpop.f32.mrf.mxu2  ;;  %v2198_v60 = vpop.f32.mrf.mxu3  ;;  %v2236_v6 = vand.u32 2147483647, %v2210_v12  ;;  %vm2232_vm0 = vweird.f32 %v2210_v12 }
 0x442   :  { %v2273_v24 = vpop.f32.mrf.mxu0  ;;  %v2238_v13 = vand.u32 2147483648, %v2210_v12  ;;  %v2224_v47 = vor.u32 1.1754944e-38, %v2223_v26  ;;  %vm2222_vm3 = vcmp.eq.f32.partialorder %v2221_v39, 8.507059e+37 }
 0x443   :  { %vm2237_vm4 = vcmp.eq.f32.partialorder %v2236_v6, 8.507059e+37 }
 0x444   :  { %v4016_v57 = vpop.eup %4015 }
 0x445   :  { %v2211_v23 = vadd.f32 1.0, %v4016_v57 }
 0x446   :  { %v4018_v53 = vpop.eup %4017 }
 0x447   :  { %v4020_v42 = vpop.eup %4019  ;;  %v2213_v15 = vmul.f32 %v4018_v53, %v2209_v56  ;;  %4021 = vrcp.f32 %v2211_v23  ;;  %vm2218_vm13 = vweird.f32 %v4018_v53  ;;  %vm2247_vm6 = vweird.f32 %v2211_v23 }
 0x448   :  { %v2228_v29 = vmul.f32 %v4020_v42, %v2210_v12  ;;  %4023 = vtanh.f32 %v2197_v63  ;;  %vm2233_vm14 = vweird.f32 %v4020_v42  ;;  %vm2219_vm1 = vmor %vm2217_vm15, %vm2218_vm13  ;;  %v2251_v39 = vand.u32 2147483647, %v2211_v23 }
 0x449   :  { %v2214_v48 = vsub.f32 1.0, %v2213_v15  ;;  %v2299_v16 = vpop.f32.mrf.mxu2  ;;  %vm2234_vm2 = vmor %vm2232_vm0, %vm2233_vm14 }
 0x44a   :  { %v2229_v27 = vsub.f32 1.0, %v2228_v29  ;;  %v2275_v11 = vpop.f32.mrf.mxu0  ;;  %v2239_v29 = vor.u32 1.1754944e-38, %v2238_v13  ;;  %vm2252_vm8 = vcmp.eq.f32.partialorder %v2251_v39, 8.507059e+37 }
 0x44b   :  { %v2215_v60 = vmul.f32 %v4018_v53, %v2214_v48 }
 0x44c   :  { %v2230_v36 = vmul.f32 %v4020_v42, %v2229_v27 }
 0x44d   :  { %v4022_v57 = vpop.eup %4021  ;;  %v2216_v55 = vadd.f32 %v4018_v53, %v2215_v60 }
 0x44e   :  { %v2243_v50 = vmul.f32 %v4022_v57, %v2211_v23  ;;  %v2231_v15 = vadd.f32 %v4020_v42, %v2230_v36  ;;  %v4024_v11 = vpop.eup %4023  ;;  %vm2248_vm5 = vweird.f32 %v4022_v57  ;;  %v2253_v36 = vand.u32 2147483648, %v2211_v23 }
 0x44f   :  { %v2220_v37 = vsel %vm2219_vm1, %v4018_v53, %v2216_v55  ;;  %vm2249_vm7 = vmor %vm2247_vm6, %vm2248_vm5 }
 0x450   :  { %v2244_v63 = vsub.f32 1.0, %v2243_v50  ;;  %v2225_v48 = vsel %vm2222_vm3, %v2224_v47, %v2220_v37  ;;  %v2235_v40 = vsel %vm2234_vm2, %v4020_v42, %v2231_v15  ;;  %v2274_v37 = vadd.f32 %v2273_v24, %v6834_v18 }
 0x451   :  { %v2240_v27 = vsel %vm2237_vm4, %v2239_v29, %v2235_v40  ;;  %v2259_v25 = vmul.f32 %v4024_v11, %v2225_v48  ;;  %v2301_v0 = vpop.f32.mrf.mxu2  ;;  %v2300_v50 = vadd.f32 %v2299_v16, %v6758_v8 }
 0x452   :  { %v2245_v17 = vmul.f32 %v4022_v57, %v2244_v63  ;;  %v2258_v56 = vmul.f32 %v2240_v27, %v5900_v3  ;;  %v2254_v0 = vor.u32 1.1754944e-38, %v2253_v36 }
 0x453   :  { %v2325_v12 = vpop.f32.mrf.mxu0 }
 0x454   :  { %v6038_v60 = vadd.f32 %v2259_v25, %v2258_v56  ;;  %v2246_v26 = vadd.f32 %v4022_v57, %v2245_v17  ;;  %v2326_v48 = vadd.f32 %v2325_v12, %v5438_v4 }
 0x456   :  { %4025 = vtanh.f32 %v6038_v60  ;;  %v2250_v55 = vsel %vm2249_vm7, %v4022_v57, %v2246_v26 }
 0x457   :  { %v2255_v25 = vsel %vm2252_vm8, %v2254_v0, %v2250_v55 }
 0x459   :  { %v2351_v40 = vpop.f32.mrf.mxu2 }
 0x45a   :  { %v2286_v53 = vpop.f32.mrf.mxu1  ;;  %v2352_v55 = vadd.f32 %v2351_v40, %v5455_v35 }
 0x45b   :  { %v2287_v42 = vadd.f32 %v2286_v53, %v2274_v37  ;;  %v2327_v3 = vpop.f32.mrf.mxu0 }
 0x45c   :  { %v4026_v13 = vpop.eup %4025 }
 0x45d   :  { %v3729_v6 = vmul.f32 -1.442695, %v2287_v42  ;;  %v2262_v17 = vmul.f32 %v4026_v13, %v2255_v25 }
 0x45f   :  { %4027 = vpow2.f32 %v3729_v6  ;;  %v6043_v47 = vpack.c.bf16 %v2262_v17, %v2262_v17 }
 0x460   :  { %v2312_v23 = vpop.f32.mrf.mxu3 }
 0x461   :  { %v2313_v15 = vadd.f32 %v2312_v23, %v2300_v50  ;;  %v2353_v29 = vpop.f32.mrf.mxu2  ;;  %2440 = vmatmul.bf16.vlgmr.msrb.gmra.mxu0 %v6043_v47  ;;  %2453 = vmatmul.bf16.vlgmr.msrb.gmra.mxu1 %v6043_v47 }
 0x462   :  { %v2288_v24 = vpop.f32.mrf.mxu1  ;;  %2466 = vmatmul.bf16.vlgmr.msrb.gmra.mxu2 %v6043_v47  ;;  %2479 = vmatmul.bf16.vlgmr.msrb.gmra.mxu3 %v6043_v47 }
 0x463   :  { %v3730_v57 = vmul.f32 -1.442695, %v2313_v15  ;;  %2600 = vmatpush.bf16.msrb.mxu0 %v5068_v51  ;;  %2626 = vmatpush.bf16.msrb.mxu2 %v5078_v41 }
 0x464   :  { %2613 = vmatpush.bf16.msrb.mxu1 %v5070_v7  ;;  %2639 = vmatpush.bf16.msrb.mxu3 %v5080_v44 }
 0x465   :  { %v4028_v16 = vpop.eup %4027  ;;  %4029 = vpow2.f32 %v3730_v57  ;;  %v6991_v57 = vld [vmem:[#allocation6_spill] sm:$0xff] }
 0x466   :  { %v2377_v11 = vadd.f32 1.0, %v4028_v16 }
 0x467   :  { %2601 = vmatpush.bf16.msrb.mxu0 %v5106_v59  ;;  %2627 = vmatpush.bf16.msrb.mxu2 %v6690_v52 }
 0x468   :  { %4031 = vrcp.f32 %v2377_v11  ;;  %v2314_v63 = vpop.f32.mrf.mxu3  ;;  %2614 = vmatpush.bf16.msrb.mxu1 %v6691_v58  ;;  %2640 = vmatpush.bf16.msrb.mxu3 %v6692_v34  ;;  %v2391_v23 = vand.u32 2147483648, %v2377_v11  ;;  %vm2385_vm10 = vweird.f32 %v2377_v11  ;;  %v2389_v29 = vand.u32 2147483647, %v2377_v11 }
 0x46a   :  { %v2338_v27 = vpop.f32.mrf.mxu1  ;;  %vm2390_vm14 = vcmp.eq.f32.partialorder %v2389_v29, 8.507059e+37 }
 0x46b   :  { %v4030_v56 = vpop.eup %4029  ;;  %v2339_v26 = vadd.f32 %v2338_v27, %v2326_v48  ;;  %2602 = vmatpush.bf16.msrb.mxu0 %v6693_v43  ;;  %2628 = vmatpush.bf16.msrb.mxu2 %v6694_v54 }
 0x46c   :  { %v2378_v36 = vadd.f32 1.0, %v4030_v56  ;;  %2615 = vmatpush.bf16.msrb.mxu1 %v6695_v49  ;;  %2641 = vmatpush.bf16.msrb.mxu3 %v6696_v19 }
 0x46d   :  { %v3731_v39 = vmul.f32 -1.442695, %v2339_v26 }
 0x46e   :  { %v4032_v37 = vpop.eup %4031  ;;  %4033 = vrcp.f32 %v2378_v36  ;;  %v2406_v24 = vand.u32 2147483648, %v2378_v36  ;;  %v2404_v27 = vand.u32 2147483647, %v2378_v36  ;;  %vm2400_vm13 = vweird.f32 %v2378_v36 }
 0x46f   :  { %v2381_v12 = vmul.f32 %v4032_v37, %v2377_v11  ;;  %4035 = vpow2.f32 %v3731_v39  ;;  %2603 = vmatpush.bf16.msrb.mxu0 %v6697_v30  ;;  %2629 = vmatpush.bf16.msrb.mxu2 %v6698_v21  ;;  %vm2386_vm9 = vweird.f32 %v4032_v37  ;;  %v2392_v11 = vor.u32 1.1754944e-38, %v2391_v23  ;;  %v6990_v23 = vld [vmem:[#allocation5_spill] sm:$0xff] }
 0x470   :  { %v2364_v53 = vpop.f32.mrf.mxu3  ;;  %2616 = vmatpush.bf16.msrb.mxu1 %v6699_v32  ;;  %2642 = vmatpush.bf16.msrb.mxu3 %v6700_v22  ;;  %vm6073_vm11 = vmor %vm2385_vm10, %vm2386_vm9  ;;  %v2407_v39 = vor.u32 1.1754944e-38, %v2406_v24  ;;  %vm2405_vm0 = vcmp.eq.f32.partialorder %v2404_v27, 8.507059e+37 }
 0x471   :  { %v2382_v0 = vsub.f32 1.0, %v2381_v12  ;;  %2556 = vmatmul.bf16.vlgmr.msra.gmra.mxu0 %v6043_v47  ;;  %v2365_v42 = vadd.f32 %v2364_v53, %v2352_v55 }
 0x472   :  { %v2340_v3 = vpop.f32.mrf.mxu1  ;;  %2582 = vmatmul.bf16.vlgmr.msra.gmra.mxu2 %v6043_v47 }
 0x473   :  { %v2383_v13 = vmul.f32 %v4032_v37, %v2382_v0  ;;  %2604 = vmatpush.bf16.msrb.mxu0 %v6701_v9  ;;  %2630 = vmatpush.bf16.msrb.mxu2 %v6702_v31  ;;  %4037 = vtanh.f32 %v2365_v42 }
 0x474   :  { %v4034_v25 = vpop.eup %4033  ;;  %2617 = vmatpush.bf16.msrb.mxu1 %v6703_v14  ;;  %2643 = vmatpush.bf16.msrb.mxu3 %v6704_v33 }
 0x475   :  { %v4036_v40 = vpop.eup %4035  ;;  %v2396_v6 = vmul.f32 %v4034_v25, %v2378_v36  ;;  %v2384_v17 = vadd.f32 %v4032_v37, %v2383_v13  ;;  %vm2401_vm12 = vweird.f32 %v4034_v25 }
 0x476   :  { %v2379_v50 = vadd.f32 1.0, %v4036_v40  ;;  %vm2402_vm15 = vmor %vm2400_vm13, %vm2401_vm12  ;;  %v6987_v40 = vld [vmem:[#allocation117_spill] sm:$0xff] }
 0x477   :  { %v2397_v15 = vsub.f32 1.0, %v2396_v6  ;;  %2605 = vmatpush.bf16.msrb.mxu0 %v6705_v20  ;;  %2631 = vmatpush.bf16.msrb.mxu2 %v5271_v61  ;;  %v2388_v48 = vsel %vm6073_vm11, %v4032_v37, %v2384_v17  ;;  %v6989_v17 = vld [vmem:[#allocation3_spill] sm:$0xff] }
 0x478   :  { %4039 = vrcp.f32 %v2379_v50  ;;  %v2366_v16 = vpop.f32.mrf.mxu3  ;;  %2618 = vmatpush.bf16.msrb.mxu1 %v6706_v45  ;;  %2644 = vmatpush.bf16.msrb.mxu3 %v6707_v28  ;;  %v2393_v12 = vsel %vm2390_vm14, %v2392_v11, %v2388_v48  ;;  %v2421_v6 = vand.u32 2147483648, %v2379_v50  ;;  %vm2415_vm2 = vweird.f32 %v2379_v50 }
 0x479   :  { %v2398_v63 = vmul.f32 %v4034_v25, %v2397_v15  ;;  %v4038_v26 = vpop.eup %4037  ;;  %v6992_v16 = vld [vmem:[#allocation9_spill] sm:$0xff] }
 0x47a   :  { %v2427_v42 = vmul.f32 %v4038_v26, %v2393_v12  ;;  %v2422_v24 = vor.u32 1.1754944e-38, %v2421_v6  ;;  %v6994_v26 = vld [vmem:[#allocation13_spill] sm:$0xff]  ;;  %v6997_v12 = vld [vmem:[#allocation4_spill] sm:$0xff] }
 0x47b   :  { %v2399_v56 = vadd.f32 %v4034_v25, %v2398_v63  ;;  %2606 = vmatpush.bf16.msrb.mxu0 %v5295_v38  ;;  %2632 = vmatpush.bf16.msrb.mxu2 %v5307_v1  ;;  %v7005_v6 = vld [vmem:[#allocation12_spill] sm:$0xff] }
 0x47c   :  { %2619 = vmatpush.bf16.msrb.mxu1 %v5297_v10  ;;  %2645 = vmatpush.bf16.msrb.mxu3 %v5309_v46 }
 0x47d   :  { %v2403_v55 = vsel %vm2402_vm15, %v4034_v25, %v2399_v56  ;;  %v6988_v25 = vld [vmem:[#allocation119_spill] sm:$0xff]  ;;  %v6993_v56 = vld [vmem:[#allocation10_spill] sm:$0xff] }
 0x47e   :  { %v4040_v37 = vpop.eup %4039  ;;  %v2408_v53 = vsel %vm2405_vm0, %v2407_v39, %v2403_v55  ;;  %v6998_v55 = vld [vmem:[#allocation7_spill] sm:$0xff] }
 0x47f   :  { %v2411_v0 = vmul.f32 %v4040_v37, %v2379_v50  ;;  %v2426_v36 = vmul.f32 %v2408_v53, %v5952_v2  ;;  %2607 = vmatpush.bf16.msrb.mxu0 %v5331_v62  ;;  %2633 = vmatpush.bf16.msrb.mxu2 %v6837_v5  ;;  %vm2416_vm1 = vweird.f32 %v4040_v37  ;;  %v2419_v2 = vand.u32 2147483647, %v2379_v50  ;;  %v6996_v50 = vld [vmem:[#allocation17_spill] sm:$0xff] }
 0x480   :  { %2620 = vmatpush.bf16.msrb.mxu1 %v6987_v40  ;;  %2646 = vmatpush.bf16.msrb.mxu3 %v6988_v25  ;;  %vm2417_vm3 = vmor %vm2415_vm2, %vm2416_vm1  ;;  %v7000_v53 = vld [vmem:[#allocation21_spill] sm:$0xff] }
 0x481   :  { %v2412_v3 = vsub.f32 1.0, %v2411_v0  ;;  %v6090_v13 = vadd.f32 %v2427_v42, %v2426_v36  ;;  %vm2420_vm4 = vcmp.eq.f32.partialorder %v2419_v2, 8.507059e+37  ;;  %v7001_v0 = vld [vmem:[#allocation8_spill] sm:$0xff]  ;;  %v7002_v36 = vld [vmem:[#allocation11_spill] sm:$0xff]  ;;  %v7003_v42 = vld [vmem:[#allocation22_spill] sm:$0xff] }
 0x482   :  { %2608 = vmatmul.bf16.vlgmr.msrb.gmra.mxu0 %v6043_v47  ;;  %2634 = vmatmul.bf16.vlgmr.msrb.gmra.mxu2 %v6043_v47  ;;  %v6995_v47 = vld [vmem:[#allocation14_spill] sm:$0xff]  ;;  %v7009_v2 = vld [vmem:[#allocation16_spill] sm:$0xff] }
 0x483   :  { %6986 = vst [vmem:[#allocation38_spill] sm:$0xff] %v6090_v13  ;;  %2716 = vmatpush.bf16.msra.mxu0 %v6989_v17  ;;  %2742 = vmatpush.bf16.msra.mxu2 %v6990_v23  ;;  %v2413_v15 = vmul.f32 %v4040_v37, %v2412_v3  ;;  %4041 = vtanh.f32 %v6090_v13  ;;  %v7004_v3 = vld [vmem:[#allocation25_spill] sm:$0xff]  ;;  %v7006_v17 = vld [vmem:[#allocation15_spill] sm:$0xff]  ;;  %v7007_v23 = vld [vmem:[#allocation26_spill] sm:$0xff] }
 0x485   :  { %v2414_v29 = vadd.f32 %v4040_v37, %v2413_v15  ;;  %v7008_v15 = vld [vmem:[#allocation29_spill] sm:$0xff] }
 0x487   :  { %2717 = vmatpush.bf16.msra.mxu0 %v6991_v57  ;;  %2743 = vmatpush.bf16.msra.mxu2 %v6992_v16  ;;  %v2418_v63 = vsel %vm2417_vm3, %v4040_v37, %v2414_v29  ;;  %v6999_v37 = vld [vmem:[#allocation18_spill] sm:$0xff]  ;;  %v7010_v29 = vld [vmem:[#allocation19_spill] sm:$0xff]  ;;  %v7012_v57 = vld [vmem:[#allocation33_spill] sm:$0xff] }
 0x488   :  { %v2423_v48 = vsel %vm2420_vm4, %v2422_v24, %v2418_v63  ;;  %v7011_v24 = vld [vmem:[#allocation30_spill] sm:$0xff]  ;;  %v7013_v16 = vld [vmem:[#allocation61_spill] sm:$0xff]  ;;  %v7014_v63 = vld [vmem:[#allocation63_spill] sm:$0xff] }
 0x489   :  { %v4042_v27 = vpop.eup %4041 }
 0x48a   :  { %v2430_v11 = vmul.f32 %v4042_v27, %v2423_v48  ;;  %v7015_v48 = vld [vmem:[#allocation20_spill] sm:$0xff]  ;;  %v7016_v27 = vld [vmem:[#allocation23_spill] sm:$0xff] }
 0x48b   :  { %2718 = vmatpush.bf16.msra.mxu0 %v6993_v56  ;;  %2744 = vmatpush.bf16.msra.mxu2 %v6994_v26  ;;  %v7018_v56 = vld [vmem:[#allocation67_spill] sm:$0xff]  ;;  %v7019_v26 = vld [vmem:[#allocation24_spill] sm:$0xff] }
 0x48c   :  { %v2547_v39 = vpack.c.bf16 %v2430_v11, %v2430_v11  ;;  %v7017_v11 = vld [vmem:[#allocation65_spill] sm:$0xff] }
 0x48e   :  { %2569 = vmatmul.bf16.vlgmr.msra.gmra.mxu1 %v2547_v39  ;;  %2595 = vmatmul.bf16.vlgmr.msra.gmra.mxu3 %v2547_v39 }
 0x48f   :  { %2719 = vmatpush.bf16.msra.mxu0 %v6995_v47  ;;  %2745 = vmatpush.bf16.msra.mxu2 %v6996_v50  ;;  %v7020_v47 = vld [vmem:[#allocation28_spill] sm:$0xff]  ;;  %v7022_v50 = vld [vmem:[#allocation75_spill] sm:$0xff] }
 0x490   :  { %2729 = vmatpush.bf16.msra.mxu1 %v6997_v12  ;;  %2755 = vmatpush.bf16.msra.mxu3 %v6998_v55  ;;  %v7023_v12 = vld [vmem:[#allocation27_spill] sm:$0xff] }
 0x491   :  { %v7024_v55 = vld [vmem:[#allocation31_spill] sm:$0xff] }
 0x493   :  { %2720 = vmatpush.bf16.msra.mxu0 %v6999_v37  ;;  %2746 = vmatpush.bf16.msra.mxu2 %v7000_v53  ;;  %v7025_v37 = vld [vmem:[#allocation77_spill] sm:$0xff]  ;;  %v7026_v53 = vld [vmem:[#allocation80_spill] sm:$0xff] }
 0x494   :  { %2730 = vmatpush.bf16.msra.mxu1 %v7001_v0  ;;  %2756 = vmatpush.bf16.msra.mxu3 %v7002_v36  ;;  %v7027_v0 = vld [vmem:[#allocation32_spill] sm:$0xff]  ;;  %v7028_v36 = vld [vmem:[#allocation34_spill] sm:$0xff] }
 0x497   :  { %2721 = vmatpush.bf16.msra.mxu0 %v7003_v42  ;;  %2747 = vmatpush.bf16.msra.mxu2 %v7004_v3  ;;  %v7029_v42 = vld [vmem:[#allocation62_spill] sm:$0xff]  ;;  %v7030_v3 = vld [vmem:[#allocation64_spill] sm:$0xff] }
 0x498   :  { %2731 = vmatpush.bf16.msra.mxu1 %v7005_v6  ;;  %2757 = vmatpush.bf16.msra.mxu3 %v7006_v17  ;;  %v7031_v6 = vld [vmem:[#allocation83_spill] sm:$0xff]  ;;  %v7032_v17 = vld [vmem:[#allocation85_spill] sm:$0xff] }
 0x49b   :  { %2722 = vmatpush.bf16.msra.mxu0 %v7007_v23  ;;  %2748 = vmatpush.bf16.msra.mxu2 %v7008_v15  ;;  %v7033_v23 = vld [vmem:[#allocation66_spill] sm:$0xff] }
 0x49c   :  { %2732 = vmatpush.bf16.msra.mxu1 %v7009_v2  ;;  %2758 = vmatpush.bf16.msra.mxu3 %v7010_v29  ;;  %v7034_v15 = vld [vmem:[#allocation70_spill] sm:$0xff]  ;;  %v7035_v2 = vld [vmem:[#allocation87_spill] sm:$0xff]  ;;  %v7036_v29 = vld [vmem:[#allocation89_spill] sm:$0xff] }
 0x49e   :  { %2621 = vmatmul.bf16.vlgmr.msrb.gmra.mxu1 %v2547_v39  ;;  %2647 = vmatmul.bf16.vlgmr.msrb.gmra.mxu3 %v2547_v39  ;;  %v7021_v39 = vld [vmem:[#allocation73_spill] sm:$0xff] }
 0x49f   :  { %2723 = vmatpush.bf16.msra.mxu0 %v7011_v24  ;;  %2749 = vmatpush.bf16.msra.mxu2 %v7012_v57  ;;  %v7037_v24 = vld [vmem:[#allocation74_spill] sm:$0xff]  ;;  %v7038_v57 = vld [vmem:[#allocation76_spill] sm:$0xff] }
 0x4a0   :  { %2733 = vmatpush.bf16.msra.mxu1 %v7015_v48  ;;  %2759 = vmatpush.bf16.msra.mxu3 %v7016_v27  ;;  %v7039_v48 = vld [vmem:[#allocation91_spill] sm:$0xff]  ;;  %v7040_v27 = vld [vmem:[#allocation93_spill] sm:$0xff] }
 0x4a3   :  { %2832 = vmatpush.bf16.msrb.mxu0 %v7013_v16  ;;  %2858 = vmatpush.bf16.msrb.mxu2 %v7014_v63 }
 0x4a4   :  { %2734 = vmatpush.bf16.msra.mxu1 %v7019_v26  ;;  %2760 = vmatpush.bf16.msra.mxu3 %v7020_v47  ;;  %v7041_v26 = vld [vmem:[#allocation79_spill] sm:$0xff]  ;;  %v7042_v47 = vld [vmem:[#allocation82_spill] sm:$0xff] }
 0x4a7   :  { %2833 = vmatpush.bf16.msrb.mxu0 %v7017_v11  ;;  %2859 = vmatpush.bf16.msrb.mxu2 %v7018_v56 }
 0x4a8   :  { %2735 = vmatpush.bf16.msra.mxu1 %v7023_v12  ;;  %2761 = vmatpush.bf16.msra.mxu3 %v7024_v55  ;;  %v7043_v12 = vld [vmem:[#allocation95_spill] sm:$0xff]  ;;  %v7044_v55 = vld [vmem:[#allocation97_spill] sm:$0xff] }
 0x4ab   :  { %2834 = vmatpush.bf16.msrb.mxu0 %v7021_v39  ;;  %2860 = vmatpush.bf16.msrb.mxu2 %v7022_v50 }
 0x4ac   :  { %2736 = vmatpush.bf16.msra.mxu1 %v7027_v0  ;;  %2762 = vmatpush.bf16.msra.mxu3 %v7028_v36  ;;  %v7045_v0 = vld [vmem:[#allocation84_spill] sm:$0xff]  ;;  %v7046_v36 = vld [vmem:[#allocation86_spill] sm:$0xff] }
 0x4af   :  { %2835 = vmatpush.bf16.msrb.mxu0 %v7025_v37  ;;  %2861 = vmatpush.bf16.msrb.mxu2 %v7026_v53 }
 0x4b0   :  { %2845 = vmatpush.bf16.msrb.mxu1 %v7029_v42  ;;  %2871 = vmatpush.bf16.msrb.mxu3 %v7030_v3  ;;  %v7055_v3 = vld [vmem:[#allocation68_spill] sm:$0xff] }
 0x4b3   :  { %2836 = vmatpush.bf16.msrb.mxu0 %v7031_v6  ;;  %2862 = vmatpush.bf16.msrb.mxu2 %v7032_v17 }
 0x4b4   :  { %2846 = vmatpush.bf16.msrb.mxu1 %v7033_v23  ;;  %2872 = vmatpush.bf16.msrb.mxu3 %v7034_v15  ;;  %v7047_v15 = vld [vmem:[#allocation88_spill] sm:$0xff]  ;;  %v7053_v23 = vld [vmem:[#allocation59_spill] sm:$0xff] }
 0x4b7   :  { %2837 = vmatpush.bf16.msrb.mxu0 %v7035_v2  ;;  %2863 = vmatpush.bf16.msrb.mxu2 %v7036_v29  ;;  %v7054_v29 = vld [vmem:[#allocation60_spill] sm:$0xff] }
 0x4b8   :  { %2847 = vmatpush.bf16.msrb.mxu1 %v7037_v24  ;;  %2873 = vmatpush.bf16.msrb.mxu3 %v7038_v57  ;;  %v7048_v24 = vld [vmem:[#allocation90_spill] sm:$0xff]  ;;  %v7049_v57 = vld [vmem:[#allocation92_spill] sm:$0xff] }
 0x4bb   :  { %2838 = vmatpush.bf16.msrb.mxu0 %v7039_v48  ;;  %2864 = vmatpush.bf16.msrb.mxu2 %v7040_v27  ;;  %v7050_v48 = vld [vmem:[#allocation94_spill] sm:$0xff]  ;;  %v7051_v27 = vld [vmem:[#allocation96_spill] sm:$0xff] }
 0x4bc   :  { %2848 = vmatpush.bf16.msrb.mxu1 %v7041_v26  ;;  %2874 = vmatpush.bf16.msrb.mxu3 %v7042_v47  ;;  %v7052_v26 = vld [vmem:[#allocation98_spill] sm:$0xff] }
 0x4bf   :  { %2839 = vmatpush.bf16.msrb.mxu0 %v7043_v12  ;;  %2865 = vmatpush.bf16.msrb.mxu2 %v7044_v55 }
 0x4c0   :  { %2849 = vmatpush.bf16.msrb.mxu1 %v7045_v0  ;;  %2875 = vmatpush.bf16.msrb.mxu3 %v7046_v36 }
 0x4c4   :  { %2850 = vmatpush.bf16.msrb.mxu1 %v7047_v15  ;;  %2876 = vmatpush.bf16.msrb.mxu3 %v7048_v24 }
 0x4c8   :  { %2851 = vmatpush.bf16.msrb.mxu1 %v7049_v57  ;;  %2877 = vmatpush.bf16.msrb.mxu3 %v7050_v48 }
 0x4cc   :  { %2852 = vmatpush.bf16.msrb.mxu1 %v7051_v27  ;;  %2878 = vmatpush.bf16.msrb.mxu3 %v7052_v26 }
 0x4de   :  { %v2441_v47 = vpop.f32.mrf.mxu0  ;;  %v2454_v12 = vpop.f32.mrf.mxu1 }
 0x4df   :  { %v2442_v55 = vadd.f32 %v2441_v47, %v7053_v23  ;;  %v2455_v0 = vadd.f32 %v2454_v12, %v7054_v29 }
 0x4e1   :  { %v3732_v2 = vmul.f32 -1.442695, %v2442_v55  ;;  %v3733_v36 = vmul.f32 -1.442695, %v2455_v0  ;;  %v7056_v0 = vld [vmem:[#allocation71_spill] sm:$0xff] }
 0x4e3   :  { %4043 = vpow2.f32 %v3732_v2 }
 0x4e4   :  { %4045 = vpow2.f32 %v3733_v36 }
 0x4e5   :  { %v2467_v15 = vpop.f32.mrf.mxu2  ;;  %v2480_v24 = vpop.f32.mrf.mxu3 }
 0x4e6   :  { %v2468_v57 = vadd.f32 %v2467_v15, %v7055_v3  ;;  %v2443_v42 = vpop.f32.mrf.mxu0  ;;  %v2456_v48 = vpop.f32.mrf.mxu1  ;;  %v2481_v36 = vadd.f32 %v2480_v24, %v7056_v0 }
 0x4e8   :  { %v3734_v17 = vmul.f32 -1.442695, %v2468_v57 }
 0x4e9   :  { %v4044_v27 = vpop.eup %4043 }
 0x4ea   :  { %v4046_v6 = vpop.eup %4045  ;;  %v2493_v26 = vadd.f32 1.0, %v4044_v27  ;;  %4047 = vpow2.f32 %v3734_v17 }
 0x4eb   :  { %v2494_v53 = vadd.f32 1.0, %v4046_v6 }
 0x4ec   :  { %4049 = vrcp.f32 %v2493_v26  ;;  %v2507_v27 = vand.u32 2147483648, %v2493_v26  ;;  %vm2501_vm7 = vweird.f32 %v2493_v26 }
 0x4ed   :  { %4051 = vrcp.f32 %v2494_v53  ;;  %v2469_v23 = vpop.f32.mrf.mxu2  ;;  %v2482_v29 = vpop.f32.mrf.mxu3  ;;  %v2522_v17 = vand.u32 2147483648, %v2494_v53  ;;  %vm2516_vm8 = vweird.f32 %v2494_v53 }
 0x4ee   :  { %v2557_v47 = vpop.f32.mrf.mxu0  ;;  %v2505_v23 = vand.u32 2147483647, %v2493_v26  ;;  %v2508_v0 = vor.u32 1.1754944e-38, %v2507_v27 }
 0x4f0   :  { %v4048_v12 = vpop.eup %4047  ;;  %vm2506_vm11 = vcmp.eq.f32.partialorder %v2505_v23, 8.507059e+37 }
 0x4f1   :  { %v2495_v2 = vadd.f32 1.0, %v4048_v12  ;;  %v2520_v12 = vand.u32 2147483647, %v2494_v53 }
 0x4f2   :  { %v4050_v55 = vpop.eup %4049 }
 0x4f3   :  { %v4052_v37 = vpop.eup %4051  ;;  %v2497_v3 = vmul.f32 %v4050_v55, %v2493_v26  ;;  %4053 = vrcp.f32 %v2495_v2  ;;  %vm2502_vm5 = vweird.f32 %v4050_v55  ;;  %vm2521_vm12 = vcmp.eq.f32.partialorder %v2520_v12, 8.507059e+37 }
 0x4f4   :  { %v2512_v42 = vmul.f32 %v4052_v37, %v2494_v53  ;;  %4055 = vtanh.f32 %v2481_v36  ;;  %vm2517_vm6 = vweird.f32 %v4052_v37  ;;  %vm2503_vm9 = vmor %vm2501_vm7, %vm2502_vm5  ;;  %vm2531_vm14 = vweird.f32 %v2495_v2 }
 0x4f5   :  { %v2498_v15 = vsub.f32 1.0, %v2497_v3  ;;  %v2583_v57 = vpop.f32.mrf.mxu2  ;;  %vm2518_vm10 = vmor %vm2516_vm8, %vm2517_vm6 }
 0x4f6   :  { %v2513_v48 = vsub.f32 1.0, %v2512_v42  ;;  %v2559_v6 = vpop.f32.mrf.mxu0  ;;  %v2523_v42 = vor.u32 1.1754944e-38, %v2522_v17 }
 0x4f7   :  { %v2499_v50 = vmul.f32 %v4050_v55, %v2498_v15 }
 0x4f8   :  { %v2514_v29 = vmul.f32 %v4052_v37, %v2513_v48 }
 0x4f9   :  { %v4054_v39 = vpop.eup %4053  ;;  %v2500_v56 = vadd.f32 %v4050_v55, %v2499_v50 }
 0x4fa   :  { %v2527_v24 = vmul.f32 %v4054_v39, %v2495_v2  ;;  %v2515_v3 = vadd.f32 %v4052_v37, %v2514_v29  ;;  %v4056_v36 = vpop.eup %4055  ;;  %vm2532_vm13 = vweird.f32 %v4054_v39  ;;  %v2537_v29 = vand.u32 2147483648, %v2495_v2 }
 0x4fb   :  { %v2504_v11 = vsel %vm2503_vm9, %v4050_v55, %v2500_v56  ;;  %v2535_v56 = vand.u32 2147483647, %v2495_v2  ;;  %vm2533_vm15 = vmor %vm2531_vm14, %vm2532_vm13 }
 0x4fc   :  { %v2528_v6 = vsub.f32 1.0, %v2527_v24  ;;  %v2509_v15 = vsel %vm2506_vm11, %v2508_v0, %v2504_v11  ;;  %v2519_v13 = vsel %vm2518_vm10, %v4052_v37, %v2515_v3  ;;  %v2538_v55 = vor.u32 1.1754944e-38, %v2537_v29 }
 0x4fd   :  { %v2524_v48 = vsel %vm2521_vm12, %v2523_v42, %v2519_v13  ;;  %v2543_v63 = vmul.f32 %v4056_v36, %v2509_v15  ;;  %v2585_v16 = vpop.f32.mrf.mxu2  ;;  %vm2536_vm0 = vcmp.eq.f32.partialorder %v2535_v56, 8.507059e+37 }
 0x4fe   :  { %v2529_v25 = vmul.f32 %v4054_v39, %v2528_v6  ;;  %v2542_v50 = vmul.f32 %v2524_v48, %v6038_v60  ;;  %v2558_v60 = vadd.f32 %v2557_v47, %v6834_v18 }
 0x4ff   :  { %v2609_v53 = vpop.f32.mrf.mxu0 }
 0x500   :  { %v6166_v26 = vadd.f32 %v2543_v63, %v2542_v50  ;;  %v2530_v27 = vadd.f32 %v4054_v39, %v2529_v25  ;;  %v2610_v15 = vadd.f32 %v2609_v53, %v5438_v4 }
 0x502   :  { %4057 = vtanh.f32 %v6166_v26  ;;  %v2534_v11 = vsel %vm2533_vm15, %v4054_v39, %v2530_v27  ;;  %v2584_v39 = vadd.f32 %v2583_v57, %v6758_v8 }
 0x503   :  { %v2539_v17 = vsel %vm2536_vm0, %v2538_v55, %v2534_v11 }
 0x505   :  { %v2635_v37 = vpop.f32.mrf.mxu2 }
 0x506   :  { %v2636_v55 = vadd.f32 %v2635_v37, %v5455_v35 }
 0x507   :  { %v2611_v13 = vpop.f32.mrf.mxu0 }
 0x508   :  { %v4058_v16 = vpop.eup %4057 }
 0x509   :  { %v2546_v23 = vmul.f32 %v4058_v16, %v2539_v17 }
 0x50b   :  { %v2570_v63 = vpop.f32.mrf.mxu1  ;;  %v6170_v12 = vpack.c.bf16 %v2546_v23, %v2546_v23 }
 0x50c   :  { %v2571_v25 = vadd.f32 %v2570_v63, %v2558_v60 }
 0x50d   :  { %v2637_v24 = vpop.f32.mrf.mxu2  ;;  %2724 = vmatmul.bf16.vlgmr.msra.gmra.mxu0 %v6170_v12  ;;  %2737 = vmatmul.bf16.vlgmr.msra.gmra.mxu1 %v6170_v12 }
 0x50e   :  { %v3735_v2 = vmul.f32 -1.442695, %v2571_v25  ;;  %2750 = vmatmul.bf16.vlgmr.msra.gmra.mxu2 %v6170_v12  ;;  %2763 = vmatmul.bf16.vlgmr.msra.gmra.mxu3 %v6170_v12 }
 0x50f   :  { %2884 = vmatpush.bf16.msra.mxu0 %v5068_v51  ;;  %2910 = vmatpush.bf16.msra.mxu2 %v5078_v41 }
 0x510   :  { %4059 = vpow2.f32 %v3735_v2  ;;  %2897 = vmatpush.bf16.msra.mxu1 %v5070_v7  ;;  %2923 = vmatpush.bf16.msra.mxu3 %v5080_v44 }
 0x511   :  { %v2596_v47 = vpop.f32.mrf.mxu3 }
 0x512   :  { %v2597_v0 = vadd.f32 %v2596_v47, %v2584_v39 }
 0x513   :  { %v2572_v3 = vpop.f32.mrf.mxu1  ;;  %2885 = vmatpush.bf16.msra.mxu0 %v5106_v59  ;;  %2911 = vmatpush.bf16.msra.mxu2 %v6690_v52 }
 0x514   :  { %v3736_v42 = vmul.f32 -1.442695, %v2597_v0  ;;  %2898 = vmatpush.bf16.msra.mxu1 %v6691_v58  ;;  %2924 = vmatpush.bf16.msra.mxu3 %v6692_v34 }
 0x516   :  { %v4060_v57 = vpop.eup %4059  ;;  %4061 = vpow2.f32 %v3736_v42 }
 0x517   :  { %v2661_v36 = vadd.f32 1.0, %v4060_v57  ;;  %2886 = vmatpush.bf16.msra.mxu0 %v6693_v43  ;;  %2912 = vmatpush.bf16.msra.mxu2 %v6694_v54 }
 0x518   :  { %2899 = vmatpush.bf16.msra.mxu1 %v6695_v49  ;;  %2925 = vmatpush.bf16.msra.mxu3 %v6696_v19 }
 0x519   :  { %4063 = vrcp.f32 %v2661_v36  ;;  %v2598_v6 = vpop.f32.mrf.mxu3  ;;  %v2675_v39 = vand.u32 2147483648, %v2661_v36  ;;  %vm2669_vm2 = vweird.f32 %v2661_v36  ;;  %v2673_v0 = vand.u32 2147483647, %v2661_v36 }
 0x51b   :  { %v2622_v48 = vpop.f32.mrf.mxu1  ;;  %2887 = vmatpush.bf16.msra.mxu0 %v6697_v30  ;;  %2913 = vmatpush.bf16.msra.mxu2 %v6698_v21  ;;  %vm2674_vm6 = vcmp.eq.f32.partialorder %v2673_v0, 8.507059e+37 }
 0x51c   :  { %v4062_v50 = vpop.eup %4061  ;;  %v2623_v27 = vadd.f32 %v2622_v48, %v2610_v15  ;;  %2900 = vmatpush.bf16.msra.mxu1 %v6699_v32  ;;  %2926 = vmatpush.bf16.msra.mxu3 %v6700_v22  ;;  %v2676_v48 = vor.u32 1.1754944e-38, %v2675_v39 }
 0x51d   :  { %v2662_v29 = vadd.f32 1.0, %v4062_v50  ;;  %2840 = vmatmul.bf16.vlgmr.msrb.gmra.mxu0 %v6170_v12 }
 0x51e   :  { %v3737_v56 = vmul.f32 -1.442695, %v2623_v27  ;;  %2866 = vmatmul.bf16.vlgmr.msrb.gmra.mxu2 %v6170_v12 }
 0x51f   :  { %v4064_v11 = vpop.eup %4063  ;;  %4065 = vrcp.f32 %v2662_v29  ;;  %2888 = vmatpush.bf16.msra.mxu0 %v6701_v9  ;;  %2914 = vmatpush.bf16.msra.mxu2 %v6702_v31  ;;  %v2690_v3 = vand.u32 2147483648, %v2662_v29  ;;  %v2688_v15 = vand.u32 2147483647, %v2662_v29  ;;  %vm2684_vm5 = vweird.f32 %v2662_v29 }
 0x520   :  { %v2665_v53 = vmul.f32 %v4064_v11, %v2661_v36  ;;  %4067 = vpow2.f32 %v3737_v56  ;;  %2901 = vmatpush.bf16.msra.mxu1 %v6703_v14  ;;  %2927 = vmatpush.bf16.msra.mxu3 %v6704_v33  ;;  %vm2670_vm1 = vweird.f32 %v4064_v11 }
 0x521   :  { %v2648_v13 = vpop.f32.mrf.mxu3  ;;  %vm6207_vm3 = vmor %vm2669_vm2, %vm2670_vm1  ;;  %v2691_v56 = vor.u32 1.1754944e-38, %v2690_v3  ;;  %vm2689_vm8 = vcmp.eq.f32.partialorder %v2688_v15, 8.507059e+37 }
 0x522   :  { %v2666_v16 = vsub.f32 1.0, %v2665_v53  ;;  %v2649_v17 = vadd.f32 %v2648_v13, %v2636_v55  ;;  %v7059_v55 = vld [vmem:[#allocation119_spill] sm:$0xff] }
 0x523   :  { %v2624_v23 = vpop.f32.mrf.mxu1  ;;  %2889 = vmatpush.bf16.msra.mxu0 %v6705_v20  ;;  %2915 = vmatpush.bf16.msra.mxu2 %v5271_v61 }
 0x524   :  { %v2667_v60 = vmul.f32 %v4064_v11, %v2666_v16  ;;  %2902 = vmatpush.bf16.msra.mxu1 %v6706_v45  ;;  %2928 = vmatpush.bf16.msra.mxu3 %v6707_v28  ;;  %4069 = vtanh.f32 %v2649_v17  ;;  %v7061_v16 = vld [vmem:[#allocation63_spill] sm:$0xff] }
 0x525   :  { %v4066_v63 = vpop.eup %4065 }
 0x526   :  { %v4068_v25 = vpop.eup %4067  ;;  %v2680_v37 = vmul.f32 %v4066_v63, %v2662_v29  ;;  %v2668_v24 = vadd.f32 %v4064_v11, %v2667_v60  ;;  %vm2685_vm4 = vweird.f32 %v4066_v63  ;;  %v7062_v60 = vld [vmem:[#allocation38_spill] sm:$0xff] }
 0x527   :  { %v2663_v2 = vadd.f32 1.0, %v4068_v25  ;;  %2890 = vmatpush.bf16.msra.mxu0 %v5295_v38  ;;  %2916 = vmatpush.bf16.msra.mxu2 %v5307_v1  ;;  %vm2686_vm7 = vmor %vm2684_vm5, %vm2685_vm4 }
 0x528   :  { %v2681_v47 = vsub.f32 1.0, %v2680_v37  ;;  %2903 = vmatpush.bf16.msra.mxu1 %v5297_v10  ;;  %2929 = vmatpush.bf16.msra.mxu3 %v5309_v46  ;;  %v2672_v36 = vsel %vm6207_vm3, %v4064_v11, %v2668_v24  ;;  %v7060_v11 = vld [vmem:[#allocation61_spill] sm:$0xff] }
 0x529   :  { %4071 = vrcp.f32 %v2663_v2  ;;  %v2650_v57 = vpop.f32.mrf.mxu3  ;;  %v2677_v53 = vsel %vm2674_vm6, %v2676_v48, %v2672_v36  ;;  %v2705_v0 = vand.u32 2147483648, %v2663_v2  ;;  %v2703_v42 = vand.u32 2147483647, %v2663_v2 }
 0x52a   :  { %v2682_v6 = vmul.f32 %v4066_v63, %v2681_v47  ;;  %v4070_v27 = vpop.eup %4069  ;;  %v7063_v47 = vld [vmem:[#allocation65_spill] sm:$0xff]  ;;  %vm2699_vm10 = vweird.f32 %v2663_v2 }
 0x52b   :  { %2891 = vmatpush.bf16.msra.mxu0 %v5331_v62  ;;  %2917 = vmatpush.bf16.msra.mxu2 %v6837_v5  ;;  %v2711_v37 = vmul.f32 %v4070_v27, %v2677_v53  ;;  %v2706_v36 = vor.u32 1.1754944e-38, %v2705_v0  ;;  %vm2704_vm12 = vcmp.eq.f32.partialorder %v2703_v42, 8.507059e+37  ;;  %v7067_v27 = vld [vmem:[#allocation77_spill] sm:$0xff]  ;;  %v7081_v0 = vld [vmem:[#allocation95_spill] sm:$0xff] }
 0x52c   :  { %v2683_v50 = vadd.f32 %v4066_v63, %v2682_v6  ;;  %2904 = vmatpush.bf16.msra.mxu1 %v6987_v40  ;;  %2930 = vmatpush.bf16.msra.mxu3 %v7059_v55  ;;  %v7066_v6 = vld [vmem:[#allocation75_spill] sm:$0xff] }
 0x52d   :  { %v7083_v42 = vld [vmem:[#allocation79_spill] sm:$0xff] }
 0x52e   :  { %v2687_v13 = vsel %vm2686_vm7, %v4066_v63, %v2683_v50  ;;  %2892 = vmatmul.bf16.vlgmr.msra.gmra.mxu0 %v6170_v12  ;;  %2918 = vmatmul.bf16.vlgmr.msra.gmra.mxu2 %v6170_v12  ;;  %v7064_v63 = vld [vmem:[#allocation67_spill] sm:$0xff]  ;;  %v7065_v12 = vld [vmem:[#allocation73_spill] sm:$0xff] }
 0x52f   :  { %3001 = vmatpush.bf16.msrb.mxu0 %v7060_v11  ;;  %3027 = vmatpush.bf16.msrb.mxu2 %v7061_v16  ;;  %v4072_v29 = vpop.eup %4071  ;;  %v2692_v17 = vsel %vm2689_vm8, %v2691_v56, %v2687_v13  ;;  %v7068_v56 = vld [vmem:[#allocation80_spill] sm:$0xff]  ;;  %v7069_v11 = vld [vmem:[#allocation83_spill] sm:$0xff]  ;;  %v7071_v16 = vld [vmem:[#allocation62_spill] sm:$0xff] }
 0x530   :  { %v2695_v23 = vmul.f32 %v4072_v29, %v2663_v2  ;;  %v2710_v25 = vmul.f32 %v2692_v17, %v7062_v60  ;;  %vm2700_vm9 = vweird.f32 %v4072_v29  ;;  %v7070_v2 = vld [vmem:[#allocation85_spill] sm:$0xff]  ;;  %v7072_v17 = vld [vmem:[#allocation64_spill] sm:$0xff]  ;;  %v7075_v60 = vld [vmem:[#allocation66_spill] sm:$0xff] }
 0x531   :  { %vm2701_vm11 = vmor %vm2699_vm10, %vm2700_vm9 }
 0x532   :  { %v2696_v24 = vsub.f32 1.0, %v2695_v23  ;;  %v6224_v39 = vadd.f32 %v2711_v37, %v2710_v25  ;;  %v7074_v23 = vld [vmem:[#allocation89_spill] sm:$0xff]  ;;  %v7076_v25 = vld [vmem:[#allocation70_spill] sm:$0xff]  ;;  %v7077_v37 = vld [vmem:[#allocation91_spill] sm:$0xff] }
 0x533   :  { %3002 = vmatpush.bf16.msrb.mxu0 %v7063_v47  ;;  %3028 = vmatpush.bf16.msrb.mxu2 %v7064_v63  ;;  %v7079_v47 = vld [vmem:[#allocation74_spill] sm:$0xff]  ;;  %v7080_v63 = vld [vmem:[#allocation76_spill] sm:$0xff] }
 0x534   :  { %v2697_v3 = vmul.f32 %v4072_v29, %v2696_v24  ;;  %4073 = vtanh.f32 %v6224_v39  ;;  %v7078_v24 = vld [vmem:[#allocation93_spill] sm:$0xff] }
 0x536   :  { %v2698_v57 = vadd.f32 %v4072_v29, %v2697_v3  ;;  %v7082_v3 = vld [vmem:[#allocation97_spill] sm:$0xff] }
 0x537   :  { %3003 = vmatpush.bf16.msrb.mxu0 %v7065_v12  ;;  %3029 = vmatpush.bf16.msrb.mxu2 %v7066_v6  ;;  %v7085_v12 = vld [vmem:[#allocation84_spill] sm:$0xff]  ;;  %v7086_v6 = vld [vmem:[#allocation86_spill] sm:$0xff] }
 0x538   :  { %v2702_v15 = vsel %vm2701_vm11, %v4072_v29, %v2698_v57  ;;  %v7073_v29 = vld [vmem:[#allocation87_spill] sm:$0xff]  ;;  %v7084_v57 = vld [vmem:[#allocation82_spill] sm:$0xff] }
 0x539   :  { %v2707_v48 = vsel %vm2704_vm12, %v2706_v36, %v2702_v15  ;;  %v7089_v36 = vld [vmem:[#allocation92_spill] sm:$0xff] }
 0x53a   :  { %v4074_v50 = vpop.eup %4073 }
 0x53b   :  { %3004 = vmatpush.bf16.msrb.mxu0 %v7067_v27  ;;  %3030 = vmatpush.bf16.msrb.mxu2 %v7068_v56  ;;  %v2714_v53 = vmul.f32 %v4074_v50, %v2707_v48  ;;  %v7099_v50 = vld [vmem:[#allocation44_spill] sm:$0xff]  ;;  %v7100_v27 = vld [vmem:[#allocation81_spill] sm:$0xff] }
 0x53c   :  { %v301_v56 = vadd.f32 %v7100_v27, %v7099_v50 }
 0x53d   :  { %v2831_v13 = vpack.c.bf16 %v2714_v53, %v2714_v53 }
 0x53f   :  { %3005 = vmatpush.bf16.msrb.mxu0 %v7069_v11  ;;  %3031 = vmatpush.bf16.msrb.mxu2 %v7070_v2 }
 0x540   :  { %2853 = vmatmul.bf16.vlgmr.msrb.gmra.mxu1 %v2831_v13  ;;  %2879 = vmatmul.bf16.vlgmr.msrb.gmra.mxu3 %v2831_v13 }
 0x541   :  { %3014 = vmatpush.bf16.msrb.mxu1 %v7071_v16  ;;  %3040 = vmatpush.bf16.msrb.mxu3 %v7072_v17 }
 0x543   :  { %3006 = vmatpush.bf16.msrb.mxu0 %v7073_v29  ;;  %3032 = vmatpush.bf16.msrb.mxu2 %v7074_v23 }
 0x545   :  { %3015 = vmatpush.bf16.msrb.mxu1 %v7075_v60  ;;  %3041 = vmatpush.bf16.msrb.mxu3 %v7076_v25 }
 0x547   :  { %3007 = vmatpush.bf16.msrb.mxu0 %v7077_v37  ;;  %3033 = vmatpush.bf16.msrb.mxu2 %v7078_v24 }
 0x549   :  { %3016 = vmatpush.bf16.msrb.mxu1 %v7079_v47  ;;  %3042 = vmatpush.bf16.msrb.mxu3 %v7080_v63 }
 0x54b   :  { %3008 = vmatpush.bf16.msrb.mxu0 %v7081_v0  ;;  %3034 = vmatpush.bf16.msrb.mxu2 %v7082_v3 }
 0x54d   :  { %3017 = vmatpush.bf16.msrb.mxu1 %v7083_v42  ;;  %3043 = vmatpush.bf16.msrb.mxu3 %v7084_v57 }
 0x54f   :  { %3053 = vmatpush.bf16.msra.mxu0 %v5068_v51  ;;  %3079 = vmatpush.bf16.msra.mxu2 %v5078_v41  ;;  %v7087_v51 = vld [vmem:[#allocation88_spill] sm:$0xff]  ;;  %v7088_v41 = vld [vmem:[#allocation90_spill] sm:$0xff] }
 0x550   :  { %2905 = vmatmul.bf16.vlgmr.msra.gmra.mxu1 %v2831_v13  ;;  %2931 = vmatmul.bf16.vlgmr.msra.gmra.mxu3 %v2831_v13 }
 0x551   :  { %3018 = vmatpush.bf16.msrb.mxu1 %v7085_v12  ;;  %3044 = vmatpush.bf16.msrb.mxu3 %v7086_v6 }
 0x553   :  { %3054 = vmatpush.bf16.msra.mxu0 %v5106_v59  ;;  %3080 = vmatpush.bf16.msra.mxu2 %v6690_v52  ;;  %v7090_v59 = vld [vmem:[#allocation94_spill] sm:$0xff]  ;;  %v7091_v52 = vld [vmem:[#allocation96_spill] sm:$0xff] }
 0x555   :  { %3019 = vmatpush.bf16.msrb.mxu1 %v7087_v51  ;;  %3045 = vmatpush.bf16.msrb.mxu3 %v7088_v41 }
 0x557   :  { %3055 = vmatpush.bf16.msra.mxu0 %v6693_v43  ;;  %3081 = vmatpush.bf16.msra.mxu2 %v6694_v54  ;;  %v7092_v43 = vld [vmem:[#allocation98_spill] sm:$0xff] }
 0x559   :  { %3020 = vmatpush.bf16.msrb.mxu1 %v7089_v36  ;;  %3046 = vmatpush.bf16.msrb.mxu3 %v7090_v59 }
 0x55b   :  { %3056 = vmatpush.bf16.msra.mxu0 %v6697_v30  ;;  %3082 = vmatpush.bf16.msra.mxu2 %v6698_v21  ;;  %v7098_v21 = vld [vmem:[#allocation78_spill] sm:$0xff] }
 0x55d   :  { %3021 = vmatpush.bf16.msrb.mxu1 %v7091_v52  ;;  %3047 = vmatpush.bf16.msrb.mxu3 %v7092_v43 }
 0x55f   :  { %3057 = vmatpush.bf16.msra.mxu0 %v6701_v9  ;;  %3083 = vmatpush.bf16.msra.mxu2 %v6702_v31 }
 0x561   :  { %3066 = vmatpush.bf16.msra.mxu1 %v5070_v7  ;;  %3092 = vmatpush.bf16.msra.mxu3 %v5080_v44  ;;  %v7093_v7 = vld [vmem:[#allocation37_spill] sm:$0xff] }
 0x562   :  { %v7094_v44 = vld [vmem:[#allocation69_spill] sm:$0xff] }
 0x563   :  { %3058 = vmatpush.bf16.msra.mxu0 %v6705_v20  ;;  %3084 = vmatpush.bf16.msra.mxu2 %v5271_v61  ;;  %v214_v61 = vadd.f32 %v7094_v44, %v7093_v7 }
 0x565   :  { %3067 = vmatpush.bf16.msra.mxu1 %v6691_v58  ;;  %3093 = vmatpush.bf16.msra.mxu3 %v6692_v34 }
 0x567   :  { %3059 = vmatpush.bf16.msra.mxu0 %v5295_v38  ;;  %3085 = vmatpush.bf16.msra.mxu2 %v5307_v1  ;;  %v7095_v1 = vld [vmem:[#allocation39_spill] sm:$0xff]  ;;  %v7096_v38 = vld [vmem:[#allocation72_spill] sm:$0xff] }
 0x569   :  { %3068 = vmatpush.bf16.msra.mxu1 %v6695_v49  ;;  %3094 = vmatpush.bf16.msra.mxu3 %v6696_v19 }
 0x56b   :  { %3060 = vmatpush.bf16.msra.mxu0 %v5331_v62  ;;  %3086 = vmatpush.bf16.msra.mxu2 %v6837_v5  ;;  %v243_v62 = vadd.f32 %v7096_v38, %v7095_v1 }
 0x56d   :  { %3069 = vmatpush.bf16.msra.mxu1 %v6699_v32  ;;  %3095 = vmatpush.bf16.msra.mxu3 %v6700_v22 }
 0x571   :  { %3070 = vmatpush.bf16.msra.mxu1 %v6703_v14  ;;  %3096 = vmatpush.bf16.msra.mxu3 %v6704_v33 }
 0x575   :  { %3071 = vmatpush.bf16.msra.mxu1 %v6706_v45  ;;  %3097 = vmatpush.bf16.msra.mxu3 %v6707_v28 }
 0x579   :  { %3072 = vmatpush.bf16.msra.mxu1 %v5297_v10  ;;  %3098 = vmatpush.bf16.msra.mxu3 %v5309_v46  ;;  %v7097_v10 = vld [vmem:[#allocation43_spill] sm:$0xff] }
 0x57a   :  { %v272_v46 = vadd.f32 %v7098_v21, %v7097_v10 }
 0x57d   :  { %3073 = vmatpush.bf16.msra.mxu1 %v6987_v40  ;;  %3099 = vmatpush.bf16.msra.mxu3 %v7059_v55 }
 0x58a   :  { %v2725_v58 = vpop.f32.mrf.mxu0  ;;  %v2738_v34 = vpop.f32.mrf.mxu1 }
 0x58b   :  { %v2726_v54 = vadd.f32 %v2725_v58, %v214_v61  ;;  %v2739_v49 = vadd.f32 %v2738_v34, %v243_v62 }
 0x58d   :  { %v3738_v19 = vmul.f32 -1.442695, %v2726_v54  ;;  %v3739_v30 = vmul.f32 -1.442695, %v2739_v49 }
 0x58f   :  { %4075 = vpow2.f32 %v3738_v19 }
 0x590   :  { %4077 = vpow2.f32 %v3739_v30 }
 0x591   :  { %v2751_v32 = vpop.f32.mrf.mxu2  ;;  %v2764_v22 = vpop.f32.mrf.mxu3 }
 0x592   :  { %v2752_v9 = vadd.f32 %v2751_v32, %v272_v46  ;;  %v2727_v31 = vpop.f32.mrf.mxu0  ;;  %v2740_v14 = vpop.f32.mrf.mxu1  ;;  %v2765_v11 = vadd.f32 %v2764_v22, %v301_v56 }
 0x594   :  { %v3740_v33 = vmul.f32 -1.442695, %v2752_v9 }
 0x595   :  { %v4076_v20 = vpop.eup %4075 }
 0x596   :  { %v4078_v45 = vpop.eup %4077  ;;  %v2777_v28 = vadd.f32 1.0, %v4076_v20  ;;  %4079 = vpow2.f32 %v3740_v33 }
 0x597   :  { %v2778_v5 = vadd.f32 1.0, %v4078_v45 }
 0x598   :  { %4081 = vrcp.f32 %v2777_v28  ;;  %v2791_v25 = vand.u32 2147483648, %v2777_v28  ;;  %v2789_v63 = vand.u32 2147483647, %v2777_v28  ;;  %vm2785_vm15 = vweird.f32 %v2777_v28 }
 0x599   :  { %4083 = vrcp.f32 %v2778_v5  ;;  %v2753_v40 = vpop.f32.mrf.mxu2  ;;  %v2766_v55 = vpop.f32.mrf.mxu3  ;;  %v2806_v24 = vand.u32 2147483648, %v2778_v5  ;;  %v2804_v3 = vand.u32 2147483647, %v2778_v5  ;;  %vm2800_vm0 = vweird.f32 %v2778_v5 }
 0x59a   :  { %v6295_v15 = vpop.f32.mrf.mxu0  ;;  %v2792_v6 = vor.u32 1.1754944e-38, %v2791_v25  ;;  %vm2790_vm3 = vcmp.eq.f32.partialorder %v2789_v63, 8.507059e+37 }
 0x59b   :  { %v2807_v41 = vor.u32 1.1754944e-38, %v2806_v24  ;;  %vm2805_vm4 = vcmp.eq.f32.partialorder %v2804_v3, 8.507059e+37  ;;  %v2842_v14 = vadd.f32 %v6295_v15, %v6834_v18 }
 0x59c   :  { %v4080_v48 = vpop.eup %4079 }
 0x59d   :  { %v2779_v53 = vadd.f32 1.0, %v4080_v48 }
 0x59e   :  { %v4082_v13 = vpop.eup %4081 }
 0x59f   :  { %v4084_v2 = vpop.eup %4083  ;;  %v2781_v16 = vmul.f32 %v4082_v13, %v2777_v28  ;;  %4085 = vrcp.f32 %v2779_v53  ;;  %vm2786_vm13 = vweird.f32 %v4082_v13  ;;  %v2821_v49 = vand.u32 2147483648, %v2779_v53 }
 0x5a0   :  { %v2796_v17 = vmul.f32 %v4084_v2, %v2778_v5  ;;  %4087 = vtanh.f32 %v2765_v11  ;;  %vm2801_vm14 = vweird.f32 %v4084_v2  ;;  %vm2787_vm1 = vmor %vm2785_vm15, %vm2786_vm13  ;;  %vm2815_vm6 = vweird.f32 %v2779_v53 }
 0x5a1   :  { %v2782_v29 = vsub.f32 1.0, %v2781_v16  ;;  %v6299_v23 = vpop.f32.mrf.mxu2  ;;  %vm2802_vm2 = vmor %vm2800_vm0, %vm2801_vm14  ;;  %v2819_v19 = vand.u32 2147483647, %v2779_v53  ;;  %v2822_v21 = vor.u32 1.1754944e-38, %v2821_v49 }
 0x5a2   :  { %v2797_v60 = vsub.f32 1.0, %v2796_v17  ;;  %v2843_v37 = vpop.f32.mrf.mxu0  ;;  %v2868_v28 = vadd.f32 %v6299_v23, %v6758_v8 }
 0x5a3   :  { %v2783_v47 = vmul.f32 %v4082_v13, %v2782_v29  ;;  %vm2820_vm8 = vcmp.eq.f32.partialorder %v2819_v19, 8.507059e+37 }
 0x5a4   :  { %v2798_v0 = vmul.f32 %v4084_v2, %v2797_v60 }
 0x5a5   :  { %v4086_v42 = vpop.eup %4085  ;;  %v2784_v57 = vadd.f32 %v4082_v13, %v2783_v47 }
 0x5a6   :  { %v2811_v12 = vmul.f32 %v4086_v42, %v2779_v53  ;;  %v2799_v51 = vadd.f32 %v4084_v2, %v2798_v0  ;;  %v4088_v59 = vpop.eup %4087  ;;  %vm2816_vm5 = vweird.f32 %v4086_v42 }
 0x5a7   :  { %v2788_v36 = vsel %vm2787_vm1, %v4082_v13, %v2784_v57  ;;  %vm2817_vm7 = vmor %vm2815_vm6, %vm2816_vm5 }
 0x5a8   :  { %v2812_v52 = vsub.f32 1.0, %v2811_v12  ;;  %v2793_v43 = vsel %vm2790_vm3, %v2792_v6, %v2788_v36  ;;  %v2803_v7 = vsel %vm2802_vm2, %v4084_v2, %v2799_v51 }
 0x5a9   :  { %v2808_v44 = vsel %vm2805_vm4, %v2807_v41, %v2803_v7  ;;  %v2827_v61 = vmul.f32 %v4088_v59, %v2793_v43  ;;  %v2869_v1 = vpop.f32.mrf.mxu2 }
 0x5aa   :  { %v2813_v38 = vmul.f32 %v4086_v42, %v2812_v52  ;;  %v2826_v62 = vmul.f32 %v2808_v44, %v6166_v26 }
 0x5ab   :  { %v2893_v58 = vpop.f32.mrf.mxu0 }
 0x5ac   :  { %v2828_v34 = vadd.f32 %v2827_v61, %v2826_v62  ;;  %v2814_v54 = vadd.f32 %v4086_v42, %v2813_v38  ;;  %v2894_v15 = vadd.f32 %v2893_v58, %v5438_v4 }
 0x5ae   :  { %4089 = vtanh.f32 %v2828_v34  ;;  %3169 = vst [vmem:[%s6346_s12] sm:$0xff] %v2828_v34  ;;  %v2818_v10 = vsel %vm2817_vm7, %v4086_v42, %v2814_v54 }
 0x5af   :  { %v2823_v26 = vsel %vm2820_vm8, %v2822_v21, %v2818_v10 }
 0x5b1   :  { %v2919_v30 = vpop.f32.mrf.mxu2 }
 0x5b2   :  { %v2920_v23 = vadd.f32 %v2919_v30, %v5455_v35 }
 0x5b3   :  { %v2895_v46 = vpop.f32.mrf.mxu0 }
 0x5b4   :  { %v4090_v32 = vpop.eup %4089 }
 0x5b5   :  { %v2830_v22 = vmul.f32 %v4090_v32, %v2823_v26 }
 0x5b7   :  { %v2999_v9 = vpack.c.bf16 %v2830_v22, %v2830_v22  ;;  %3168 = vst [vmem:[%s6347_s11] sm:$0xff] %v2830_v22 }
 0x5b9   :  { %v2921_v31 = vpop.f32.mrf.mxu2  ;;  %3009 = vmatmul.bf16.vlgmr.msrb.gmra.mxu0 %v2999_v9  ;;  %3035 = vmatmul.bf16.vlgmr.msrb.gmra.mxu2 %v2999_v9 }
 0x5bd   :  { %v2854_v33 = vpop.f32.mrf.mxu1 }
 0x5be   :  { %v2855_v20 = vadd.f32 %v2854_v33, %v2842_v14 }
 0x5c0   :  { %v3741_v45 = vmul.f32 -1.442695, %v2855_v20 }
 0x5c2   :  { %4091 = vpow2.f32 %v3741_v45 }
 0x5c3   :  { %v2880_v5 = vpop.f32.mrf.mxu3 }
 0x5c4   :  { %v2881_v40 = vadd.f32 %v2880_v5, %v2868_v28 }
 0x5c5   :  { %v2856_v55 = vpop.f32.mrf.mxu1 }
 0x5c6   :  { %v3742_v48 = vmul.f32 -1.442695, %v2881_v40 }
 0x5c8   :  { %v4092_v50 = vpop.eup %4091  ;;  %4093 = vpow2.f32 %v3742_v48 }
 0x5c9   :  { %v2945_v27 = vadd.f32 1.0, %v4092_v50  ;;  %3061 = vmatmul.bf16.vlgmr.msra.gmra.mxu0 %v2999_v9  ;;  %3087 = vmatmul.bf16.vlgmr.msra.gmra.mxu2 %v2999_v9 }
 0x5cb   :  { %4095 = vrcp.f32 %v2945_v27  ;;  %v2882_v56 = vpop.f32.mrf.mxu3  ;;  %v2959_v12 = vand.u32 2147483648, %v2945_v27  ;;  %vm2953_vm10 = vweird.f32 %v2945_v27  ;;  %v2957_v51 = vand.u32 2147483647, %v2945_v27 }
 0x5cd   :  { %v2906_v53 = vpop.f32.mrf.mxu1  ;;  %v2960_v7 = vor.u32 1.1754944e-38, %v2959_v12  ;;  %vm2958_vm14 = vcmp.eq.f32.partialorder %v2957_v51, 8.507059e+37 }
 0x5ce   :  { %v4094_v13 = vpop.eup %4093  ;;  %v2907_v11 = vadd.f32 %v2906_v53, %v2894_v15 }
 0x5cf   :  { %v2946_v2 = vadd.f32 1.0, %v4094_v13 }
 0x5d0   :  { %v3743_v16 = vmul.f32 -1.442695, %v2907_v11 }
 0x5d1   :  { %v4096_v17 = vpop.eup %4095  ;;  %4097 = vrcp.f32 %v2946_v2  ;;  %v2974_v41 = vand.u32 2147483648, %v2946_v2  ;;  %v2972_v43 = vand.u32 2147483647, %v2946_v2  ;;  %vm2968_vm13 = vweird.f32 %v2946_v2 }
 0x5d2   :  { %v2949_v29 = vmul.f32 %v4096_v17, %v2945_v27  ;;  %4099 = vpow2.f32 %v3743_v16  ;;  %vm2954_vm9 = vweird.f32 %v4096_v17 }
 0x5d3   :  { %v2932_v60 = vpop.f32.mrf.mxu3  ;;  %vm2955_vm11 = vmor %vm2953_vm10, %vm2954_vm9  ;;  %v2975_v1 = vor.u32 1.1754944e-38, %v2974_v41  ;;  %vm2973_vm0 = vcmp.eq.f32.partialorder %v2972_v43, 8.507059e+37 }
 0x5d4   :  { %v2950_v25 = vsub.f32 1.0, %v2949_v29  ;;  %v2933_v37 = vadd.f32 %v2932_v60, %v2920_v23 }
 0x5d5   :  { %v2908_v24 = vpop.f32.mrf.mxu1 }
 0x5d6   :  { %v2951_v47 = vmul.f32 %v4096_v17, %v2950_v25  ;;  %4101 = vtanh.f32 %v2933_v37 }
 0x5d7   :  { %v4098_v63 = vpop.eup %4097 }
 0x5d8   :  { %v4100_v0 = vpop.eup %4099  ;;  %v2964_v3 = vmul.f32 %v4098_v63, %v2946_v2  ;;  %v2952_v42 = vadd.f32 %v4096_v17, %v2951_v47  ;;  %vm2969_vm12 = vweird.f32 %v4098_v63 }
 0x5d9   :  { %v2947_v57 = vadd.f32 1.0, %v4100_v0  ;;  %vm2970_vm15 = vmor %vm2968_vm13, %vm2969_vm12 }
 0x5da   :  { %v2965_v6 = vsub.f32 1.0, %v2964_v3  ;;  %v2956_v52 = vsel %vm2955_vm11, %v4096_v17, %v2952_v42 }
 0x5db   :  { %4103 = vrcp.f32 %v2947_v57  ;;  %v2934_v36 = vpop.f32.mrf.mxu3  ;;  %v2961_v38 = vsel %vm2958_vm14, %v2960_v7, %v2956_v52  ;;  %v2989_v21 = vand.u32 2147483648, %v2947_v57  ;;  %v2987_v32 = vand.u32 2147483647, %v2947_v57 }
 0x5dc   :  { %v2966_v59 = vmul.f32 %v4098_v63, %v2965_v6  ;;  %v4102_v61 = vpop.eup %4101  ;;  %vm2983_vm2 = vweird.f32 %v2947_v57 }
 0x5dd   :  { %v2995_v19 = vmul.f32 %v4102_v61, %v2961_v38  ;;  %v2990_v22 = vor.u32 1.1754944e-38, %v2989_v21  ;;  %vm2988_vm4 = vcmp.eq.f32.partialorder %v2987_v32, 8.507059e+37 }
 0x5de   :  { %v2967_v44 = vadd.f32 %v4098_v63, %v2966_v59 }
 0x5e0   :  { %v2971_v62 = vsel %vm2970_vm15, %v4098_v63, %v2967_v44 }
 0x5e1   :  { %v4104_v58 = vpop.eup %4103  ;;  %v2976_v34 = vsel %vm2973_vm0, %v2975_v1, %v2971_v62 }
 0x5e2   :  { %v2979_v54 = vmul.f32 %v4104_v58, %v2947_v57  ;;  %v2994_v49 = vmul.f32 %v2976_v34, %v6224_v39  ;;  %vm2984_vm1 = vweird.f32 %v4104_v58 }
 0x5e3   :  { %vm2985_vm3 = vmor %vm2983_vm2, %vm2984_vm1 }
 0x5e4   :  { %v2980_v30 = vsub.f32 1.0, %v2979_v54  ;;  %v6315_v10 = vadd.f32 %v2995_v19, %v2994_v49 }
 0x5e6   :  { %v2981_v46 = vmul.f32 %v4104_v58, %v2980_v30  ;;  %4105 = vtanh.f32 %v6315_v10 }
 0x5e8   :  { %v2982_v26 = vadd.f32 %v4104_v58, %v2981_v46 }
 0x5ea   :  { %v2986_v9 = vsel %vm2985_vm3, %v4104_v58, %v2982_v26 }
 0x5eb   :  { %v2991_v31 = vsel %vm2988_vm4, %v2990_v22, %v2986_v9  ;;  %vm3203_vm4 = vcmask 7168  }
 0x5ec   :  { %v4106_v14 = vpop.eup %4105 }
 0x5ed   :  { %v2998_v33 = vmul.f32 %v4106_v14, %v2991_v31 }
 0x5ef   :  { %v3000_v39 = vpack.c.bf16 %v2998_v33, %v2998_v33 }
 0x5f1   :  { %3022 = vmatmul.bf16.vlgmr.msrb.gmra.mxu1 %v3000_v39  ;;  %3048 = vmatmul.bf16.vlgmr.msrb.gmra.mxu3 %v3000_v39 }
 0x601   :  { %3074 = vmatmul.bf16.vlgmr.msra.gmra.mxu1 %v3000_v39  ;;  %3100 = vmatmul.bf16.vlgmr.msra.gmra.mxu3 %v3000_v39 }
 0x636   :  { %v3010_v20 = vpop.f32.mrf.mxu0 }
 0x637   :  { %v3011_v27 = vadd.f32 %v3010_v20, %v6834_v18 }
 0x63c   :  { %v3036_v45 = vpop.f32.mrf.mxu2 }
 0x63d   :  { %v3037_v13 = vadd.f32 %v3036_v45, %v6758_v8 }
 0x63e   :  { %v3012_v28 = vpop.f32.mrf.mxu0 }
 0x644   :  { %v3038_v5 = vpop.f32.mrf.mxu2 }
 0x645   :  { %v3866_v5 = vld [vmem:[%s6348_s6] ss:$0 sm:$0xff] }
 0x646   :  { %v3062_v40 = vpop.f32.mrf.mxu0 }
 0x647   :  { %v3063_v25 = vadd.f32 %v3062_v40, %v5438_v4 }
 0x64c   :  { %v3088_v55 = vpop.f32.mrf.mxu2 }
 0x64d   :  { %v3089_v3 = vadd.f32 %v3088_v55, %v5455_v35 }
 0x64e   :  { %v3064_v48 = vpop.f32.mrf.mxu0 }
 0x654   :  { %v3090_v50 = vpop.f32.mrf.mxu2 }
 0x655   :  { %v3182_v50 = vstv %s6349_s7 }
 0x66e   :  { %v3023_v56 = vpop.f32.mrf.mxu1 }
 0x66f   :  { %v3024_v15 = vadd.f32 %v3023_v56, %v3011_v27 }
 0x671   :  { %v3744_v53 = vmul.f32 -1.442695, %v3024_v15 }
 0x673   :  { %4107 = vpow2.f32 %v3744_v53 }
 0x674   :  { %v3049_v11 = vpop.f32.mrf.mxu3 }
 0x675   :  { %v3050_v2 = vadd.f32 %v3049_v11, %v3037_v13 }
 0x676   :  { %v3025_v16 = vpop.f32.mrf.mxu1 }
 0x677   :  { %v3745_v17 = vmul.f32 -1.442695, %v3050_v2 }
 0x679   :  { %v4108_v29 = vpop.eup %4107  ;;  %4109 = vpow2.f32 %v3745_v17 }
 0x67a   :  { %v3114_v23 = vadd.f32 1.0, %v4108_v29 }
 0x67c   :  { %4111 = vrcp.f32 %v3114_v23  ;;  %v3051_v60 = vpop.f32.mrf.mxu3  ;;  %v3128_v43 = vand.u32 2147483648, %v3114_v23  ;;  %vm3122_vm6 = vweird.f32 %v3114_v23  ;;  %v3126_v44 = vand.u32 2147483647, %v3114_v23 }
 0x67e   :  { %v3075_v37 = vpop.f32.mrf.mxu1  ;;  %v3129_v58 = vor.u32 1.1754944e-38, %v3128_v43  ;;  %vm3127_vm10 = vcmp.eq.f32.partialorder %v3126_v44, 8.507059e+37 }
 0x67f   :  { %v4110_v24 = vpop.eup %4109  ;;  %v3076_v18 = vadd.f32 %v3075_v37, %v3063_v25 }
 0x680   :  { %v3115_v47 = vadd.f32 1.0, %v4110_v24 }
 0x681   :  { %v3746_v63 = vmul.f32 -1.442695, %v3076_v18 }
 0x682   :  { %v4112_v0 = vpop.eup %4111  ;;  %4113 = vrcp.f32 %v3115_v47  ;;  %v3143_v61 = vand.u32 2147483648, %v3115_v47  ;;  %v3141_v62 = vand.u32 2147483647, %v3115_v47  ;;  %vm3137_vm9 = vweird.f32 %v3115_v47 }
 0x683   :  { %v3118_v8 = vmul.f32 %v4112_v0, %v3114_v23  ;;  %4115 = vpow2.f32 %v3746_v63  ;;  %vm3123_vm5 = vweird.f32 %v4112_v0 }
 0x684   :  { %v3101_v42 = vpop.f32.mrf.mxu3  ;;  %vm3124_vm7 = vmor %vm3122_vm6, %vm3123_vm5  ;;  %v3144_v49 = vor.u32 1.1754944e-38, %v3143_v61  ;;  %vm3142_vm12 = vcmp.eq.f32.partialorder %v3141_v62, 8.507059e+37 }
 0x685   :  { %v3119_v57 = vsub.f32 1.0, %v3118_v8  ;;  %v3102_v12 = vadd.f32 %v3101_v42, %v3089_v3 }
 0x686   :  { %v3077_v6 = vpop.f32.mrf.mxu1 }
 0x687   :  { %v3120_v51 = vmul.f32 %v4112_v0, %v3119_v57  ;;  %4117 = vtanh.f32 %v3102_v12 }
 0x688   :  { %v4114_v41 = vpop.eup %4113 }
 0x689   :  { %v4116_v36 = vpop.eup %4115  ;;  %v3133_v59 = vmul.f32 %v4114_v41, %v3115_v47  ;;  %v3121_v4 = vadd.f32 %v4112_v0, %v3120_v51  ;;  %vm3138_vm8 = vweird.f32 %v4114_v41 }
 0x68a   :  { %v3116_v52 = vadd.f32 1.0, %v4116_v36  ;;  %vm3139_vm11 = vmor %vm3137_vm9, %vm3138_vm8 }
 0x68b   :  { %v3134_v7 = vsub.f32 1.0, %v3133_v59  ;;  %v3125_v38 = vsel %vm3124_vm7, %v4112_v0, %v3121_v4 }
 0x68c   :  { %4119 = vrcp.f32 %v3116_v52  ;;  %v3103_v35 = vpop.f32.mrf.mxu3  ;;  %v3130_v19 = vsel %vm3127_vm10, %v3129_v58, %v3125_v38  ;;  %v3158_v14 = vand.u32 2147483648, %v3116_v52  ;;  %v3156_v39 = vand.u32 2147483647, %v3116_v52 }
 0x68d   :  { %v3135_v1 = vmul.f32 %v4114_v41, %v3134_v7  ;;  %v4118_v54 = vpop.eup %4117  ;;  %vm3152_vm14 = vweird.f32 %v3116_v52 }
 0x68e   :  { %v3164_v26 = vmul.f32 %v4118_v54, %v3130_v19  ;;  %v3159_v45 = vor.u32 1.1754944e-38, %v3158_v14  ;;  %vm3157_vm0 = vcmp.eq.f32.partialorder %v3156_v39, 8.507059e+37 }
 0x68f   :  { %v3136_v34 = vadd.f32 %v4114_v41, %v3135_v1 }
 0x691   :  { %v3140_v30 = vsel %vm3139_vm11, %v4114_v41, %v3136_v34 }
 0x692   :  { %v4120_v21 = vpop.eup %4119  ;;  %v3145_v46 = vsel %vm3142_vm12, %v3144_v49, %v3140_v30 }
 0x693   :  { %v3163_v32 = vmul.f32 %v3145_v46, %v6315_v10  ;;  %v3148_v22 = vmul.f32 %v4120_v21, %v3116_v52  ;;  %vm3153_vm13 = vweird.f32 %v4120_v21 }
 0x694   :  { %vm3154_vm15 = vmor %vm3152_vm14, %vm3153_vm13 }
 0x695   :  { %v3165_v9 = vadd.f32 %v3164_v26, %v3163_v32  ;;  %v3149_v31 = vsub.f32 1.0, %v3148_v22 }
 0x697   :  { %3748 = vst [vmem:[%s6346_s12 + $0x8] sm:$0xff] %v3165_v9  ;;  %v3150_v33 = vmul.f32 %v4120_v21, %v3149_v31  ;;  %4121 = vtanh.f32 %v3165_v9 }
 0x699   :  { %v3151_v20 = vadd.f32 %v4120_v21, %v3150_v33 }
 0x69b   :  { %v3155_v28 = vsel %vm3154_vm15, %v4120_v21, %v3151_v20 }
 0x69c   :  { %v3160_v10 = vsel %vm3157_vm0, %v3159_v45, %v3155_v28 }
 0x69d   :  { %v4122_v40 = vpop.eup %4121 }
 0x69e   :  { %v3167_v55 = vmul.f32 %v4122_v40, %v3160_v10 }
 0x6a0   :  { %3747 = vst [vmem:[%s6347_s11 + $0x8] sm:$0xff] %v3167_v55  ;;  %v3178_v48 = vmul.f32 %v3866_v5, %v3167_v55 }
 0x6a2   :  { %3179 = vadd.xlane.f32.xlu0 %v3178_v48 }
 0x715   :  { %v3180_v27 = vpop.xlane.xlu0 %3179 }
 0x716   :  { %v3183_v56 = vadd.f32 %v3182_v50, %v3180_v27 }
 0x718   :  { %v3749_v15 = vmul.f32 -1.442695, %v3183_v56 }
 0x71a   :  { %4123 = vpow2.f32 %v3749_v15 }
 0x720   :  { %v4124_v53 = vpop.eup %4123 }
 0x721   :  { %v3187_v13 = vadd.f32 1.0, %v4124_v53 }
 0x723   :  { %4125 = vrcp.f32 %v3187_v13  ;;  %v3199_v17 = vand.u32 2147483648, %v3187_v13  ;;  %v3197_v23 = vand.u32 2147483647, %v3187_v13  ;;  %vm3193_vm2 = vweird.f32 %v3187_v13 }
 0x725   :  { %v3200_v25 = vor.u32 1.1754944e-38, %v3199_v17  ;;  %vm3198_vm5 = vcmp.eq.f32.partialorder %v3197_v23, 8.507059e+37 }
 0x729   :  { %v4126_v11 = vpop.eup %4125 }
 0x72a   :  { %v3189_v2 = vmul.f32 %v4126_v11, %v3187_v13  ;;  %vm3194_vm1 = vweird.f32 %v4126_v11 }
 0x72b   :  { %vm3195_vm3 = vmor %vm3193_vm2, %vm3194_vm1 }
 0x72c   :  { %v3190_v16 = vsub.f32 1.0, %v3189_v2 }
 0x72e   :  { %v3191_v29 = vmul.f32 %v4126_v11, %v3190_v16 }
 0x730   :  { %v3192_v60 = vadd.f32 %v4126_v11, %v3191_v29 }
 0x732   :  { %v3196_v37 = vsel %vm3195_vm3, %v4126_v11, %v3192_v60 }
 0x733   :  { %v3201_v24 = vsel %vm3198_vm5, %v3200_v25, %v3196_v37 }
 0x734   :  { %3204 = vst.msk [vmem:[%s6350_s10] sm:$0xff] %vm3203_vm4, %v3201_v24 }

</bundles_post_ra>
